<compile_context>
chip_gen: v7x
topology: tpu7x:2x2x1
jax: 0.10.0
libtpu: 0.0.40
codegen_flags: <defaults>
</compile_context>

<pallas_src>
import jax
import jax.numpy as jnp
from jax.experimental import pallas as pl
from jax.experimental.pallas import tpu as pltpu


def _round_up(x, m):
    return (x + m - 1) // m * m


def _pick_batch_block(batch, cap, need_mult8):
    """Largest divisor of `batch` <= cap; if the block dim is a sublane dim it
    must be a multiple of 8 or the full extent.  Falls back to one full block."""
    best = None
    for d in range(1, min(batch, cap) + 1):
        if batch % d == 0 and (not need_mult8 or d % 8 == 0 or d == batch):
            best = d
    return best if best is not None else batch


# ----------------------------- Pallas kernels -----------------------------

def _conv_relu_pool_kernel(p_ref, w_ref, b_ref, o_ref):
    """Fused im2col-GEMM + bias + ReLU + 2x2 max-pool for a block of images.

    p_ref: (BB, 4*Mp, K)  corner-concatenated patch rows (K = Cin*k*k, no lane pad).
    w_ref: (K, N)         weight, N = Cout rounded up to a multiple of 8.
    b_ref: (1, N)         bias (zero in padded lanes).
    o_ref: (BB, Mp, N)    pooled, ReLU'd output; row r = pooled pixel r (r < PH*PW).
    """
    w = w_ref[...]
    b = b_ref[...]
    bb_imgs, m_tot, _ = p_ref.shape
    mp = m_tot // 4
    for i in range(bb_imgs):                              # static unroll over the block
        y = jnp.dot(p_ref[i], w, preferred_element_type=jnp.float32) + b
        y = jnp.maximum(y, 0.0)                           # ReLU before pool (== torch)
        o_ref[i] = jnp.maximum(
            jnp.maximum(y[0 * mp:1 * mp], y[1 * mp:2 * mp]),
            jnp.maximum(y[2 * mp:3 * mp], y[3 * mp:4 * mp]))


def _fc_tail_kernel(x_ref, w1_ref, b1_ref, w2_ref, b2_ref, w3_ref, b3_ref, o_ref):
    """fc1+ReLU -> fc2+ReLU -> fc3, chained through VMEM in a single launch."""
    h = jnp.dot(x_ref[...], w1_ref[...], preferred_element_type=jnp.float32) + b1_ref[...]
    h = jnp.maximum(h, 0.0)
    h = jnp.dot(h, w2_ref[...], preferred_element_type=jnp.float32) + b2_ref[...]
    h = jnp.maximum(h, 0.0)
    o_ref[...] = jnp.dot(h, w3_ref[...], preferred_element_type=jnp.float32) + b3_ref[...]


# ----------------------------- wrappers ------------------------------------

def conv_relu_pool(x, w_pack, b_pack, k):
    """x: (B,H,W,C) NHWC -> (B, Mp_pad, N) pooled/ReLU'd conv output.

    Row r < PH*PW corresponds to pooled pixel (r // PW, r % PW); rows >= PH*PW
    and lanes >= Cout are padding (sliced off or killed by zero weights later).
    """
    B, H, W, C = x.shape
    OH, OW = H - k + 1, W - k + 1
    PH, PW = OH // 2, OW // 2
    Mp = PH * PW
    Mp_pad = _round_up(Mp, 8)
    K = C * k * k
    N = w_pack.shape[1]

    # im2col, split by pooling-window corner (p, q) and concatenated along M.
    # Row ph*PW + pw of corner (p, q) is the patch of conv pixel (2ph+p, 2pw+q);
    # feature order (ci, kh, kw) matches torch's conv.weight.reshape(Cout, -1).
    corners = []
    for p in range(2):
        for q in range(2):
            cols = [x[:, p + kh: p + kh + 2 * PH: 2, q + kw: q + kw + 2 * PW: 2, :]
                    for kh in range(k) for kw in range(k)]
            pt = jnp.stack(cols, axis=-1).reshape(B, Mp, K)
            corners.append(jnp.pad(pt, ((0, 0), (0, Mp_pad - Mp), (0, 0))))
    patches = jnp.concatenate(corners, axis=1)            # (B, 4*Mp_pad, K)

    BB = _pick_batch_block(B, cap=8, need_mult8=False)    # leading (untiled) dim
    return pl.pallas_call(
        _conv_relu_pool_kernel,
        out_shape=jax.ShapeDtypeStruct((B, Mp_pad, N), jnp.float32),
        grid=(B // BB,),
        in_specs=[pl.BlockSpec((BB, 4 * Mp_pad, K), lambda i: (i, 0, 0)),
                  pl.BlockSpec((K, N), lambda i: (0, 0)),
                  pl.BlockSpec((1, N), lambda i: (0, 0))],
        out_specs=pl.BlockSpec((BB, Mp_pad, N), lambda i: (i, 0, 0)),
        compiler_params=pltpu.CompilerParams(
            dimension_semantics=("parallel",)),
    )(patches, w_pack, b_pack)


def fc_tail(x, p):
    """x: (B, 512) flattened conv2 output -> (B, 16) logits slab (cols >= 10 are 0)."""
    B, K = x.shape
    BB = _pick_batch_block(B, cap=256, need_mult8=True)   # batch is a sublane dim here
    n_out = p["fc3_w"].shape[1]
    const = lambda i: (0, 0)
    return pl.pallas_call(
        _fc_tail_kernel,
        out_shape=jax.ShapeDtypeStruct((B, n_out), jnp.float32),
        grid=(B // BB,),
        in_specs=[pl.BlockSpec((BB, K), lambda i: (i, 0)),
                  pl.BlockSpec(p["fc1_w"].shape, const),
                  pl.BlockSpec(p["fc1_b"].shape, const),
                  pl.BlockSpec(p["fc2_w"].shape, const),
                  pl.BlockSpec(p["fc2_b"].shape, const),
                  pl.BlockSpec(p["fc3_w"].shape, const),
                  pl.BlockSpec(p["fc3_b"].shape, const)],
        out_specs=pl.BlockSpec((BB, n_out), lambda i: (i, 0)),
        compiler_params=pltpu.CompilerParams(
            dimension_semantics=("parallel",)),
    )(x, p["fc1_w"], p["fc1_b"], p["fc2_w"], p["fc2_b"], p["fc3_w"], p["fc3_b"])


# ----------------------------- parameters ----------------------------------

def init_params(key):
    """Deterministic init mirroring the torch layer shapes (fan-in uniform)."""
    ks = jax.random.split(key, 10)

    def u(k, shape, fan_in):
        bound = 1.0 / jnp.sqrt(jnp.float32(fan_in))
        return jax.random.uniform(k, shape, jnp.float32, -bound, bound)

    return {
        "conv1_w": u(ks[0], (6, 3, 5, 5), 3 * 25),   # torch layout (Cout,Cin,kh,kw)
        "conv1_b": u(ks[1], (6,), 3 * 25),
        "conv2_w": u(ks[2], (16, 6, 5, 5), 6 * 25),
        "conv2_b": u(ks[3], (16,), 6 * 25),
        "fc1_w":   u(ks[4], (400, 120), 400),        # stored as (in, out)
        "fc1_b":   u(ks[5], (120,), 400),
        "fc2_w":   u(ks[6], (120, 84), 120),
        "fc2_b":   u(ks[7], (84,), 120),
        "fc3_w":   u(ks[8], (84, 10), 84),
        "fc3_b":   u(ks[9], (10,), 84),
    }


def prepare_params(params):
    """One-time repack: im2col-GEMM layout with minimal zero padding, and the
    torch (C,H,W) flatten + pooled-row padding folded into fc1's weight rows."""
    prep = {}

    def conv_pack(w_torch, b):
        cout, cin, kh, kw = w_torch.shape
        kfeat = cin * kh * kw
        n = _round_up(cout, 8)
        w_mat = w_torch.reshape(cout, kfeat).T                 # (kfeat, cout); rows = (ci, kh, kw)
        wp = jnp.zeros((kfeat, n), jnp.float32).at[:, :cout].set(w_mat)
        bp = jnp.zeros((1, n), jnp.float32).at[0, :cout].set(b)
        return wp, bp

    prep["c1_w"], prep["c1_b"] = conv_pack(params["conv1_w"], params["conv1_b"])   # (75,8),(1,8)
    prep["c2_w"], prep["c2_b"] = conv_pack(params["conv2_w"], params["conv2_b"])   # (150,16),(1,16)

    # fc1: torch consumes x.view(-1, 400) with feature index c*25 + (ph*5 + pw).
    # The conv2 kernel emits (B, 32, 16) with row r = pooled pixel (real for
    # r < 25) and lane = channel; flattening gives feature index r*16 + c.
    # Permute fc1's rows once to match and zero the 7 padded rows (r = 25..31).
    w1 = params["fc1_w"].reshape(16, 25, 120)                  # (c, hw, out)
    w1 = jnp.transpose(w1, (1, 0, 2))                          # (hw, c, out)
    w1 = jnp.pad(w1, ((0, 7), (0, 0), (0, 8)))                 # (32, 16, 128)
    prep["fc1_w"] = w1.reshape(32 * 16, 128)                   # (512, 128); row = hw*16 + c
    prep["fc1_b"] = jnp.zeros((1, 128), jnp.float32).at[0, :120].set(params["fc1_b"])

    prep["fc2_w"] = jnp.zeros((128, 128), jnp.float32).at[:120, :84].set(params["fc2_w"])
    prep["fc2_b"] = jnp.zeros((1, 128), jnp.float32).at[0, :84].set(params["fc2_b"])
    prep["fc3_w"] = jnp.zeros((128, 16), jnp.float32).at[:84, :10].set(params["fc3_w"])
    prep["fc3_b"] = jnp.zeros((1, 16), jnp.float32).at[0, :10].set(params["fc3_b"])
    return prep


# ----------------------------- model ---------------------------------------

@jax.jit
def simplenet_forward(x_nchw, prep):
    B = x_nchw.shape[0]
    x = jnp.transpose(x_nchw, (0, 2, 3, 1))                    # NCHW -> NHWC (B,32,32,3)
    y1 = conv_relu_pool(x, prep["c1_w"], prep["c1_b"], 5)      # (B,200,8); rows>=196 / lanes>=6 pad
    x1 = y1[:, :196, :6].reshape(B, 14, 14, 6)                 # live rows/lanes only (~6 KB/img)
    y2 = conv_relu_pool(x1, prep["c2_w"], prep["c2_b"], 5)     # (B,32,16); rows>=25 pad
    xf = y2.reshape(B, 32 * 16)                                # (B,512); pad rows hit zero fc1_w rows
    logits = fc_tail(xf, prep)                                 # (B,16)
    return logits[:, :10]


# ----------------------------- reference (pure JAX) -------------------------

def reference_forward(x_nchw, params):
    hp = jax.lax.Precision.HIGHEST

    def conv(x, w, b):
        y = jax.lax.conv_general_dilated(
            x, w, (1, 1), "VALID",
            dimension_numbers=("NCHW", "OIHW", "NCHW"), precision=hp)
        return jax.nn.relu(y + b.reshape(1, -1, 1, 1))

    def pool(y):
        return jnp.maximum(jnp.maximum(y[:, :, 0::2, 0::2], y[:, :, 0::2, 1::2]),
                           jnp.maximum(y[:, :, 1::2, 0::2], y[:, :, 1::2, 1::2]))

    y = pool(conv(x_nchw, params["conv1_w"], params["conv1_b"]))
    y = pool(conv(y, params["conv2_w"], params["conv2_b"]))
    y = y.reshape(y.shape[0], 16 * 5 * 5)                      # torch x.view(-1, 400)
    y = jax.nn.relu(jnp.dot(y, params["fc1_w"], precision=hp) + params["fc1_b"])
    y = jax.nn.relu(jnp.dot(y, params["fc2_w"], precision=hp) + params["fc2_b"])
    return jnp.dot(y, params["fc3_w"], precision=hp) + params["fc3_b"]


if __name__ == "__main__":
    key = jax.random.PRNGKey(0)
    kx, kp = jax.random.split(key)
    # 32x32 spatial / 3 channels is forced by fc1's 16*5*5 = 400 input features.
    x = jax.random.normal(kx, (2, 3, 32, 32), jnp.float32)     # NCHW like torch
    params = init_params(kp)
    prep = prepare_params(params)                              # one-time repack

    out = simplenet_forward(x, prep)
    out = jax.block_until_ready(out)
    assert out.shape == (2, 10) and out.dtype == jnp.float32

    ref = reference_forward(x, params)
    assert jnp.allclose(out, ref, rtol=1e-2, atol=1e-2), (
        f"max abs diff {jnp.max(jnp.abs(out - ref))}")
    print("KERNEL_OK")
</pallas_src>

<mosaic_0001>
module attributes {stable_mosaic.version = 11 : i64} {
  func.func @_conv_relu_pool_kernel(%arg0: i32, %arg1: memref<2x800x75xf32, #tpu.memory_space<vmem>>, %arg2: memref<75x8xf32, #tpu.memory_space<vmem>>, %arg3: memref<1x8xf32, #tpu.memory_space<vmem>>, %arg4: memref<2x200x8xf32, #tpu.memory_space<vmem>>) attributes {dimension_semantics = [#tpu.dimension_semantics<parallel>], iteration_bounds = array<i64: 1>, scalar_prefetch = 0 : i64, scratch_operands = 0 : i64, tpu.core_type = #tpu.core_type<tc>, window_params = [{transform_indices = @transform_0, window_bounds = array<i64: 2, 800, 75>}, {pipeline_mode = #tpu.pipeline_mode<synchronous>, transform_indices = @transform_1, window_bounds = array<i64: 75, 8>}, {pipeline_mode = #tpu.pipeline_mode<synchronous>, transform_indices = @transform_2, window_bounds = array<i64: 1, 8>}, {transform_indices = @transform_3, window_bounds = array<i64: 2, 200, 8>}]} {
    %c0 = arith.constant 0 : index
    %c0_0 = arith.constant 0 : index
    %0 = vector.load %arg2[%c0, %c0_0] : memref<75x8xf32, #tpu.memory_space<vmem>>, vector<75x8xf32>
    %c0_1 = arith.constant 0 : index
    %c0_2 = arith.constant 0 : index
    %1 = vector.load %arg3[%c0_1, %c0_2] : memref<1x8xf32, #tpu.memory_space<vmem>>, vector<1x8xf32>
    %c0_3 = arith.constant 0 : index
    %c0_4 = arith.constant 0 : index
    %c0_5 = arith.constant 0 : index
    %2 = vector.load %arg1[%c0_3, %c0_4, %c0_5] : memref<2x800x75xf32, #tpu.memory_space<vmem>>, vector<1x800x75xf32>
    %3 = vector.shape_cast %2 : vector<1x800x75xf32> to vector<800x75xf32>
    %cst = arith.constant dense<0.000000e+00> : vector<800x8xf32>
    %4 = tpu.matmul %3, %0, %cst {dimension_numbers = #tpu.dot_dimension_numbers<[1], [0], [0], [1], [0, 0, 1, 1], [], []>} : vector<800x75xf32>, vector<75x8xf32>, vector<800x8xf32> -> vector<800x8xf32>
    %5 = vector.broadcast %1 : vector<1x8xf32> to vector<800x8xf32>
    %6 = arith.addf %4, %5 : vector<800x8xf32>
    %cst_6 = arith.constant 0.000000e+00 : f32
    %7 = vector.broadcast %cst_6 : f32 to vector<800x8xf32>
    %8 = arith.maximumf %6, %7 : vector<800x8xf32>
    %9 = vector.extract_strided_slice %8 {offsets = [0, 0], sizes = [200, 8], strides = [1, 1]} : vector<800x8xf32> to vector<200x8xf32>
    %10 = vector.extract_strided_slice %8 {offsets = [200, 0], sizes = [200, 8], strides = [1, 1]} : vector<800x8xf32> to vector<200x8xf32>
    %11 = arith.maximumf %9, %10 : vector<200x8xf32>
    %12 = vector.extract_strided_slice %8 {offsets = [400, 0], sizes = [200, 8], strides = [1, 1]} : vector<800x8xf32> to vector<200x8xf32>
    %13 = vector.extract_strided_slice %8 {offsets = [600, 0], sizes = [200, 8], strides = [1, 1]} : vector<800x8xf32> to vector<200x8xf32>
    %14 = arith.maximumf %12, %13 : vector<200x8xf32>
    %15 = arith.maximumf %11, %14 : vector<200x8xf32>
    %c0_7 = arith.constant 0 : index
    %c0_8 = arith.constant 0 : index
    %c0_9 = arith.constant 0 : index
    %16 = vector.load %arg4[%c0_7, %c0_8, %c0_9] : memref<2x200x8xf32, #tpu.memory_space<vmem>>, vector<1x200x8xf32>
    %17 = vector.shape_cast %16 : vector<1x200x8xf32> to vector<200x8xf32>
    %18 = vector.shape_cast %15 : vector<200x8xf32> to vector<1x200x8xf32>
    tpu.vector_store %arg4[%c0_7, %c0_8, %c0_9], %18 {strides = array<i32>} : memref<2x200x8xf32, #tpu.memory_space<vmem>>, vector<1x200x8xf32>,
    %c1 = arith.constant 1 : index
    %c0_10 = arith.constant 0 : index
    %c0_11 = arith.constant 0 : index
    %19 = vector.load %arg1[%c1, %c0_10, %c0_11] : memref<2x800x75xf32, #tpu.memory_space<vmem>>, vector<1x800x75xf32>
    %20 = vector.shape_cast %19 : vector<1x800x75xf32> to vector<800x75xf32>
    %cst_12 = arith.constant dense<0.000000e+00> : vector<800x8xf32>
    %21 = tpu.matmul %20, %0, %cst_12 {dimension_numbers = #tpu.dot_dimension_numbers<[1], [0], [0], [1], [0, 0, 1, 1], [], []>} : vector<800x75xf32>, vector<75x8xf32>, vector<800x8xf32> -> vector<800x8xf32>
    %22 = vector.broadcast %1 : vector<1x8xf32> to vector<800x8xf32>
    %23 = arith.addf %21, %22 : vector<800x8xf32>
    %cst_13 = arith.constant 0.000000e+00 : f32
    %24 = vector.broadcast %cst_13 : f32 to vector<800x8xf32>
    %25 = arith.maximumf %23, %24 : vector<800x8xf32>
    %26 = vector.extract_strided_slice %25 {offsets = [0, 0], sizes = [200, 8], strides = [1, 1]} : vector<800x8xf32> to vector<200x8xf32>
    %27 = vector.extract_strided_slice %25 {offsets = [200, 0], sizes = [200, 8], strides = [1, 1]} : vector<800x8xf32> to vector<200x8xf32>
    %28 = arith.maximumf %26, %27 : vector<200x8xf32>
    %29 = vector.extract_strided_slice %25 {offsets = [400, 0], sizes = [200, 8], strides = [1, 1]} : vector<800x8xf32> to vector<200x8xf32>
    %30 = vector.extract_strided_slice %25 {offsets = [600, 0], sizes = [200, 8], strides = [1, 1]} : vector<800x8xf32> to vector<200x8xf32>
    %31 = arith.maximumf %29, %30 : vector<200x8xf32>
    %32 = arith.maximumf %28, %31 : vector<200x8xf32>
    %c1_14 = arith.constant 1 : index
    %c0_15 = arith.constant 0 : index
    %c0_16 = arith.constant 0 : index
    %33 = vector.load %arg4[%c1_14, %c0_15, %c0_16] : memref<2x200x8xf32, #tpu.memory_space<vmem>>, vector<1x200x8xf32>
    %34 = vector.shape_cast %33 : vector<1x200x8xf32> to vector<200x8xf32>
    %35 = vector.shape_cast %32 : vector<200x8xf32> to vector<1x200x8xf32>
    tpu.vector_store %arg4[%c1_14, %c0_15, %c0_16], %35 {strides = array<i32>} : memref<2x200x8xf32, #tpu.memory_space<vmem>>, vector<1x200x8xf32>,
    return
  }
  func.func @transform_0(%arg0: i32) -> (i32, i32, i32) {
    %c0_i32 = arith.constant 0 : i32
    %c0_i32_0 = arith.constant 0 : i32
    %c0_i32_1 = arith.constant 0 : i32
    return %arg0, %c0_i32, %c0_i32_0 : i32, i32, i32
  }
  func.func @transform_1(%arg0: i32) -> (i32, i32) {
    %c0_i32 = arith.constant 0 : i32
    %c0_i32_0 = arith.constant 0 : i32
    %c0_i32_1 = arith.constant 0 : i32
    return %c0_i32, %c0_i32_0 : i32, i32
  }
  func.func @transform_2(%arg0: i32) -> (i32, i32) {
    %c0_i32 = arith.constant 0 : i32
    %c0_i32_0 = arith.constant 0 : i32
    %c0_i32_1 = arith.constant 0 : i32
    return %c0_i32, %c0_i32_0 : i32, i32
  }
  func.func @transform_3(%arg0: i32) -> (i32, i32, i32) {
    %c0_i32 = arith.constant 0 : i32
    %c0_i32_0 = arith.constant 0 : i32
    %c0_i32_1 = arith.constant 0 : i32
    return %arg0, %c0_i32, %c0_i32_0 : i32, i32, i32
  }
}

module attributes {stable_mosaic.version = 11 : i64} {
  func.func @_conv_relu_pool_kernel(%arg0: i32, %arg1: memref<2x128x150xf32, #tpu.memory_space<vmem>>, %arg2: memref<150x16xf32, #tpu.memory_space<vmem>>, %arg3: memref<1x16xf32, #tpu.memory_space<vmem>>, %arg4: memref<2x32x16xf32, #tpu.memory_space<vmem>>) attributes {dimension_semantics = [#tpu.dimension_semantics<parallel>], iteration_bounds = array<i64: 1>, scalar_prefetch = 0 : i64, scratch_operands = 0 : i64, tpu.core_type = #tpu.core_type<tc>, window_params = [{transform_indices = @transform_0, window_bounds = array<i64: 2, 128, 150>}, {pipeline_mode = #tpu.pipeline_mode<synchronous>, transform_indices = @transform_1, window_bounds = array<i64: 150, 16>}, {pipeline_mode = #tpu.pipeline_mode<synchronous>, transform_indices = @transform_2, window_bounds = array<i64: 1, 16>}, {transform_indices = @transform_3, window_bounds = array<i64: 2, 32, 16>}]} {
    %c0 = arith.constant 0 : index
    %c0_0 = arith.constant 0 : index
    %0 = vector.load %arg2[%c0, %c0_0] : memref<150x16xf32, #tpu.memory_space<vmem>>, vector<150x16xf32>
    %c0_1 = arith.constant 0 : index
    %c0_2 = arith.constant 0 : index
    %1 = vector.load %arg3[%c0_1, %c0_2] : memref<1x16xf32, #tpu.memory_space<vmem>>, vector<1x16xf32>
    %c0_3 = arith.constant 0 : index
    %c0_4 = arith.constant 0 : index
    %c0_5 = arith.constant 0 : index
    %2 = vector.load %arg1[%c0_3, %c0_4, %c0_5] : memref<2x128x150xf32, #tpu.memory_space<vmem>>, vector<1x128x150xf32>
    %3 = vector.shape_cast %2 : vector<1x128x150xf32> to vector<128x150xf32>
    %cst = arith.constant dense<0.000000e+00> : vector<128x16xf32>
    %4 = tpu.matmul %3, %0, %cst {dimension_numbers = #tpu.dot_dimension_numbers<[1], [0], [0], [1], [0, 0, 1, 1], [], []>} : vector<128x150xf32>, vector<150x16xf32>, vector<128x16xf32> -> vector<128x16xf32>
    %5 = vector.broadcast %1 : vector<1x16xf32> to vector<128x16xf32>
    %6 = arith.addf %4, %5 : vector<128x16xf32>
    %cst_6 = arith.constant 0.000000e+00 : f32
    %7 = vector.broadcast %cst_6 : f32 to vector<128x16xf32>
    %8 = arith.maximumf %6, %7 : vector<128x16xf32>
    %9 = vector.extract_strided_slice %8 {offsets = [0, 0], sizes = [32, 16], strides = [1, 1]} : vector<128x16xf32> to vector<32x16xf32>
    %10 = vector.extract_strided_slice %8 {offsets = [32, 0], sizes = [32, 16], strides = [1, 1]} : vector<128x16xf32> to vector<32x16xf32>
    %11 = arith.maximumf %9, %10 : vector<32x16xf32>
    %12 = vector.extract_strided_slice %8 {offsets = [64, 0], sizes = [32, 16], strides = [1, 1]} : vector<128x16xf32> to vector<32x16xf32>
    %13 = vector.extract_strided_slice %8 {offsets = [96, 0], sizes = [32, 16], strides = [1, 1]} : vector<128x16xf32> to vector<32x16xf32>
    %14 = arith.maximumf %12, %13 : vector<32x16xf32>
    %15 = arith.maximumf %11, %14 : vector<32x16xf32>
    %c0_7 = arith.constant 0 : index
    %c0_8 = arith.constant 0 : index
    %c0_9 = arith.constant 0 : index
    %16 = vector.load %arg4[%c0_7, %c0_8, %c0_9] : memref<2x32x16xf32, #tpu.memory_space<vmem>>, vector<1x32x16xf32>
    %17 = vector.shape_cast %16 : vector<1x32x16xf32> to vector<32x16xf32>
    %18 = vector.shape_cast %15 : vector<32x16xf32> to vector<1x32x16xf32>
    tpu.vector_store %arg4[%c0_7, %c0_8, %c0_9], %18 {strides = array<i32>} : memref<2x32x16xf32, #tpu.memory_space<vmem>>, vector<1x32x16xf32>,
    %c1 = arith.constant 1 : index
    %c0_10 = arith.constant 0 : index
    %c0_11 = arith.constant 0 : index
    %19 = vector.load %arg1[%c1, %c0_10, %c0_11] : memref<2x128x150xf32, #tpu.memory_space<vmem>>, vector<1x128x150xf32>
    %20 = vector.shape_cast %19 : vector<1x128x150xf32> to vector<128x150xf32>
    %cst_12 = arith.constant dense<0.000000e+00> : vector<128x16xf32>
    %21 = tpu.matmul %20, %0, %cst_12 {dimension_numbers = #tpu.dot_dimension_numbers<[1], [0], [0], [1], [0, 0, 1, 1], [], []>} : vector<128x150xf32>, vector<150x16xf32>, vector<128x16xf32> -> vector<128x16xf32>
    %22 = vector.broadcast %1 : vector<1x16xf32> to vector<128x16xf32>
    %23 = arith.addf %21, %22 : vector<128x16xf32>
    %cst_13 = arith.constant 0.000000e+00 : f32
    %24 = vector.broadcast %cst_13 : f32 to vector<128x16xf32>
    %25 = arith.maximumf %23, %24 : vector<128x16xf32>
    %26 = vector.extract_strided_slice %25 {offsets = [0, 0], sizes = [32, 16], strides = [1, 1]} : vector<128x16xf32> to vector<32x16xf32>
    %27 = vector.extract_strided_slice %25 {offsets = [32, 0], sizes = [32, 16], strides = [1, 1]} : vector<128x16xf32> to vector<32x16xf32>
    %28 = arith.maximumf %26, %27 : vector<32x16xf32>
    %29 = vector.extract_strided_slice %25 {offsets = [64, 0], sizes = [32, 16], strides = [1, 1]} : vector<128x16xf32> to vector<32x16xf32>
    %30 = vector.extract_strided_slice %25 {offsets = [96, 0], sizes = [32, 16], strides = [1, 1]} : vector<128x16xf32> to vector<32x16xf32>
    %31 = arith.maximumf %29, %30 : vector<32x16xf32>
    %32 = arith.maximumf %28, %31 : vector<32x16xf32>
    %c1_14 = arith.constant 1 : index
    %c0_15 = arith.constant 0 : index
    %c0_16 = arith.constant 0 : index
    %33 = vector.load %arg4[%c1_14, %c0_15, %c0_16] : memref<2x32x16xf32, #tpu.memory_space<vmem>>, vector<1x32x16xf32>
    %34 = vector.shape_cast %33 : vector<1x32x16xf32> to vector<32x16xf32>
    %35 = vector.shape_cast %32 : vector<32x16xf32> to vector<1x32x16xf32>
    tpu.vector_store %arg4[%c1_14, %c0_15, %c0_16], %35 {strides = array<i32>} : memref<2x32x16xf32, #tpu.memory_space<vmem>>, vector<1x32x16xf32>,
    return
  }
  func.func @transform_0(%arg0: i32) -> (i32, i32, i32) {
    %c0_i32 = arith.constant 0 : i32
    %c0_i32_0 = arith.constant 0 : i32
    %c0_i32_1 = arith.constant 0 : i32
    return %arg0, %c0_i32, %c0_i32_0 : i32, i32, i32
  }
  func.func @transform_1(%arg0: i32) -> (i32, i32) {
    %c0_i32 = arith.constant 0 : i32
    %c0_i32_0 = arith.constant 0 : i32
    %c0_i32_1 = arith.constant 0 : i32
    return %c0_i32, %c0_i32_0 : i32, i32
  }
  func.func @transform_2(%arg0: i32) -> (i32, i32) {
    %c0_i32 = arith.constant 0 : i32
    %c0_i32_0 = arith.constant 0 : i32
    %c0_i32_1 = arith.constant 0 : i32
    return %c0_i32, %c0_i32_0 : i32, i32
  }
  func.func @transform_3(%arg0: i32) -> (i32, i32, i32) {
    %c0_i32 = arith.constant 0 : i32
    %c0_i32_0 = arith.constant 0 : i32
    %c0_i32_1 = arith.constant 0 : i32
    return %arg0, %c0_i32, %c0_i32_0 : i32, i32, i32
  }
}

module attributes {stable_mosaic.version = 11 : i64} {
  func.func @_fc_tail_kernel(%arg0: i32, %arg1: memref<2x512xf32, #tpu.memory_space<vmem>>, %arg2: memref<512x128xf32, #tpu.memory_space<vmem>>, %arg3: memref<1x128xf32, #tpu.memory_space<vmem>>, %arg4: memref<128x128xf32, #tpu.memory_space<vmem>>, %arg5: memref<1x128xf32, #tpu.memory_space<vmem>>, %arg6: memref<128x16xf32, #tpu.memory_space<vmem>>, %arg7: memref<1x16xf32, #tpu.memory_space<vmem>>, %arg8: memref<2x16xf32, #tpu.memory_space<vmem>>) attributes {dimension_semantics = [#tpu.dimension_semantics<parallel>], iteration_bounds = array<i64: 1>, scalar_prefetch = 0 : i64, scratch_operands = 0 : i64, tpu.core_type = #tpu.core_type<tc>, window_params = [{transform_indices = @transform_0, window_bounds = array<i64: 2, 512>}, {pipeline_mode = #tpu.pipeline_mode<synchronous>, transform_indices = @transform_1, window_bounds = array<i64: 512, 128>}, {pipeline_mode = #tpu.pipeline_mode<synchronous>, transform_indices = @transform_2, window_bounds = array<i64: 1, 128>}, {pipeline_mode = #tpu.pipeline_mode<synchronous>, transform_indices = @transform_3, window_bounds = array<i64: 128, 128>}, {pipeline_mode = #tpu.pipeline_mode<synchronous>, transform_indices = @transform_4, window_bounds = array<i64: 1, 128>}, {pipeline_mode = #tpu.pipeline_mode<synchronous>, transform_indices = @transform_5, window_bounds = array<i64: 128, 16>}, {pipeline_mode = #tpu.pipeline_mode<synchronous>, transform_indices = @transform_6, window_bounds = array<i64: 1, 16>}, {transform_indices = @transform_7, window_bounds = array<i64: 2, 16>}]} {
    %c0 = arith.constant 0 : index
    %c0_0 = arith.constant 0 : index
    %0 = vector.load %arg1[%c0, %c0_0] : memref<2x512xf32, #tpu.memory_space<vmem>>, vector<2x512xf32>
    %c0_1 = arith.constant 0 : index
    %c0_2 = arith.constant 0 : index
    %1 = vector.load %arg2[%c0_1, %c0_2] : memref<512x128xf32, #tpu.memory_space<vmem>>, vector<512x128xf32>
    %cst = arith.constant dense<0.000000e+00> : vector<2x128xf32>
    %2 = tpu.matmul %0, %1, %cst {dimension_numbers = #tpu.dot_dimension_numbers<[1], [0], [0], [1], [0, 0, 1, 1], [], []>} : vector<2x512xf32>, vector<512x128xf32>, vector<2x128xf32> -> vector<2x128xf32>
    %c0_3 = arith.constant 0 : index
    %c0_4 = arith.constant 0 : index
    %3 = vector.load %arg3[%c0_3, %c0_4] : memref<1x128xf32, #tpu.memory_space<vmem>>, vector<1x128xf32>
    %4 = vector.broadcast %3 : vector<1x128xf32> to vector<2x128xf32>
    %5 = arith.addf %2, %4 : vector<2x128xf32>
    %cst_5 = arith.constant 0.000000e+00 : f32
    %6 = vector.broadcast %cst_5 : f32 to vector<2x128xf32>
    %7 = arith.maximumf %5, %6 : vector<2x128xf32>
    %c0_6 = arith.constant 0 : index
    %c0_7 = arith.constant 0 : index
    %8 = vector.load %arg4[%c0_6, %c0_7] : memref<128x128xf32, #tpu.memory_space<vmem>>, vector<128x128xf32>
    %cst_8 = arith.constant dense<0.000000e+00> : vector<2x128xf32>
    %9 = tpu.matmul %7, %8, %cst_8 {dimension_numbers = #tpu.dot_dimension_numbers<[1], [0], [0], [1], [0, 0, 1, 1], [], []>} : vector<2x128xf32>, vector<128x128xf32>, vector<2x128xf32> -> vector<2x128xf32>
    %c0_9 = arith.constant 0 : index
    %c0_10 = arith.constant 0 : index
    %10 = vector.load %arg5[%c0_9, %c0_10] : memref<1x128xf32, #tpu.memory_space<vmem>>, vector<1x128xf32>
    %11 = vector.broadcast %10 : vector<1x128xf32> to vector<2x128xf32>
    %12 = arith.addf %9, %11 : vector<2x128xf32>
    %cst_11 = arith.constant 0.000000e+00 : f32
    %13 = vector.broadcast %cst_11 : f32 to vector<2x128xf32>
    %14 = arith.maximumf %12, %13 : vector<2x128xf32>
    %c0_12 = arith.constant 0 : index
    %c0_13 = arith.constant 0 : index
    %15 = vector.load %arg6[%c0_12, %c0_13] : memref<128x16xf32, #tpu.memory_space<vmem>>, vector<128x16xf32>
    %cst_14 = arith.constant dense<0.000000e+00> : vector<2x16xf32>
    %16 = tpu.matmul %14, %15, %cst_14 {dimension_numbers = #tpu.dot_dimension_numbers<[1], [0], [0], [1], [0, 0, 1, 1], [], []>} : vector<2x128xf32>, vector<128x16xf32>, vector<2x16xf32> -> vector<2x16xf32>
    %c0_15 = arith.constant 0 : index
    %c0_16 = arith.constant 0 : index
    %17 = vector.load %arg7[%c0_15, %c0_16] : memref<1x16xf32, #tpu.memory_space<vmem>>, vector<1x16xf32>
    %18 = vector.broadcast %17 : vector<1x16xf32> to vector<2x16xf32>
    %19 = arith.addf %16, %18 : vector<2x16xf32>
    %c0_17 = arith.constant 0 : index
    %c0_18 = arith.constant 0 : index
    %20 = vector.load %arg8[%c0_17, %c0_18] : memref<2x16xf32, #tpu.memory_space<vmem>>, vector<2x16xf32>
    tpu.vector_store %arg8[%c0_17, %c0_18], %19 {strides = array<i32>} : memref<2x16xf32, #tpu.memory_space<vmem>>, vector<2x16xf32>,
    return
  }
  func.func @transform_0(%arg0: i32) -> (i32, i32) {
    %c0_i32 = arith.constant 0 : i32
    %c0_i32_0 = arith.constant 0 : i32
    return %arg0, %c0_i32 : i32, i32
  }
  func.func @transform_1(%arg0: i32) -> (i32, i32) {
    %c0_i32 = arith.constant 0 : i32
    %c0_i32_0 = arith.constant 0 : i32
    %c0_i32_1 = arith.constant 0 : i32
    return %c0_i32, %c0_i32_0 : i32, i32
  }
  func.func @transform_2(%arg0: i32) -> (i32, i32) {
    %c0_i32 = arith.constant 0 : i32
    %c0_i32_0 = arith.constant 0 : i32
    %c0_i32_1 = arith.constant 0 : i32
    return %c0_i32, %c0_i32_0 : i32, i32
  }
  func.func @transform_3(%arg0: i32) -> (i32, i32) {
    %c0_i32 = arith.constant 0 : i32
    %c0_i32_0 = arith.constant 0 : i32
    %c0_i32_1 = arith.constant 0 : i32
    return %c0_i32, %c0_i32_0 : i32, i32
  }
  func.func @transform_4(%arg0: i32) -> (i32, i32) {
    %c0_i32 = arith.constant 0 : i32
    %c0_i32_0 = arith.constant 0 : i32
    %c0_i32_1 = arith.constant 0 : i32
    return %c0_i32, %c0_i32_0 : i32, i32
  }
  func.func @transform_5(%arg0: i32) -> (i32, i32) {
    %c0_i32 = arith.constant 0 : i32
    %c0_i32_0 = arith.constant 0 : i32
    %c0_i32_1 = arith.constant 0 : i32
    return %c0_i32, %c0_i32_0 : i32, i32
  }
  func.func @transform_6(%arg0: i32) -> (i32, i32) {
    %c0_i32 = arith.constant 0 : i32
    %c0_i32_0 = arith.constant 0 : i32
    %c0_i32_1 = arith.constant 0 : i32
    return %c0_i32, %c0_i32_0 : i32, i32
  }
  func.func @transform_7(%arg0: i32) -> (i32, i32) {
    %c0_i32 = arith.constant 0 : i32
    %c0_i32_0 = arith.constant 0 : i32
    return %arg0, %c0_i32 : i32, i32
  }
}

</mosaic_0001>

<bundles_post_ra>
// kernel: simplenet_forward.3
= control target key start
LH: loop header
LB: loop body
LE: loop exit
PB: predicated region body
PF: predicated region fallthrough
CT: control target
= control target key end

     0   :  { %vm131_vm0 = vcmask 613376   ;;  %vm432_vm1 = vcmask 1042432   ;;  %vm3307_vm2 = vmmov 1   ;;  %vm1176_vm4 = vcmask 64512   ;;  %s5252_s1 = inlined_call_operand.vmem [shape: f32[75,8], index: 1, kind: input, shape index: {}]   ;;  %s5253_s0 = inlined_call_operand.vmem [shape: f32[2,800,75], index: 0, kind: input, shape index: {}]   ;;  %s5254_s2 = inlined_call_operand.vmem [shape: f32[1,8], index: 2, kind: input, shape index: {}]   ;;  %s5255_s3 = inlined_call_operand.vmem [shape: f32[2,200,8], index: 3, kind: output, shape index: {}]  }
   0x1   :  { %v14_v0 = vld [vmem:[%s5252_s1] sm:$0xff]  ;;  %v15_v1 = vld [vmem:[%s5252_s1 + $0x8] sm:$0xff]  ;;  %v16_v2 = vld [vmem:[%s5252_s1 + $0x10] sm:$0xff] }
   0x2   :  { %v3261_v3 = vpack.c.bf16 %v15_v1, %v14_v0  ;;  %v17_v4 = vld [vmem:[%s5252_s1 + $0x18] sm:$0xff]  ;;  %v18_v6 = vld [vmem:[%s5252_s1 + $0x20] sm:$0xff]  ;;  %v19_v7 = vld [vmem:[%s5252_s1 + $0x28] sm:$0xff] }
   0x3   :  { %v3265_v5 = vpack.c.bf16 %v17_v4, %v16_v2  ;;  %v25_v8 = vld [vmem:[%s5253_s0] sm:$0xff]  ;;  %v3269_v10 = vpack.c.bf16 %v19_v7, %v18_v6  ;;  %v20_v11 = vld [vmem:[%s5252_s1 + $0x30] sm:$0xff]  ;;  %v21_v12 = vld [vmem:[%s5252_s1 + $0x38] sm:$0xff] }
   0x4   :  { %3262 = vmatprep.subr.bf16.mxu0 %v3261_v3  ;;  %3284 = vmatprep.subr.bf16.mxu1 %v3261_v3  ;;  %v2475_v9 = vld [vmem:[%s5253_s0 + $0x320] sm:$0xff]  ;;  %v3273_v13 = vpack.c.bf16 %v21_v12, %v20_v11  ;;  %v23_v15 = vld [vmem:[%s5252_s1 + $0x48] sm:$0x7]  ;;  %vm3278_vm3 = vmpackc.low %vm432_vm1, %vm3307_vm2 }
   0x5   :  { %3264 = vmatpush3.bf16.msra.mxu0 %v3261_v3  ;;  %3286 = vmatpush3.bf16.msra.mxu1 %v3261_v3  ;;  %v22_v14 = vld [vmem:[%s5252_s1 + $0x40] sm:$0xff]  ;;  %v26_v17 = vld [vmem:[%s5253_s0 + $0x8] sm:$0xff]  ;;  %v27_v19 = vld [vmem:[%s5253_s0 + $0x10] sm:$0xff] }
   0x6   :  { %3266 = vmatprep.subr.bf16.mxu0 %v3265_v5  ;;  %3288 = vmatprep.subr.bf16.mxu1 %v3265_v5  ;;  %v3277_v16 = vpack.c.bf16 %v23_v15, %v22_v14  ;;  %v2476_v18 = vld [vmem:[%s5253_s0 + $0x328] sm:$0xff]  ;;  %v2477_v20 = vld [vmem:[%s5253_s0 + $0x330] sm:$0xff]  ;;  %v28_v21 = vld [vmem:[%s5253_s0 + $0x18] sm:$0xff] }
   0x7   :  { %2941 = vmatprep.mubr.msk.f32.mxu0 %vm131_vm0, %v25_v8  ;;  %3111 = vmatprep.mubr.msk.f32.mxu1 %vm131_vm0, %v2475_v9  ;;  %v2478_v22 = vld [vmem:[%s5253_s0 + $0x338] sm:$0xff]  ;;  %v29_v23 = vld [vmem:[%s5253_s0 + $0x20] sm:$0xff]  ;;  %v30_v25 = vld [vmem:[%s5253_s0 + $0x28] sm:$0xff] }
   0x8   :  { %v2479_v24 = vld [vmem:[%s5253_s0 + $0x340] sm:$0xff]  ;;  %v2480_v26 = vld [vmem:[%s5253_s0 + $0x348] sm:$0xff]  ;;  %v31_v27 = vld [vmem:[%s5253_s0 + $0x30] sm:$0xff] }
   0x9   :  { %3268 = vmatpush3.bf16.msra.mxu0 %v3265_v5  ;;  %3290 = vmatpush3.bf16.msra.mxu1 %v3265_v5  ;;  %v2481_v28 = vld [vmem:[%s5253_s0 + $0x350] sm:$0xff]  ;;  %v32_v29 = vld [vmem:[%s5253_s0 + $0x38] sm:$0xff]  ;;  %v33_v31 = vld [vmem:[%s5253_s0 + $0x40] sm:$0xff] }
   0xa   :  { %3270 = vmatprep.subr.bf16.mxu0 %v3269_v10  ;;  %3292 = vmatprep.subr.bf16.mxu1 %v3269_v10  ;;  %v2482_v30 = vld [vmem:[%s5253_s0 + $0x358] sm:$0xff]  ;;  %v2483_v32 = vld [vmem:[%s5253_s0 + $0x360] sm:$0xff]  ;;  %v34_v33 = vld [vmem:[%s5253_s0 + $0x48] sm:$0xff] }
   0xb   :  { %v2484_v34 = vld [vmem:[%s5253_s0 + $0x368] sm:$0xff]  ;;  %v35_v35 = vld [vmem:[%s5253_s0 + $0x50] sm:$0xff]  ;;  %v36_v37 = vld [vmem:[%s5253_s0 + $0x58] sm:$0xff] }
   0xc   :  { %v2485_v36 = vld [vmem:[%s5253_s0 + $0x370] sm:$0xff]  ;;  %v2486_v38 = vld [vmem:[%s5253_s0 + $0x378] sm:$0xff]  ;;  %v37_v39 = vld [vmem:[%s5253_s0 + $0x60] sm:$0xff] }
   0xd   :  { %3272 = vmatpush3.bf16.msra.mxu0 %v3269_v10  ;;  %3294 = vmatpush3.bf16.msra.mxu1 %v3269_v10  ;;  %v2487_v40 = vld [vmem:[%s5253_s0 + $0x380] sm:$0xff]  ;;  %v38_v41 = vld [vmem:[%s5253_s0 + $0x68] sm:$0xff]  ;;  %v39_v43 = vld [vmem:[%s5253_s0 + $0x70] sm:$0xff] }
   0xe   :  { %3274 = vmatprep.subr.bf16.mxu0 %v3273_v13  ;;  %3296 = vmatprep.subr.bf16.mxu1 %v3273_v13  ;;  %v2488_v42 = vld [vmem:[%s5253_s0 + $0x388] sm:$0xff]  ;;  %v2489_v44 = vld [vmem:[%s5253_s0 + $0x390] sm:$0xff]  ;;  %v40_v45 = vld [vmem:[%s5253_s0 + $0x78] sm:$0xff] }
   0xf   :  { %v2490_v46 = vld [vmem:[%s5253_s0 + $0x398] sm:$0xff]  ;;  %v41_v47 = vld [vmem:[%s5253_s0 + $0x80] sm:$0xff]  ;;  %v42_v49 = vld [vmem:[%s5253_s0 + $0x88] sm:$0xff] }
  0x10   :  { %v2491_v48 = vld [vmem:[%s5253_s0 + $0x3a0] sm:$0xff]  ;;  %v2492_v50 = vld [vmem:[%s5253_s0 + $0x3a8] sm:$0xff]  ;;  %v43_v51 = vld [vmem:[%s5253_s0 + $0x90] sm:$0xff] }
  0x11   :  { %3276 = vmatpush3.bf16.msra.mxu0 %v3273_v13  ;;  %3298 = vmatpush3.bf16.msra.mxu1 %v3273_v13  ;;  %v2493_v52 = vld [vmem:[%s5253_s0 + $0x3b0] sm:$0xff]  ;;  %v44_v53 = vld [vmem:[%s5253_s0 + $0x98] sm:$0xff]  ;;  %v45_v55 = vld [vmem:[%s5253_s0 + $0xa0] sm:$0xff] }
  0x12   :  { %3279 = vmatprep.subr.msk.bf16.mxu0 %vm3278_vm3, %v3277_v16  ;;  %3301 = vmatprep.subr.msk.bf16.mxu1 %vm3278_vm3, %v3277_v16  ;;  %v2494_v54 = vld [vmem:[%s5253_s0 + $0x3b8] sm:$0xff]  ;;  %v2495_v56 = vld [vmem:[%s5253_s0 + $0x3c0] sm:$0xff]  ;;  %v46_v57 = vld [vmem:[%s5253_s0 + $0xa8] sm:$0xff] }
  0x13   :  { %v2496_v58 = vld [vmem:[%s5253_s0 + $0x3c8] sm:$0xff]  ;;  %v47_v59 = vld [vmem:[%s5253_s0 + $0xb0] sm:$0xff]  ;;  %v48_v61 = vld [vmem:[%s5253_s0 + $0xb8] sm:$0xff] }
  0x14   :  { %v2497_v60 = vld [vmem:[%s5253_s0 + $0x3d0] sm:$0xff]  ;;  %v2498_v62 = vld [vmem:[%s5253_s0 + $0x3d8] sm:$0xff]  ;;  %v49_v63 = vld [vmem:[%s5253_s0 + $0xc0] sm:$0xff] }
  0x15   :  { %3282 = vmatpush3.bf16.msk.msra.mxu0 %vm3278_vm3, %v3277_v16  ;;  %3304 = vmatpush3.bf16.msk.msra.mxu1 %vm3278_vm3, %v3277_v16  ;;  %v2499_v0 = vld [vmem:[%s5253_s0 + $0x3e0] sm:$0xff]  ;;  %v50_v1 = vld [vmem:[%s5253_s0 + $0xc8] sm:$0xff]  ;;  %v51_v3 = vld [vmem:[%s5253_s0 + $0xd0] sm:$0xff] }
  0x16   :  { %v2500_v2 = vld [vmem:[%s5253_s0 + $0x3e8] sm:$0xff]  ;;  %v2501_v4 = vld [vmem:[%s5253_s0 + $0x3f0] sm:$0xff]  ;;  %v52_v5 = vld [vmem:[%s5253_s0 + $0xd8] sm:$0xff] }
  0x17   :  { %v2502_v6 = vld [vmem:[%s5253_s0 + $0x3f8] sm:$0xff]  ;;  %v53_v7 = vld [vmem:[%s5253_s0 + $0xe0] sm:$0xff]  ;;  %v54_v9 = vld [vmem:[%s5253_s0 + $0xe8] sm:$0xff] }
  0x18   :  { %2942 = vmatmul.mubr.msk.f32.vlgmr.msra.gmra.mrb[0].mxu0 %vm131_vm0, %v26_v17  ;;  %3112 = vmatmul.mubr.msk.f32.vlgmr.msra.gmra.mrb[0].mxu1 %vm131_vm0, %v2476_v18  ;;  %v2503_v8 = vld [vmem:[%s5253_s0 + $0x400] sm:$0xff]  ;;  %v2504_v10 = vld [vmem:[%s5253_s0 + $0x408] sm:$0xff]  ;;  %v55_v11 = vld [vmem:[%s5253_s0 + $0xf0] sm:$0xff] }
  0x19   :  { %2944 = vmatprep.mubr.msk.f32.mxu0 %vm131_vm0, %v27_v19  ;;  %3114 = vmatprep.mubr.msk.f32.mxu1 %vm131_vm0, %v2477_v20  ;;  %v2505_v12 = vld [vmem:[%s5253_s0 + $0x410] sm:$0xff]  ;;  %v56_v13 = vld [vmem:[%s5253_s0 + $0xf8] sm:$0xff]  ;;  %v57_v15 = vld [vmem:[%s5253_s0 + $0x100] sm:$0xff] }
  0x1a   :  { %v2506_v14 = vld [vmem:[%s5253_s0 + $0x418] sm:$0xff]  ;;  %v2507_v16 = vld [vmem:[%s5253_s0 + $0x420] sm:$0xff]  ;;  %v58_v17 = vld [vmem:[%s5253_s0 + $0x108] sm:$0xff] }
  0x1b   :  { %v2508_v18 = vld [vmem:[%s5253_s0 + $0x428] sm:$0xff]  ;;  %v59_v19 = vld [vmem:[%s5253_s0 + $0x110] sm:$0xff] }
  0x1c   :  { %2945 = vmatmul.mubr.msk.f32.gmra.mrb[2].mxu0 %vm131_vm0, %v28_v21  ;;  %3115 = vmatmul.mubr.msk.f32.gmra.mrb[2].mxu1 %vm131_vm0, %v2478_v22  ;;  %v2509_v20 = vld [vmem:[%s5253_s0 + $0x430] sm:$0xff]  ;;  %v60_v21 = vld [vmem:[%s5253_s0 + $0x118] sm:$0xff] }
  0x1d   :  { %2947 = vmatprep.mubr.msk.f32.mxu0 %vm131_vm0, %v29_v23  ;;  %3117 = vmatprep.mubr.msk.f32.mxu1 %vm131_vm0, %v2479_v24  ;;  %v2510_v22 = vld [vmem:[%s5253_s0 + $0x438] sm:$0xff]  ;;  %v61_v23 = vld [vmem:[%s5253_s0 + $0x120] sm:$0xff] }
  0x1e   :  { %v2511_v24 = vld [vmem:[%s5253_s0 + $0x440] sm:$0xff] }
  0x20   :  { %2948 = vmatmul.mubr.msk.f32.gmra.mrb[4].mxu0 %vm131_vm0, %v30_v25  ;;  %3118 = vmatmul.mubr.msk.f32.gmra.mrb[4].mxu1 %vm131_vm0, %v2480_v26  ;;  %v62_v25 = vld [vmem:[%s5253_s0 + $0x128] sm:$0xff] }
  0x21   :  { %2950 = vmatprep.mubr.msk.f32.mxu0 %vm131_vm0, %v31_v27  ;;  %3120 = vmatprep.mubr.msk.f32.mxu1 %vm131_vm0, %v2481_v28  ;;  %v2512_v26 = vld [vmem:[%s5253_s0 + $0x448] sm:$0xff]  ;;  %v63_v27 = vld [vmem:[%s5253_s0 + $0x130] sm:$0xff] }
  0x22   :  { %v2513_v28 = vld [vmem:[%s5253_s0 + $0x450] sm:$0xff] }
  0x24   :  { %2951 = vmatmul.mubr.msk.f32.gmra.mrb[6].mxu0 %vm131_vm0, %v32_v29  ;;  %3121 = vmatmul.mubr.msk.f32.gmra.mrb[6].mxu1 %vm131_vm0, %v2482_v30  ;;  %v64_v29 = vld [vmem:[%s5253_s0 + $0x138] sm:$0xff] }
  0x25   :  { %2953 = vmatprep.mubr.msk.f32.mxu0 %vm131_vm0, %v33_v31  ;;  %3123 = vmatprep.mubr.msk.f32.mxu1 %vm131_vm0, %v2483_v32  ;;  %v2514_v30 = vld [vmem:[%s5253_s0 + $0x458] sm:$0xff]  ;;  %v65_v31 = vld [vmem:[%s5253_s0 + $0x140] sm:$0xff] }
  0x26   :  { %v2515_v32 = vld [vmem:[%s5253_s0 + $0x460] sm:$0xff] }
  0x28   :  { %2954 = vmatmul.mubr.msk.f32.gmra.mrb[8].mxu0 %vm131_vm0, %v34_v33  ;;  %3124 = vmatmul.mubr.msk.f32.gmra.mrb[8].mxu1 %vm131_vm0, %v2484_v34  ;;  %v66_v33 = vld [vmem:[%s5253_s0 + $0x148] sm:$0xff] }
  0x29   :  { %2956 = vmatprep.mubr.msk.f32.mxu0 %vm131_vm0, %v35_v35  ;;  %3126 = vmatprep.mubr.msk.f32.mxu1 %vm131_vm0, %v2485_v36  ;;  %v2516_v34 = vld [vmem:[%s5253_s0 + $0x468] sm:$0xff]  ;;  %v67_v35 = vld [vmem:[%s5253_s0 + $0x150] sm:$0xff] }
  0x2a   :  { %v2517_v36 = vld [vmem:[%s5253_s0 + $0x470] sm:$0xff] }
  0x2c   :  { %2957 = vmatmul.mubr.msk.f32.gmra.mrb[10].mxu0 %vm131_vm0, %v36_v37  ;;  %3127 = vmatmul.mubr.msk.f32.gmra.mrb[10].mxu1 %vm131_vm0, %v2486_v38  ;;  %v68_v37 = vld [vmem:[%s5253_s0 + $0x158] sm:$0xff] }
  0x2d   :  { %2959 = vmatprep.mubr.msk.f32.mxu0 %vm131_vm0, %v37_v39  ;;  %3129 = vmatprep.mubr.msk.f32.mxu1 %vm131_vm0, %v2487_v40  ;;  %v2518_v38 = vld [vmem:[%s5253_s0 + $0x478] sm:$0xff]  ;;  %v69_v39 = vld [vmem:[%s5253_s0 + $0x160] sm:$0xff] }
  0x2e   :  { %v2519_v40 = vld [vmem:[%s5253_s0 + $0x480] sm:$0xff] }
  0x30   :  { %2960 = vmatmul.mubr.msk.f32.gmra.mrb[12].mxu0 %vm131_vm0, %v38_v41  ;;  %3130 = vmatmul.mubr.msk.f32.gmra.mrb[12].mxu1 %vm131_vm0, %v2488_v42  ;;  %v70_v41 = vld [vmem:[%s5253_s0 + $0x168] sm:$0xff] }
  0x31   :  { %2962 = vmatprep.mubr.msk.f32.mxu0 %vm131_vm0, %v39_v43  ;;  %3132 = vmatprep.mubr.msk.f32.mxu1 %vm131_vm0, %v2489_v44  ;;  %v2520_v42 = vld [vmem:[%s5253_s0 + $0x488] sm:$0xff]  ;;  %v71_v43 = vld [vmem:[%s5253_s0 + $0x170] sm:$0xff] }
  0x32   :  { %v2521_v44 = vld [vmem:[%s5253_s0 + $0x490] sm:$0xff] }
  0x34   :  { %2963 = vmatmul.mubr.msk.f32.gmra.mrb[14].mxu0 %vm131_vm0, %v40_v45  ;;  %3133 = vmatmul.mubr.msk.f32.gmra.mrb[14].mxu1 %vm131_vm0, %v2490_v46  ;;  %v72_v45 = vld [vmem:[%s5253_s0 + $0x178] sm:$0xff] }
  0x35   :  { %2965 = vmatprep.mubr.msk.f32.mxu0 %vm131_vm0, %v41_v47  ;;  %3135 = vmatprep.mubr.msk.f32.mxu1 %vm131_vm0, %v2491_v48  ;;  %v2522_v46 = vld [vmem:[%s5253_s0 + $0x498] sm:$0xff]  ;;  %v73_v47 = vld [vmem:[%s5253_s0 + $0x180] sm:$0xff] }
  0x36   :  { %v2523_v48 = vld [vmem:[%s5253_s0 + $0x4a0] sm:$0xff] }
  0x38   :  { %2966 = vmatmul.mubr.msk.f32.gmra.mrb[16].mxu0 %vm131_vm0, %v42_v49  ;;  %3136 = vmatmul.mubr.msk.f32.gmra.mrb[16].mxu1 %vm131_vm0, %v2492_v50  ;;  %v74_v49 = vld [vmem:[%s5253_s0 + $0x188] sm:$0xff] }
  0x39   :  { %2968 = vmatprep.mubr.msk.f32.mxu0 %vm131_vm0, %v43_v51  ;;  %3138 = vmatprep.mubr.msk.f32.mxu1 %vm131_vm0, %v2493_v52  ;;  %v2524_v50 = vld [vmem:[%s5253_s0 + $0x4a8] sm:$0xff]  ;;  %v75_v51 = vld [vmem:[%s5253_s0 + $0x190] sm:$0xff] }
  0x3a   :  { %v2525_v52 = vld [vmem:[%s5253_s0 + $0x4b0] sm:$0xff] }
  0x3c   :  { %2969 = vmatmul.mubr.msk.f32.gmra.mrb[18].mxu0 %vm131_vm0, %v44_v53  ;;  %3139 = vmatmul.mubr.msk.f32.gmra.mrb[18].mxu1 %vm131_vm0, %v2494_v54  ;;  %v76_v53 = vld [vmem:[%s5253_s0 + $0x198] sm:$0xff] }
  0x3d   :  { %2971 = vmatprep.mubr.msk.f32.mxu0 %vm131_vm0, %v45_v55  ;;  %3141 = vmatprep.mubr.msk.f32.mxu1 %vm131_vm0, %v2495_v56  ;;  %v2526_v54 = vld [vmem:[%s5253_s0 + $0x4b8] sm:$0xff]  ;;  %v77_v55 = vld [vmem:[%s5253_s0 + $0x1a0] sm:$0xff] }
  0x3e   :  { %v2527_v56 = vld [vmem:[%s5253_s0 + $0x4c0] sm:$0xff] }
  0x40   :  { %2972 = vmatmul.mubr.msk.f32.gmra.mrb[20].mxu0 %vm131_vm0, %v46_v57  ;;  %3142 = vmatmul.mubr.msk.f32.gmra.mrb[20].mxu1 %vm131_vm0, %v2496_v58  ;;  %v78_v57 = vld [vmem:[%s5253_s0 + $0x1a8] sm:$0xff] }
  0x41   :  { %2974 = vmatprep.mubr.msk.f32.mxu0 %vm131_vm0, %v47_v59  ;;  %3144 = vmatprep.mubr.msk.f32.mxu1 %vm131_vm0, %v2497_v60  ;;  %v2528_v58 = vld [vmem:[%s5253_s0 + $0x4c8] sm:$0xff]  ;;  %v79_v59 = vld [vmem:[%s5253_s0 + $0x1b0] sm:$0xff] }
  0x42   :  { %v2529_v60 = vld [vmem:[%s5253_s0 + $0x4d0] sm:$0xff] }
  0x44   :  { %2975 = vmatmul.mubr.msk.f32.gmra.mrb[22].mxu0 %vm131_vm0, %v48_v61  ;;  %3145 = vmatmul.mubr.msk.f32.gmra.mrb[22].mxu1 %vm131_vm0, %v2498_v62  ;;  %v80_v61 = vld [vmem:[%s5253_s0 + $0x1b8] sm:$0xff] }
  0x45   :  { %2977 = vmatprep.mubr.msk.f32.mxu0 %vm131_vm0, %v49_v63  ;;  %3147 = vmatprep.mubr.msk.f32.mxu1 %vm131_vm0, %v2499_v0  ;;  %v2530_v62 = vld [vmem:[%s5253_s0 + $0x4d8] sm:$0xff]  ;;  %v81_v63 = vld [vmem:[%s5253_s0 + $0x1c0] sm:$0xff] }
  0x46   :  { %v2531_v0 = vld [vmem:[%s5253_s0 + $0x4e0] sm:$0xff] }
  0x48   :  { %2978 = vmatmul.mubr.msk.f32.gmra.mrb[24].mxu0 %vm131_vm0, %v50_v1  ;;  %3148 = vmatmul.mubr.msk.f32.gmra.mrb[24].mxu1 %vm131_vm0, %v2500_v2  ;;  %v82_v1 = vld [vmem:[%s5253_s0 + $0x1c8] sm:$0xff] }
  0x49   :  { %2980 = vmatprep.mubr.msk.f32.mxu0 %vm131_vm0, %v51_v3  ;;  %3150 = vmatprep.mubr.msk.f32.mxu1 %vm131_vm0, %v2501_v4  ;;  %v2532_v2 = vld [vmem:[%s5253_s0 + $0x4e8] sm:$0xff]  ;;  %v83_v3 = vld [vmem:[%s5253_s0 + $0x1d0] sm:$0xff] }
  0x4a   :  { %v2533_v4 = vld [vmem:[%s5253_s0 + $0x4f0] sm:$0xff] }
  0x4c   :  { %2981 = vmatmul.mubr.msk.f32.gmra.mrb[26].mxu0 %vm131_vm0, %v52_v5  ;;  %3151 = vmatmul.mubr.msk.f32.gmra.mrb[26].mxu1 %vm131_vm0, %v2502_v6  ;;  %v84_v5 = vld [vmem:[%s5253_s0 + $0x1d8] sm:$0xff] }
  0x4d   :  { %2983 = vmatprep.mubr.msk.f32.mxu0 %vm131_vm0, %v53_v7  ;;  %3153 = vmatprep.mubr.msk.f32.mxu1 %vm131_vm0, %v2503_v8  ;;  %v2534_v6 = vld [vmem:[%s5253_s0 + $0x4f8] sm:$0xff]  ;;  %v85_v7 = vld [vmem:[%s5253_s0 + $0x1e0] sm:$0xff] }
  0x4e   :  { %v2535_v8 = vld [vmem:[%s5253_s0 + $0x500] sm:$0xff] }
  0x50   :  { %2984 = vmatmul.mubr.msk.f32.gmra.mrb[28].mxu0 %vm131_vm0, %v54_v9  ;;  %3154 = vmatmul.mubr.msk.f32.gmra.mrb[28].mxu1 %vm131_vm0, %v2504_v10  ;;  %v86_v9 = vld [vmem:[%s5253_s0 + $0x1e8] sm:$0xff] }
  0x51   :  { %2986 = vmatprep.mubr.msk.f32.mxu0 %vm131_vm0, %v55_v11  ;;  %3156 = vmatprep.mubr.msk.f32.mxu1 %vm131_vm0, %v2505_v12  ;;  %v2536_v10 = vld [vmem:[%s5253_s0 + $0x508] sm:$0xff]  ;;  %v87_v11 = vld [vmem:[%s5253_s0 + $0x1f0] sm:$0xff] }
  0x52   :  { %v2537_v12 = vld [vmem:[%s5253_s0 + $0x510] sm:$0xff] }
  0x54   :  { %2987 = vmatmul.mubr.msk.f32.gmra.mrb[30].mxu0 %vm131_vm0, %v56_v13  ;;  %3157 = vmatmul.mubr.msk.f32.gmra.mrb[30].mxu1 %vm131_vm0, %v2506_v14  ;;  %v88_v13 = vld [vmem:[%s5253_s0 + $0x1f8] sm:$0xff] }
  0x55   :  { %2989 = vmatprep.mubr.msk.f32.mxu0 %vm131_vm0, %v57_v15  ;;  %3159 = vmatprep.mubr.msk.f32.mxu1 %vm131_vm0, %v2507_v16  ;;  %v2538_v14 = vld [vmem:[%s5253_s0 + $0x518] sm:$0xff]  ;;  %v89_v15 = vld [vmem:[%s5253_s0 + $0x200] sm:$0xff] }
  0x56   :  { %v2539_v16 = vld [vmem:[%s5253_s0 + $0x520] sm:$0xff] }
  0x58   :  { %2990 = vmatmul.mubr.msk.f32.gmra.mrb[32].mxu0 %vm131_vm0, %v58_v17  ;;  %3160 = vmatmul.mubr.msk.f32.gmra.mrb[32].mxu1 %vm131_vm0, %v2508_v18  ;;  %v90_v17 = vld [vmem:[%s5253_s0 + $0x208] sm:$0xff] }
  0x59   :  { %2992 = vmatprep.mubr.msk.f32.mxu0 %vm131_vm0, %v59_v19  ;;  %3162 = vmatprep.mubr.msk.f32.mxu1 %vm131_vm0, %v2509_v20  ;;  %v2540_v18 = vld [vmem:[%s5253_s0 + $0x528] sm:$0xff]  ;;  %v91_v19 = vld [vmem:[%s5253_s0 + $0x210] sm:$0xff] }
  0x5a   :  { %v2541_v20 = vld [vmem:[%s5253_s0 + $0x530] sm:$0xff] }
  0x5c   :  { %2993 = vmatmul.mubr.msk.f32.gmra.mrb[34].mxu0 %vm131_vm0, %v60_v21  ;;  %3163 = vmatmul.mubr.msk.f32.gmra.mrb[34].mxu1 %vm131_vm0, %v2510_v22  ;;  %v92_v21 = vld [vmem:[%s5253_s0 + $0x218] sm:$0xff] }
  0x5d   :  { %2995 = vmatprep.mubr.msk.f32.mxu0 %vm131_vm0, %v61_v23  ;;  %3165 = vmatprep.mubr.msk.f32.mxu1 %vm131_vm0, %v2511_v24  ;;  %v2542_v22 = vld [vmem:[%s5253_s0 + $0x538] sm:$0xff]  ;;  %v93_v23 = vld [vmem:[%s5253_s0 + $0x220] sm:$0xff] }
  0x5e   :  { %v2543_v24 = vld [vmem:[%s5253_s0 + $0x540] sm:$0xff] }
  0x60   :  { %2996 = vmatmul.mubr.msk.f32.gmra.mrb[36].mxu0 %vm131_vm0, %v62_v25  ;;  %3166 = vmatmul.mubr.msk.f32.gmra.mrb[36].mxu1 %vm131_vm0, %v2512_v26  ;;  %v94_v25 = vld [vmem:[%s5253_s0 + $0x228] sm:$0xff] }
  0x61   :  { %2998 = vmatprep.mubr.msk.f32.mxu0 %vm131_vm0, %v63_v27  ;;  %3168 = vmatprep.mubr.msk.f32.mxu1 %vm131_vm0, %v2513_v28  ;;  %v2544_v26 = vld [vmem:[%s5253_s0 + $0x548] sm:$0xff]  ;;  %v95_v27 = vld [vmem:[%s5253_s0 + $0x230] sm:$0xff] }
  0x62   :  { %v2545_v28 = vld [vmem:[%s5253_s0 + $0x550] sm:$0xff] }
  0x64   :  { %2999 = vmatmul.mubr.msk.f32.gmra.mrb[38].mxu0 %vm131_vm0, %v64_v29  ;;  %3169 = vmatmul.mubr.msk.f32.gmra.mrb[38].mxu1 %vm131_vm0, %v2514_v30  ;;  %v96_v29 = vld [vmem:[%s5253_s0 + $0x238] sm:$0xff] }
  0x65   :  { %3001 = vmatprep.mubr.msk.f32.mxu0 %vm131_vm0, %v65_v31  ;;  %3171 = vmatprep.mubr.msk.f32.mxu1 %vm131_vm0, %v2515_v32  ;;  %v2546_v30 = vld [vmem:[%s5253_s0 + $0x558] sm:$0xff]  ;;  %v97_v31 = vld [vmem:[%s5253_s0 + $0x240] sm:$0xff] }
  0x66   :  { %v2547_v32 = vld [vmem:[%s5253_s0 + $0x560] sm:$0xff] }
  0x68   :  { %3002 = vmatmul.mubr.msk.f32.gmra.mrb[40].mxu0 %vm131_vm0, %v66_v33  ;;  %3172 = vmatmul.mubr.msk.f32.gmra.mrb[40].mxu1 %vm131_vm0, %v2516_v34  ;;  %v98_v33 = vld [vmem:[%s5253_s0 + $0x248] sm:$0xff] }
  0x69   :  { %3004 = vmatprep.mubr.msk.f32.mxu0 %vm131_vm0, %v67_v35  ;;  %3174 = vmatprep.mubr.msk.f32.mxu1 %vm131_vm0, %v2517_v36  ;;  %v2548_v34 = vld [vmem:[%s5253_s0 + $0x568] sm:$0xff]  ;;  %v99_v35 = vld [vmem:[%s5253_s0 + $0x250] sm:$0xff] }
  0x6a   :  { %v2549_v36 = vld [vmem:[%s5253_s0 + $0x570] sm:$0xff] }
  0x6c   :  { %3005 = vmatmul.mubr.msk.f32.gmra.mrb[42].mxu0 %vm131_vm0, %v68_v37  ;;  %3175 = vmatmul.mubr.msk.f32.gmra.mrb[42].mxu1 %vm131_vm0, %v2518_v38  ;;  %v100_v37 = vld [vmem:[%s5253_s0 + $0x258] sm:$0xff] }
  0x6d   :  { %3007 = vmatprep.mubr.msk.f32.mxu0 %vm131_vm0, %v69_v39  ;;  %3177 = vmatprep.mubr.msk.f32.mxu1 %vm131_vm0, %v2519_v40  ;;  %v2550_v38 = vld [vmem:[%s5253_s0 + $0x578] sm:$0xff]  ;;  %v101_v39 = vld [vmem:[%s5253_s0 + $0x260] sm:$0xff] }
  0x6e   :  { %v2551_v40 = vld [vmem:[%s5253_s0 + $0x580] sm:$0xff] }
  0x70   :  { %3008 = vmatmul.mubr.msk.f32.gmra.mrb[44].mxu0 %vm131_vm0, %v70_v41  ;;  %3178 = vmatmul.mubr.msk.f32.gmra.mrb[44].mxu1 %vm131_vm0, %v2520_v42  ;;  %v102_v41 = vld [vmem:[%s5253_s0 + $0x268] sm:$0xff] }
  0x71   :  { %3010 = vmatprep.mubr.msk.f32.mxu0 %vm131_vm0, %v71_v43  ;;  %3180 = vmatprep.mubr.msk.f32.mxu1 %vm131_vm0, %v2521_v44  ;;  %v2552_v42 = vld [vmem:[%s5253_s0 + $0x588] sm:$0xff]  ;;  %v103_v43 = vld [vmem:[%s5253_s0 + $0x270] sm:$0xff] }
  0x72   :  { %v2553_v44 = vld [vmem:[%s5253_s0 + $0x590] sm:$0xff] }
  0x74   :  { %3011 = vmatmul.mubr.msk.f32.gmra.mrb[46].mxu0 %vm131_vm0, %v72_v45  ;;  %3181 = vmatmul.mubr.msk.f32.gmra.mrb[46].mxu1 %vm131_vm0, %v2522_v46  ;;  %v104_v45 = vld [vmem:[%s5253_s0 + $0x278] sm:$0xff] }
  0x75   :  { %3013 = vmatprep.mubr.msk.f32.mxu0 %vm131_vm0, %v73_v47  ;;  %3183 = vmatprep.mubr.msk.f32.mxu1 %vm131_vm0, %v2523_v48  ;;  %v2554_v46 = vld [vmem:[%s5253_s0 + $0x598] sm:$0xff]  ;;  %v105_v47 = vld [vmem:[%s5253_s0 + $0x280] sm:$0xff] }
  0x76   :  { %v2555_v48 = vld [vmem:[%s5253_s0 + $0x5a0] sm:$0xff] }
  0x78   :  { %3014 = vmatmul.mubr.msk.f32.gmra.mrb[48].mxu0 %vm131_vm0, %v74_v49  ;;  %3184 = vmatmul.mubr.msk.f32.gmra.mrb[48].mxu1 %vm131_vm0, %v2524_v50  ;;  %v106_v49 = vld [vmem:[%s5253_s0 + $0x288] sm:$0xff] }
  0x79   :  { %3016 = vmatprep.mubr.msk.f32.mxu0 %vm131_vm0, %v75_v51  ;;  %3186 = vmatprep.mubr.msk.f32.mxu1 %vm131_vm0, %v2525_v52  ;;  %v2556_v50 = vld [vmem:[%s5253_s0 + $0x5a8] sm:$0xff]  ;;  %v107_v51 = vld [vmem:[%s5253_s0 + $0x290] sm:$0xff] }
  0x7a   :  { %v2557_v52 = vld [vmem:[%s5253_s0 + $0x5b0] sm:$0xff] }
  0x7c   :  { %3017 = vmatmul.mubr.msk.f32.gmra.mrb[50].mxu0 %vm131_vm0, %v76_v53  ;;  %3187 = vmatmul.mubr.msk.f32.gmra.mrb[50].mxu1 %vm131_vm0, %v2526_v54  ;;  %v108_v53 = vld [vmem:[%s5253_s0 + $0x298] sm:$0xff] }
  0x7d   :  { %3019 = vmatprep.mubr.msk.f32.mxu0 %vm131_vm0, %v77_v55  ;;  %3189 = vmatprep.mubr.msk.f32.mxu1 %vm131_vm0, %v2527_v56  ;;  %v2558_v54 = vld [vmem:[%s5253_s0 + $0x5b8] sm:$0xff]  ;;  %v109_v55 = vld [vmem:[%s5253_s0 + $0x2a0] sm:$0xff] }
  0x7e   :  { %v2559_v56 = vld [vmem:[%s5253_s0 + $0x5c0] sm:$0xff] }
  0x80   :  { %3020 = vmatmul.mubr.msk.f32.gmra.mrb[52].mxu0 %vm131_vm0, %v78_v57  ;;  %3190 = vmatmul.mubr.msk.f32.gmra.mrb[52].mxu1 %vm131_vm0, %v2528_v58  ;;  %v110_v57 = vld [vmem:[%s5253_s0 + $0x2a8] sm:$0xff] }
  0x81   :  { %3022 = vmatprep.mubr.msk.f32.mxu0 %vm131_vm0, %v79_v59  ;;  %3192 = vmatprep.mubr.msk.f32.mxu1 %vm131_vm0, %v2529_v60  ;;  %v2560_v58 = vld [vmem:[%s5253_s0 + $0x5c8] sm:$0xff]  ;;  %v111_v59 = vld [vmem:[%s5253_s0 + $0x2b0] sm:$0xff] }
  0x82   :  { %v2561_v60 = vld [vmem:[%s5253_s0 + $0x5d0] sm:$0xff] }
  0x84   :  { %3023 = vmatmul.mubr.msk.f32.gmra.mrb[54].mxu0 %vm131_vm0, %v80_v61  ;;  %3193 = vmatmul.mubr.msk.f32.gmra.mrb[54].mxu1 %vm131_vm0, %v2530_v62  ;;  %v112_v61 = vld [vmem:[%s5253_s0 + $0x2b8] sm:$0xff] }
  0x85   :  { %3025 = vmatprep.mubr.msk.f32.mxu0 %vm131_vm0, %v81_v63  ;;  %3195 = vmatprep.mubr.msk.f32.mxu1 %vm131_vm0, %v2531_v0  ;;  %v2562_v62 = vld [vmem:[%s5253_s0 + $0x5d8] sm:$0xff]  ;;  %v113_v63 = vld [vmem:[%s5253_s0 + $0x2c0] sm:$0xff] }
  0x86   :  { %v2563_v0 = vld [vmem:[%s5253_s0 + $0x5e0] sm:$0xff] }
  0x88   :  { %3026 = vmatmul.mubr.msk.f32.gmra.mrb[56].mxu0 %vm131_vm0, %v82_v1  ;;  %3196 = vmatmul.mubr.msk.f32.gmra.mrb[56].mxu1 %vm131_vm0, %v2532_v2  ;;  %v114_v1 = vld [vmem:[%s5253_s0 + $0x2c8] sm:$0xff] }
  0x89   :  { %3028 = vmatprep.mubr.msk.f32.mxu0 %vm131_vm0, %v83_v3  ;;  %3198 = vmatprep.mubr.msk.f32.mxu1 %vm131_vm0, %v2533_v4  ;;  %v2564_v2 = vld [vmem:[%s5253_s0 + $0x5e8] sm:$0xff]  ;;  %v115_v3 = vld [vmem:[%s5253_s0 + $0x2d0] sm:$0xff] }
  0x8a   :  { %v2565_v4 = vld [vmem:[%s5253_s0 + $0x5f0] sm:$0xff] }
  0x8c   :  { %3029 = vmatmul.mubr.msk.f32.gmra.mrb[58].mxu0 %vm131_vm0, %v84_v5  ;;  %3199 = vmatmul.mubr.msk.f32.gmra.mrb[58].mxu1 %vm131_vm0, %v2534_v6  ;;  %v116_v5 = vld [vmem:[%s5253_s0 + $0x2d8] sm:$0xff] }
  0x8d   :  { %3031 = vmatprep.mubr.msk.f32.mxu0 %vm131_vm0, %v85_v7  ;;  %3201 = vmatprep.mubr.msk.f32.mxu1 %vm131_vm0, %v2535_v8  ;;  %v2566_v6 = vld [vmem:[%s5253_s0 + $0x5f8] sm:$0xff]  ;;  %v117_v7 = vld [vmem:[%s5253_s0 + $0x2e0] sm:$0xff] }
  0x8e   :  { %v2567_v8 = vld [vmem:[%s5253_s0 + $0x600] sm:$0xff] }
  0x90   :  { %3032 = vmatmul.mubr.msk.f32.gmra.mrb[60].mxu0 %vm131_vm0, %v86_v9  ;;  %3202 = vmatmul.mubr.msk.f32.gmra.mrb[60].mxu1 %vm131_vm0, %v2536_v10  ;;  %v118_v9 = vld [vmem:[%s5253_s0 + $0x2e8] sm:$0xff] }
  0x91   :  { %3034 = vmatprep.mubr.msk.f32.mxu0 %vm131_vm0, %v87_v11  ;;  %3204 = vmatprep.mubr.msk.f32.mxu1 %vm131_vm0, %v2537_v12  ;;  %v2568_v10 = vld [vmem:[%s5253_s0 + $0x608] sm:$0xff]  ;;  %v119_v11 = vld [vmem:[%s5253_s0 + $0x2f0] sm:$0xff] }
  0x92   :  { %v2569_v12 = vld [vmem:[%s5253_s0 + $0x610] sm:$0xff] }
  0x94   :  { %3035 = vmatmul.mubr.msk.f32.gmra.mrb[62].mxu0 %vm131_vm0, %v88_v13  ;;  %3205 = vmatmul.mubr.msk.f32.gmra.mrb[62].mxu1 %vm131_vm0, %v2538_v14  ;;  %v120_v13 = vld [vmem:[%s5253_s0 + $0x2f8] sm:$0xff] }
  0x95   :  { %3037 = vmatprep.mubr.msk.f32.mxu0 %vm131_vm0, %v89_v15  ;;  %3207 = vmatprep.mubr.msk.f32.mxu1 %vm131_vm0, %v2539_v16  ;;  %v2570_v14 = vld [vmem:[%s5253_s0 + $0x618] sm:$0xff]  ;;  %v121_v15 = vld [vmem:[%s5253_s0 + $0x300] sm:$0xff] }
  0x96   :  { %v2571_v16 = vld [vmem:[%s5253_s0 + $0x620] sm:$0xff] }
  0x98   :  { %3038 = vmatmul.mubr.msk.f32.gmra.mrb[64].mxu0 %vm131_vm0, %v90_v17  ;;  %3208 = vmatmul.mubr.msk.f32.gmra.mrb[64].mxu1 %vm131_vm0, %v2540_v18  ;;  %v122_v17 = vld [vmem:[%s5253_s0 + $0x308] sm:$0xff] }
  0x99   :  { %3040 = vmatprep.mubr.msk.f32.mxu0 %vm131_vm0, %v91_v19  ;;  %3210 = vmatprep.mubr.msk.f32.mxu1 %vm131_vm0, %v2541_v20  ;;  %v2572_v18 = vld [vmem:[%s5253_s0 + $0x628] sm:$0xff]  ;;  %v123_v19 = vld [vmem:[%s5253_s0 + $0x310] sm:$0xff] }
  0x9a   :  { %v2573_v20 = vld [vmem:[%s5253_s0 + $0x630] sm:$0xff] }
  0x9c   :  { %3041 = vmatmul.mubr.msk.f32.gmra.mrb[66].mxu0 %vm131_vm0, %v92_v21  ;;  %3211 = vmatmul.mubr.msk.f32.gmra.mrb[66].mxu1 %vm131_vm0, %v2542_v22  ;;  %v124_v21 = vld [vmem:[%s5253_s0 + $0x318] sm:$0xff] }
  0x9d   :  { %3043 = vmatprep.mubr.msk.f32.mxu0 %vm131_vm0, %v93_v23  ;;  %3213 = vmatprep.mubr.msk.f32.mxu1 %vm131_vm0, %v2543_v24  ;;  %v2574_v22 = vld [vmem:[%s5253_s0 + $0x638] sm:$0xff] }
  0xa0   :  { %3044 = vmatmul.mubr.msk.f32.gmra.mrb[68].mxu0 %vm131_vm0, %v94_v25  ;;  %3214 = vmatmul.mubr.msk.f32.gmra.mrb[68].mxu1 %vm131_vm0, %v2544_v26 }
  0xa1   :  { %3046 = vmatprep.mubr.msk.f32.mxu0 %vm131_vm0, %v95_v27  ;;  %3216 = vmatprep.mubr.msk.f32.mxu1 %vm131_vm0, %v2545_v28 }
  0xa4   :  { %3047 = vmatmul.mubr.msk.f32.gmra.mrb[70].mxu0 %vm131_vm0, %v96_v29  ;;  %3217 = vmatmul.mubr.msk.f32.gmra.mrb[70].mxu1 %vm131_vm0, %v2546_v30 }
  0xa5   :  { %3049 = vmatprep.mubr.msk.f32.mxu0 %vm131_vm0, %v97_v31  ;;  %3219 = vmatprep.mubr.msk.f32.mxu1 %vm131_vm0, %v2547_v32 }
  0xa8   :  { %3050 = vmatmul.mubr.msk.f32.gmra.mrb[72].mxu0 %vm131_vm0, %v98_v33  ;;  %3220 = vmatmul.mubr.msk.f32.gmra.mrb[72].mxu1 %vm131_vm0, %v2548_v34 }
  0xa9   :  { %3052 = vmatprep.mubr.msk.f32.mxu0 %vm131_vm0, %v99_v35  ;;  %3222 = vmatprep.mubr.msk.f32.mxu1 %vm131_vm0, %v2549_v36 }
  0xac   :  { %3053 = vmatmul.mubr.msk.f32.gmra.mrb[74].mxu0 %vm131_vm0, %v100_v37  ;;  %3223 = vmatmul.mubr.msk.f32.gmra.mrb[74].mxu1 %vm131_vm0, %v2550_v38 }
  0xad   :  { %3055 = vmatprep.mubr.msk.f32.mxu0 %vm131_vm0, %v101_v39  ;;  %3225 = vmatprep.mubr.msk.f32.mxu1 %vm131_vm0, %v2551_v40 }
  0xb0   :  { %3056 = vmatmul.mubr.msk.f32.gmra.mrb[76].mxu0 %vm131_vm0, %v102_v41  ;;  %3226 = vmatmul.mubr.msk.f32.gmra.mrb[76].mxu1 %vm131_vm0, %v2552_v42 }
  0xb1   :  { %3058 = vmatprep.mubr.msk.f32.mxu0 %vm131_vm0, %v103_v43  ;;  %3228 = vmatprep.mubr.msk.f32.mxu1 %vm131_vm0, %v2553_v44 }
  0xb4   :  { %3059 = vmatmul.mubr.msk.f32.gmra.mrb[78].mxu0 %vm131_vm0, %v104_v45  ;;  %3229 = vmatmul.mubr.msk.f32.gmra.mrb[78].mxu1 %vm131_vm0, %v2554_v46 }
  0xb5   :  { %3061 = vmatprep.mubr.msk.f32.mxu0 %vm131_vm0, %v105_v47  ;;  %3231 = vmatprep.mubr.msk.f32.mxu1 %vm131_vm0, %v2555_v48 }
  0xb8   :  { %3062 = vmatmul.mubr.msk.f32.gmra.mrb[80].mxu0 %vm131_vm0, %v106_v49  ;;  %3232 = vmatmul.mubr.msk.f32.gmra.mrb[80].mxu1 %vm131_vm0, %v2556_v50 }
  0xb9   :  { %3064 = vmatprep.mubr.msk.f32.mxu0 %vm131_vm0, %v107_v51  ;;  %3234 = vmatprep.mubr.msk.f32.mxu1 %vm131_vm0, %v2557_v52 }
  0xbc   :  { %3065 = vmatmul.mubr.msk.f32.gmra.mrb[82].mxu0 %vm131_vm0, %v108_v53  ;;  %3235 = vmatmul.mubr.msk.f32.gmra.mrb[82].mxu1 %vm131_vm0, %v2558_v54 }
  0xbd   :  { %3067 = vmatprep.mubr.msk.f32.mxu0 %vm131_vm0, %v109_v55  ;;  %3237 = vmatprep.mubr.msk.f32.mxu1 %vm131_vm0, %v2559_v56 }
  0xc0   :  { %3068 = vmatmul.mubr.msk.f32.gmra.mrb[84].mxu0 %vm131_vm0, %v110_v57  ;;  %3238 = vmatmul.mubr.msk.f32.gmra.mrb[84].mxu1 %vm131_vm0, %v2560_v58 }
  0xc1   :  { %3070 = vmatprep.mubr.msk.f32.mxu0 %vm131_vm0, %v111_v59  ;;  %3240 = vmatprep.mubr.msk.f32.mxu1 %vm131_vm0, %v2561_v60  ;;  %v4193_v59 = vld [vmem:[%s5254_s2] ss:$0 sm:$0xff] }
  0xc4   :  { %3071 = vmatmul.mubr.msk.f32.gmra.mrb[86].mxu0 %vm131_vm0, %v112_v61  ;;  %3241 = vmatmul.mubr.msk.f32.gmra.mrb[86].mxu1 %vm131_vm0, %v2562_v62 }
  0xc5   :  { %3073 = vmatprep.mubr.msk.f32.mxu0 %vm131_vm0, %v113_v63  ;;  %3243 = vmatprep.mubr.msk.f32.mxu1 %vm131_vm0, %v2563_v0 }
  0xc8   :  { %3074 = vmatmul.mubr.msk.f32.gmra.mrb[88].mxu0 %vm131_vm0, %v114_v1  ;;  %3244 = vmatmul.mubr.msk.f32.gmra.mrb[88].mxu1 %vm131_vm0, %v2564_v2 }
  0xc9   :  { %3076 = vmatprep.mubr.msk.f32.mxu0 %vm131_vm0, %v115_v3  ;;  %3246 = vmatprep.mubr.msk.f32.mxu1 %vm131_vm0, %v2565_v4 }
  0xcc   :  { %3077 = vmatmul.mubr.msk.f32.gmra.mrb[90].mxu0 %vm131_vm0, %v116_v5  ;;  %3247 = vmatmul.mubr.msk.f32.gmra.mrb[90].mxu1 %vm131_vm0, %v2566_v6 }
  0xcd   :  { %3079 = vmatprep.mubr.msk.f32.mxu0 %vm131_vm0, %v117_v7  ;;  %3249 = vmatprep.mubr.msk.f32.mxu1 %vm131_vm0, %v2567_v8 }
  0xd0   :  { %3080 = vmatmul.mubr.msk.f32.gmra.mrb[92].mxu0 %vm131_vm0, %v118_v9  ;;  %3250 = vmatmul.mubr.msk.f32.gmra.mrb[92].mxu1 %vm131_vm0, %v2568_v10 }
  0xd1   :  { %3082 = vmatprep.mubr.msk.f32.mxu0 %vm131_vm0, %v119_v11  ;;  %3252 = vmatprep.mubr.msk.f32.mxu1 %vm131_vm0, %v2569_v12 }
  0xd4   :  { %3083 = vmatmul.mubr.msk.f32.gmra.mrb[94].mxu0 %vm131_vm0, %v120_v13  ;;  %3253 = vmatmul.mubr.msk.f32.gmra.mrb[94].mxu1 %vm131_vm0, %v2570_v14 }
  0xd5   :  { %3085 = vmatprep.mubr.msk.f32.mxu0 %vm131_vm0, %v121_v15  ;;  %3255 = vmatprep.mubr.msk.f32.mxu1 %vm131_vm0, %v2571_v16 }
  0xd8   :  { %3086 = vmatmul.mubr.msk.f32.gmra.mrb[96].mxu0 %vm131_vm0, %v122_v17  ;;  %3256 = vmatmul.mubr.msk.f32.gmra.mrb[96].mxu1 %vm131_vm0, %v2572_v18 }
  0xd9   :  { %3088 = vmatprep.mubr.msk.f32.mxu0 %vm131_vm0, %v123_v19  ;;  %3258 = vmatprep.mubr.msk.f32.mxu1 %vm131_vm0, %v2573_v20 }
  0xdc   :  { %3089 = vmatmul.mubr.msk.f32.gmra.mrb[98].mxu0 %vm131_vm0, %v124_v21  ;;  %3259 = vmatmul.mubr.msk.f32.gmra.mrb[98].mxu1 %vm131_vm0, %v2574_v22 }
  0xeb   :  { %v2943_v23 = vpop.f32.mrb[0].mxu0  ;;  %v3113_v24 = vpop.f32.mrb[0].mxu1 }
  0xec   :  { %v502_v25 = vpop.f32.mrb[1].mxu0  ;;  %v1669_v26 = vpop.f32.mrb[1].mxu1  ;;  %v4200_v62 = vadd.f32 %v2943_v23, %v4193_v59  ;;  %v4203_v63 = vadd.f32 %v3113_v24, %v4193_v59 }
  0xed   :  { %v4210_v2 = vadd.f32 %v4193_v59, %v502_v25  ;;  %v4213_v3 = vadd.f32 %v4193_v59, %v1669_v26 }
  0xef   :  { %v2946_v27 = vpop.f32.mrb[2].mxu0  ;;  %v3116_v28 = vpop.f32.mrb[2].mxu1  ;;  %v1001_v14 = vmax.f32 %v4210_v2, 0.0  ;;  %v2168_v15 = vmax.f32 %v4213_v3, 0.0 }
  0xf0   :  { %v512_v29 = vpop.f32.mrb[3].mxu0  ;;  %v1679_v30 = vpop.f32.mrb[3].mxu1  ;;  %v4216_v4 = vadd.f32 %v2946_v27, %v4193_v59  ;;  %v4219_v5 = vadd.f32 %v3116_v28, %v4193_v59 }
  0xf1   :  { %v4228_v10 = vadd.f32 %v4193_v59, %v512_v29  ;;  %v4231_v11 = vadd.f32 %v4193_v59, %v1679_v30 }
  0xf3   :  { %v2949_v31 = vpop.f32.mrb[4].mxu0  ;;  %v3119_v32 = vpop.f32.mrb[4].mxu1  ;;  %v1003_v28 = vmax.f32 %v4228_v10, 0.0  ;;  %v2170_v29 = vmax.f32 %v4231_v11, 0.0 }
  0xf4   :  { %v522_v33 = vpop.f32.mrb[5].mxu0  ;;  %v1689_v34 = vpop.f32.mrb[5].mxu1  ;;  %v4240_v16 = vadd.f32 %v2949_v31, %v4193_v59  ;;  %v4243_v17 = vadd.f32 %v3119_v32, %v4193_v59 }
  0xf5   :  { %v4246_v18 = vadd.f32 %v4193_v59, %v522_v33  ;;  %v4249_v19 = vadd.f32 %v4193_v59, %v1689_v34 }
  0xf7   :  { %v2952_v35 = vpop.f32.mrb[6].mxu0  ;;  %v3122_v36 = vpop.f32.mrb[6].mxu1 }
  0xf8   :  { %v532_v37 = vpop.f32.mrb[7].mxu0  ;;  %v1699_v38 = vpop.f32.mrb[7].mxu1  ;;  %v4252_v20 = vadd.f32 %v2952_v35, %v4193_v59  ;;  %v4255_v21 = vadd.f32 %v3122_v36, %v4193_v59 }
  0xf9   :  { %v4260_v24 = vadd.f32 %v4193_v59, %v532_v37  ;;  %v4263_v25 = vadd.f32 %v4193_v59, %v1699_v38 }
  0xfb   :  { %v2955_v39 = vpop.f32.mrb[8].mxu0  ;;  %v3125_v40 = vpop.f32.mrb[8].mxu1 }
  0xfc   :  { %v542_v41 = vpop.f32.mrb[9].mxu0  ;;  %v1709_v42 = vpop.f32.mrb[9].mxu1  ;;  %v4272_v30 = vadd.f32 %v2955_v39, %v4193_v59  ;;  %v4275_v31 = vadd.f32 %v3125_v40, %v4193_v59 }
  0xfd   :  { %v4284_v36 = vadd.f32 %v4193_v59, %v542_v41  ;;  %v4287_v37 = vadd.f32 %v4193_v59, %v1709_v42 }
  0xff   :  { %v4158_v43 = vpop.f32.mrb[10].mxu0  ;;  %v4160_v44 = vpop.f32.mrb[10].mxu1 }
 0x100   :  { %v4162_v45 = vpop.f32.mrb[11].mxu0  ;;  %v4164_v46 = vpop.f32.mrb[11].mxu1  ;;  %v4297_v11 = vadd.f32 %v4158_v43, %v4193_v59  ;;  %v4301_v41 = vadd.f32 %v4160_v44, %v4193_v59 }
 0x101   :  { %v4315_v44 = vadd.f32 %v4193_v59, %v4162_v45  ;;  %v4319_v34 = vadd.f32 %v4193_v59, %v4164_v46 }
 0x103   :  { %v4166_v47 = vpop.f32.mrb[12].mxu0  ;;  %v4168_v48 = vpop.f32.mrb[12].mxu1 }
 0x104   :  { %v4170_v49 = vpop.f32.mrb[13].mxu0  ;;  %v4172_v50 = vpop.f32.mrb[13].mxu1 }
 0x105   :  { %v4333_v45 = vadd.f32 %v4193_v59, %v4170_v49  ;;  %v4337_v46 = vadd.f32 %v4193_v59, %v4172_v50 }
 0x107   :  { %v4174_v51 = vpop.f32.mrb[14].mxu0  ;;  %v4176_v52 = vpop.f32.mrb[14].mxu1 }
 0x108   :  { %v4178_v53 = vpop.f32.mrb[15].mxu0  ;;  %v4180_v54 = vpop.f32.mrb[15].mxu1 }
 0x10b   :  { %v4182_v55 = vpop.f32.mrb[16].mxu0  ;;  %v4184_v56 = vpop.f32.mrb[16].mxu1 }
 0x10c   :  { %v4186_v57 = vpop.f32.mrb[17].mxu0  ;;  %v4188_v58 = vpop.f32.mrb[17].mxu1 }
 0x10f   :  { %v4195_v60 = vpop.f32.mrb[18].mxu0  ;;  %v4197_v61 = vpop.f32.mrb[18].mxu1 }
 0x110   :  { %v4205_v0 = vpop.f32.mrb[19].mxu0  ;;  %v4207_v1 = vpop.f32.mrb[19].mxu1 }
 0x113   :  { %v4221_v6 = vpop.f32.mrb[20].mxu0  ;;  %v4223_v7 = vpop.f32.mrb[20].mxu1 }
 0x114   :  { %v4233_v12 = vpop.f32.mrb[21].mxu0  ;;  %v4235_v13 = vpop.f32.mrb[21].mxu1 }
 0x117   :  { %v4265_v26 = vpop.f32.mrb[22].mxu0  ;;  %v4267_v27 = vpop.f32.mrb[22].mxu1 }
 0x118   :  { %5277 = vst [vmem:[#allocation2_spill] sm:$0xff] %v4265_v26  ;;  %5278 = vst [vmem:[#allocation3_spill] sm:$0xff] %v4267_v27  ;;  %v4277_v32 = vpop.f32.mrb[23].mxu0  ;;  %v4279_v33 = vpop.f32.mrb[23].mxu1 }
 0x11b   :  { %v2979_v42 = vpop.f32.mrb[24].mxu0  ;;  %v3149_v35 = vpop.f32.mrb[24].mxu1 }
 0x11c   :  { %v628_v2 = vadd.f32 %v2979_v42, %v4193_v59  ;;  %v1795_v3 = vadd.f32 %v3149_v35, %v4193_v59  ;;  %v4307_v23 = vpop.f32.mrb[25].mxu0  ;;  %v4309_v10 = vpop.f32.mrb[25].mxu1  ;;  %v4323_v42 = vadd.f32 %v4166_v47, %v4193_v59  ;;  %v4327_v35 = vadd.f32 %v4168_v48, %v4193_v59 }
 0x11d   :  { %5279 = vst [vmem:[#allocation4_spill] sm:$0xff] %v4309_v10 }
 0x11e   :  { %v1026_v40 = vmax.f32 %v628_v2, 0.0  ;;  %v2193_v43 = vmax.f32 %v1795_v3, 0.0 }
 0x11f   :  { %v2982_v47 = vpop.f32.mrb[26].mxu0  ;;  %v3152_v38 = vpop.f32.mrb[26].mxu1 }
 0x120   :  { %v4339_v9 = vmax.f32 %v1001_v14, %v1026_v40  ;;  %v4341_v48 = vmax.f32 %v2168_v15, %v2193_v43  ;;  %v638_v2 = vadd.f32 %v2982_v47, %v4193_v59  ;;  %v1805_v3 = vadd.f32 %v3152_v38, %v4193_v59  ;;  %v632_v22 = vpop.f32.mrb[27].mxu0  ;;  %v1799_v39 = vpop.f32.mrb[27].mxu1 }
 0x121   :  { %v633_v27 = vadd.f32 %v4193_v59, %v632_v22  ;;  %v1800_v50 = vadd.f32 %v4193_v59, %v1799_v39  ;;  %v5283_v38 = vmax.f32 %v4203_v63, 0.0  ;;  %v4383_v63 = vadd.f32 %v4193_v59, %v4180_v54 }
 0x122   :  { %5280 = vst [vmem:[#allocation5_spill] sm:$0xff] %v4339_v9  ;;  %5281 = vst [vmem:[#allocation6_spill] sm:$0xff] %v4341_v48  ;;  %v1028_v15 = vmax.f32 %v638_v2, 0.0  ;;  %v2195_v40 = vmax.f32 %v1805_v3, 0.0  ;;  %v5282_v2 = vmax.f32 %v4200_v62, 0.0  ;;  %v5286_v54 = vmax.f32 %v4216_v4, 0.0 }
 0x123   :  { %v1027_v47 = vmax.f32 %v633_v27, 0.0  ;;  %v2194_v48 = vmax.f32 %v1800_v50, 0.0  ;;  %v2985_v9 = vpop.f32.mrb[28].mxu0  ;;  %v3155_v8 = vpop.f32.mrb[28].mxu1  ;;  %v5290_v4 = vmax.f32 %v4240_v16, 0.0 }
 0x124   :  { %v4353_v10 = vmax.f32 %v1003_v28, %v1028_v15  ;;  %v4355_v49 = vmax.f32 %v2170_v29, %v2195_v40  ;;  %v648_v22 = vadd.f32 %v2985_v9, %v4193_v59  ;;  %v1815_v39 = vadd.f32 %v3155_v8, %v4193_v59  ;;  %v642_v26 = vpop.f32.mrb[29].mxu0  ;;  %v1809_v14 = vpop.f32.mrb[29].mxu1 }
 0x125   :  { %v4361_v3 = vmax.f32 %v5282_v2, %v1027_v47  ;;  %v4365_v27 = vmax.f32 %v5283_v38, %v2194_v48  ;;  %v643_v50 = vadd.f32 %v4193_v59, %v642_v26  ;;  %v1810_v28 = vadd.f32 %v4193_v59, %v1809_v14 }
 0x126   :  { %v4371_v29 = vadd.f32 %v4174_v51, %v4193_v59  ;;  %v4375_v8 = vadd.f32 %v4176_v52, %v4193_v59  ;;  %v1030_v9 = vmax.f32 %v648_v22, 0.0  ;;  %v2197_v62 = vmax.f32 %v1815_v39, 0.0 }
 0x127   :  { %v4379_v15 = vadd.f32 %v4193_v59, %v4178_v53  ;;  %v1029_v26 = vmax.f32 %v643_v50, 0.0  ;;  %v2196_v48 = vmax.f32 %v1810_v28, 0.0  ;;  %v2988_v14 = vpop.f32.mrb[30].mxu0  ;;  %v3158_v40 = vpop.f32.mrb[30].mxu1  ;;  %v5284_v51 = vmax.f32 %v4246_v18, 0.0 }
 0x128   :  { %v5285_v52 = vmax.f32 %v4249_v19, 0.0  ;;  %v658_v22 = vadd.f32 %v2988_v14, %v4193_v59  ;;  %v1825_v53 = vadd.f32 %v3158_v40, %v4193_v59  ;;  %v652_v39 = vpop.f32.mrb[31].mxu0  ;;  %v1819_v2 = vpop.f32.mrb[31].mxu1  ;;  %v5287_v28 = vmax.f32 %v4219_v5, 0.0 }
 0x129   :  { %v4387_v38 = vmax.f32 %v5284_v51, %v1030_v9  ;;  %v4397_v50 = vmax.f32 %v5286_v54, %v1029_v26  ;;  %v653_v18 = vadd.f32 %v4193_v59, %v652_v39  ;;  %v1820_v19 = vadd.f32 %v4193_v59, %v1819_v2 }
 0x12a   :  { %v4391_v47 = vmax.f32 %v5285_v52, %v2197_v62  ;;  %v4401_v43 = vmax.f32 %v5287_v28, %v2196_v48  ;;  %v1032_v14 = vmax.f32 %v658_v22, 0.0  ;;  %v2199_v40 = vmax.f32 %v1825_v53, 0.0 }
 0x12b   :  { %v1031_v26 = vmax.f32 %v653_v18, 0.0  ;;  %v2198_v52 = vmax.f32 %v1820_v19, 0.0  ;;  %v2991_v54 = vpop.f32.mrb[32].mxu0  ;;  %v3161_v5 = vpop.f32.mrb[32].mxu1  ;;  %v5288_v48 = vmax.f32 %v4260_v24, 0.0  ;;  %v5289_v39 = vmax.f32 %v4263_v25, 0.0 }
 0x12c   :  { %v668_v62 = vadd.f32 %v2991_v54, %v4193_v59  ;;  %v1835_v22 = vadd.f32 %v3161_v5, %v4193_v59  ;;  %v662_v53 = vpop.f32.mrb[33].mxu0  ;;  %v1829_v9 = vpop.f32.mrb[33].mxu1  ;;  %v5291_v19 = vmax.f32 %v4243_v17, 0.0  ;;  %v4443_v17 = vadd.f32 %v4193_v59, %v4188_v58 }
 0x12d   :  { %v4411_v28 = vmax.f32 %v5288_v48, %v1032_v14  ;;  %v4415_v2 = vmax.f32 %v5289_v39, %v2199_v40  ;;  %v4421_v18 = vmax.f32 %v5290_v4, %v1031_v26  ;;  %v663_v24 = vadd.f32 %v4193_v59, %v662_v53 }
 0x12e   :  { %v4425_v51 = vmax.f32 %v5291_v19, %v2198_v52  ;;  %v1830_v25 = vadd.f32 %v4193_v59, %v1829_v9  ;;  %v4431_v14 = vadd.f32 %v4182_v55, %v4193_v59  ;;  %v4435_v40 = vadd.f32 %v4184_v56, %v4193_v59 }
 0x12f   :  { %v1034_v54 = vmax.f32 %v668_v62, 0.0  ;;  %v2201_v16 = vmax.f32 %v1835_v22, 0.0  ;;  %v4439_v4 = vadd.f32 %v4193_v59, %v4186_v57  ;;  %v1033_v26 = vmax.f32 %v663_v24, 0.0  ;;  %v2994_v52 = vpop.f32.mrb[34].mxu0  ;;  %v3164_v5 = vpop.f32.mrb[34].mxu1 }
 0x130   :  { %v2200_v9 = vmax.f32 %v1830_v25, 0.0  ;;  %v5292_v55 = vmax.f32 %v4284_v36, 0.0  ;;  %v5293_v56 = vmax.f32 %v4287_v37, 0.0  ;;  %v678_v39 = vadd.f32 %v2994_v52, %v4193_v59  ;;  %v672_v22 = vpop.f32.mrb[35].mxu0  ;;  %v1839_v53 = vpop.f32.mrb[35].mxu1 }
 0x131   :  { %v1845_v57 = vadd.f32 %v3164_v5, %v4193_v59  ;;  %v5294_v58 = vmax.f32 %v4252_v20, 0.0  ;;  %v5295_v24 = vmax.f32 %v4255_v21, 0.0  ;;  %v673_v36 = vadd.f32 %v4193_v59, %v672_v22 }
 0x132   :  { %v4447_v48 = vmax.f32 %v5292_v55, %v1034_v54  ;;  %v4451_v62 = vmax.f32 %v5293_v56, %v2201_v16  ;;  %v1840_v37 = vadd.f32 %v4193_v59, %v1839_v53  ;;  %v1036_v52 = vmax.f32 %v678_v39, 0.0 }
 0x133   :  { %v4457_v19 = vmax.f32 %v5294_v58, %v1033_v26  ;;  %v4461_v25 = vmax.f32 %v5295_v24, %v2200_v9  ;;  %v2203_v5 = vmax.f32 %v1845_v57, 0.0  ;;  %v1035_v26 = vmax.f32 %v673_v36, 0.0  ;;  %v2997_v58 = vpop.f32.mrb[36].mxu0  ;;  %v3167_v21 = vpop.f32.mrb[36].mxu1 }
 0x134   :  { %v2202_v56 = vmax.f32 %v1840_v37, 0.0  ;;  %v5297_v9 = vmax.f32 %v4315_v44, 0.0  ;;  %v5299_v22 = vmax.f32 %v4319_v34, 0.0  ;;  %v688_v16 = vadd.f32 %v2997_v58, %v4193_v59  ;;  %v682_v57 = vpop.f32.mrb[37].mxu0  ;;  %v1849_v54 = vpop.f32.mrb[37].mxu1 }
 0x135   :  { %5296 = vst [vmem:[#allocation7_spill] sm:$0xff] %v4461_v25  ;;  %v1855_v39 = vadd.f32 %v3167_v21, %v4193_v59  ;;  %v5301_v20 = vmax.f32 %v4272_v30, 0.0  ;;  %v5303_v37 = vmax.f32 %v4275_v31, 0.0  ;;  %v683_v44 = vadd.f32 %v4193_v59, %v682_v57 }
 0x136   :  { %v4471_v24 = vmax.f32 %v5297_v9, %v1036_v52  ;;  %v4475_v53 = vmax.f32 %v5299_v22, %v2203_v5  ;;  %v1850_v34 = vadd.f32 %v4193_v59, %v1849_v54  ;;  %v4491_v52 = vadd.f32 %v4195_v60, %v4193_v59 }
 0x137   :  { %v4481_v36 = vmax.f32 %v5301_v20, %v1035_v26  ;;  %v4485_v55 = vmax.f32 %v5303_v37, %v2202_v56  ;;  %v4495_v5 = vadd.f32 %v4197_v61, %v4193_v59  ;;  %v1038_v58 = vmax.f32 %v688_v16, 0.0  ;;  %v3000_v56 = vpop.f32.mrb[38].mxu0  ;;  %v3170_v21 = vpop.f32.mrb[38].mxu1 }
 0x138   :  { %5298 = vst [vmem:[#allocation8_spill] sm:$0xff] %v4471_v24  ;;  %5300 = vst [vmem:[#allocation9_spill] sm:$0xff] %v4475_v53  ;;  %v2205_v30 = vmax.f32 %v1855_v39, 0.0  ;;  %v4499_v20 = vadd.f32 %v4193_v59, %v4205_v0  ;;  %v4503_v31 = vadd.f32 %v4193_v59, %v4207_v1  ;;  %v1037_v26 = vmax.f32 %v683_v44, 0.0  ;;  %v692_v39 = vpop.f32.mrb[39].mxu0  ;;  %v1859_v57 = vpop.f32.mrb[39].mxu1 }
 0x139   :  { %5302 = vst [vmem:[#allocation10_spill] sm:$0xff] %v4481_v36  ;;  %5304 = vst [vmem:[#allocation11_spill] sm:$0xff] %v4485_v55  ;;  %v2204_v54 = vmax.f32 %v1850_v34, 0.0  ;;  %v5305_v60 = vmax.f32 %v4333_v45, 0.0  ;;  %v5307_v61 = vmax.f32 %v4337_v46, 0.0  ;;  %v698_v22 = vadd.f32 %v3000_v56, %v4193_v59 }
 0x13a   :  { %v1865_v0 = vadd.f32 %v3170_v21, %v4193_v59  ;;  %v5309_v1 = vmax.f32 %v4297_v11, 0.0  ;;  %v5311_v44 = vmax.f32 %v4301_v41, 0.0  ;;  %v693_v45 = vadd.f32 %v4193_v59, %v692_v39 }
 0x13b   :  { %v4507_v9 = vmax.f32 %v5305_v60, %v1038_v58  ;;  %v4511_v16 = vmax.f32 %v5307_v61, %v2205_v30  ;;  %v1860_v46 = vadd.f32 %v4193_v59, %v1859_v57  ;;  %v1040_v56 = vmax.f32 %v698_v22, 0.0  ;;  %v3173_v41 = vpop.f32.mrb[40].mxu1 }
 0x13c   :  { %v4517_v37 = vmax.f32 %v5309_v1, %v1037_v26  ;;  %v4521_v34 = vmax.f32 %v5311_v44, %v2204_v54  ;;  %v2207_v21 = vmax.f32 %v1865_v0, 0.0  ;;  %v1019_v60 = vmax.f32 %v4499_v20, 0.0  ;;  %v3003_v1 = vpop.f32.mrb[40].mxu0  ;;  %v1869_v20 = vpop.f32.mrb[41].mxu1 }
 0x13d   :  { %5306 = vst [vmem:[#allocation12_spill] sm:$0xff] %v4507_v9  ;;  %5308 = vst [vmem:[#allocation13_spill] sm:$0xff] %v4511_v16  ;;  %v2186_v11 = vmax.f32 %v4503_v31, 0.0  ;;  %v1039_v26 = vmax.f32 %v693_v45, 0.0  ;;  %v2206_v61 = vmax.f32 %v1860_v46, 0.0  ;;  %v5313_v54 = vmax.f32 %v4379_v15, 0.0 }
 0x13e   :  { %5310 = vst [vmem:[#allocation14_spill] sm:$0xff] %v4517_v37  ;;  %5312 = vst [vmem:[#allocation15_spill] sm:$0xff] %v4521_v34  ;;  %v5315_v39 = vmax.f32 %v4383_v63, 0.0  ;;  %v708_v30 = vadd.f32 %v3003_v1, %v4193_v59  ;;  %v1875_v22 = vadd.f32 %v3173_v41, %v4193_v59  ;;  %v702_v0 = vpop.f32.mrb[41].mxu0  ;;  %v5317_v31 = vmax.f32 %v4323_v42, 0.0 }
 0x13f   :  { %v4531_v44 = vmax.f32 %v5313_v54, %v1040_v56  ;;  %v5319_v46 = vmax.f32 %v4327_v35, 0.0  ;;  %v703_v15 = vadd.f32 %v4193_v59, %v702_v0  ;;  %v1870_v63 = vadd.f32 %v4193_v59, %v1869_v20  ;;  %v3006_v54 = vpop.f32.mrb[42].mxu0 }
 0x140   :  { %v4535_v57 = vmax.f32 %v5315_v39, %v2207_v21  ;;  %v4541_v45 = vmax.f32 %v5317_v31, %v1039_v26  ;;  %v4551_v56 = vadd.f32 %v4221_v6, %v4193_v59  ;;  %v4555_v21 = vadd.f32 %v4223_v7, %v4193_v59  ;;  %v3176_v39 = vpop.f32.mrb[42].mxu1 }
 0x141   :  { %5314 = vst [vmem:[#allocation16_spill] sm:$0xff] %v4531_v44  ;;  %v4545_v58 = vmax.f32 %v5319_v46, %v2206_v61  ;;  %v1042_v1 = vmax.f32 %v708_v30, 0.0  ;;  %v2209_v42 = vmax.f32 %v1875_v22, 0.0  ;;  %v603_v26 = vadd.f32 %v4193_v59, %v4233_v12  ;;  %v712_v12 = vpop.f32.mrb[43].mxu0  ;;  %v1879_v31 = vpop.f32.mrb[43].mxu1 }
 0x142   :  { %5316 = vst [vmem:[#allocation17_spill] sm:$0xff] %v4535_v57  ;;  %5318 = vst [vmem:[#allocation18_spill] sm:$0xff] %v4541_v45  ;;  %v1770_v35 = vadd.f32 %v4193_v59, %v4235_v13  ;;  %v1041_v61 = vmax.f32 %v703_v15, 0.0  ;;  %v2208_v41 = vmax.f32 %v1870_v63, 0.0  ;;  %v5321_v0 = vmax.f32 %v4439_v4, 0.0 }
 0x143   :  { %5320 = vst [vmem:[#allocation19_spill] sm:$0xff] %v4545_v58  ;;  %v5323_v20 = vmax.f32 %v4443_v17, 0.0  ;;  %v718_v30 = vadd.f32 %v3006_v54, %v4193_v59  ;;  %v1885_v22 = vadd.f32 %v3176_v39, %v4193_v59  ;;  %v5325_v13 = vmax.f32 %v4371_v29, 0.0 }
 0x144   :  { %v4563_v6 = vmax.f32 %v5321_v0, %v1042_v1  ;;  %v5327_v15 = vmax.f32 %v4375_v8, 0.0  ;;  %v713_v4 = vadd.f32 %v4193_v59, %v712_v12  ;;  %v1880_v17 = vadd.f32 %v4193_v59, %v1879_v31 }
 0x145   :  { %v4567_v7 = vmax.f32 %v5323_v20, %v2209_v42  ;;  %v4573_v46 = vmax.f32 %v5325_v13, %v1041_v61  ;;  %v1022_v1 = vmax.f32 %v4551_v56, 0.0  ;;  %v2189_v42 = vmax.f32 %v4555_v21, 0.0  ;;  %v3179_v20 = vpop.f32.mrb[44].mxu1 }
 0x146   :  { %5322 = vst [vmem:[#allocation20_spill] sm:$0xff] %v4563_v6  ;;  %v4577_v63 = vmax.f32 %v5327_v15, %v2208_v41  ;;  %v1044_v54 = vmax.f32 %v718_v30, 0.0  ;;  %v2211_v39 = vmax.f32 %v1885_v22, 0.0  ;;  %v613_v0 = vadd.f32 %v4193_v59, %v4277_v32  ;;  %v3009_v41 = vpop.f32.mrb[44].mxu0  ;;  %v1889_v22 = vpop.f32.mrb[45].mxu1 }
 0x147   :  { %5324 = vst [vmem:[#allocation21_spill] sm:$0xff] %v4567_v7  ;;  %5326 = vst [vmem:[#allocation22_spill] sm:$0xff] %v4573_v46  ;;  %v1780_v29 = vadd.f32 %v4193_v59, %v4279_v33  ;;  %v1043_v61 = vmax.f32 %v713_v4, 0.0  ;;  %v2210_v8 = vmax.f32 %v1880_v17, 0.0  ;;  %v728_v56 = vadd.f32 %v3009_v41, %v4193_v59  ;;  %v722_v30 = vpop.f32.mrb[45].mxu0 }
 0x148   :  { %5328 = vst [vmem:[#allocation23_spill] sm:$0xff] %v4577_v63  ;;  %v4587_v13 = vmax.f32 %v1019_v60, %v1044_v54  ;;  %v4589_v12 = vmax.f32 %v2186_v11, %v2211_v39  ;;  %v1895_v21 = vadd.f32 %v3179_v20, %v4193_v59  ;;  %v5331_v31 = vmax.f32 %v4431_v14, 0.0  ;;  %v3012_v63 = vpop.f32.mrb[46].mxu0  ;;  %v3182_v14 = vpop.f32.mrb[46].mxu1 }
 0x149   :  { %v5333_v33 = vmax.f32 %v4435_v40, 0.0  ;;  %v723_v4 = vadd.f32 %v4193_v59, %v722_v30  ;;  %v1890_v60 = vadd.f32 %v4193_v59, %v1889_v22  ;;  %v1021_v11 = vmax.f32 %v603_v26, 0.0  ;;  %v732_v30 = vpop.f32.mrb[47].mxu0  ;;  %v1899_v22 = vpop.f32.mrb[47].mxu1 }
 0x14a   :  { %5329 = vst [vmem:[#allocation24_spill] sm:$0xff] %v4587_v13  ;;  %5330 = vst [vmem:[#allocation25_spill] sm:$0xff] %v4589_v12  ;;  %v4595_v32 = vmax.f32 %v5331_v31, %v1043_v61  ;;  %v2188_v17 = vmax.f32 %v1770_v35, 0.0  ;;  %v1046_v54 = vmax.f32 %v728_v56, 0.0  ;;  %v2213_v39 = vmax.f32 %v1895_v21, 0.0 }
 0x14b   :  { %v4599_v15 = vmax.f32 %v5333_v33, %v2210_v8  ;;  %v1023_v41 = vmax.f32 %v613_v0, 0.0  ;;  %v2190_v20 = vmax.f32 %v1780_v29, 0.0  ;;  %v1045_v12 = vmax.f32 %v723_v4, 0.0 }
 0x14c   :  { %5332 = vst [vmem:[#allocation26_spill] sm:$0xff] %v4595_v32  ;;  %v2212_v13 = vmax.f32 %v1890_v60, 0.0  ;;  %v4603_v61 = vmax.f32 %v1021_v11, %v1046_v54  ;;  %v4605_v31 = vmax.f32 %v2188_v17, %v2213_v39  ;;  %v738_v40 = vadd.f32 %v3012_v63, %v4193_v59  ;;  %v5341_v63 = vld [vmem:[#allocation4_spill] sm:$0xff]  ;;  %v5343_v17 = vld [vmem:[#allocation3_spill] sm:$0xff]  ;;  %v3015_v39 = vpop.f32.mrb[48].mxu0 }
 0x14d   :  { %5334 = vst [vmem:[#allocation27_spill] sm:$0xff] %v4599_v15  ;;  %v1905_v8 = vadd.f32 %v3182_v14, %v4193_v59  ;;  %v5337_v26 = vmax.f32 %v4491_v52, 0.0  ;;  %v5339_v0 = vmax.f32 %v4495_v5, 0.0  ;;  %v733_v56 = vadd.f32 %v4193_v59, %v732_v30  ;;  %v5342_v52 = vld [vmem:[#allocation2_spill] sm:$0xff]  ;;  %v3185_v14 = vpop.f32.mrb[48].mxu1 }
 0x14e   :  { %5335 = vst [vmem:[#allocation28_spill] sm:$0xff] %v4603_v61  ;;  %5336 = vst [vmem:[#allocation29_spill] sm:$0xff] %v4605_v31  ;;  %v1900_v21 = vadd.f32 %v4193_v59, %v1899_v22  ;;  %v623_v33 = vadd.f32 %v4193_v59, %v4307_v23  ;;  %v1790_v4 = vadd.f32 %v4193_v59, %v5341_v63  ;;  %v1048_v60 = vmax.f32 %v738_v40, 0.0  ;;  %v742_v40 = vpop.f32.mrb[49].mxu0 }
 0x14f   :  { %v4611_v35 = vmax.f32 %v5337_v26, %v1045_v12  ;;  %v4615_v29 = vmax.f32 %v5339_v0, %v2212_v13  ;;  %v2215_v11 = vmax.f32 %v1905_v8, 0.0  ;;  %v618_v12 = vadd.f32 %v5342_v52, %v4193_v59  ;;  %v1909_v8 = vpop.f32.mrb[49].mxu1 }
 0x150   :  { %v1785_v5 = vadd.f32 %v5343_v17, %v4193_v59  ;;  %v1047_v13 = vmax.f32 %v733_v56, 0.0  ;;  %v2214_v54 = vmax.f32 %v1900_v21, 0.0  ;;  %v4627_v30 = vmax.f32 %v1023_v41, %v1048_v60 }
 0x151   :  { %5338 = vst [vmem:[#allocation30_spill] sm:$0xff] %v4611_v35  ;;  %5340 = vst [vmem:[#allocation31_spill] sm:$0xff] %v4615_v29  ;;  %v4629_v22 = vmax.f32 %v2190_v20, %v2215_v11  ;;  %v748_v23 = vadd.f32 %v3015_v39, %v4193_v59  ;;  %v1915_v26 = vadd.f32 %v3185_v14, %v4193_v59  ;;  %v1025_v21 = vmax.f32 %v623_v33, 0.0  ;;  %v3188_v14 = vpop.f32.mrb[50].mxu1 }
 0x152   :  { %5344 = vst [vmem:[#allocation4_spill] sm:$0xff] %v4627_v30  ;;  %v4633_v0 = vmax.f32 %v1022_v1, %v1047_v13  ;;  %v4635_v63 = vmax.f32 %v2189_v42, %v2214_v54  ;;  %v743_v52 = vadd.f32 %v4193_v59, %v742_v40  ;;  %v1910_v56 = vadd.f32 %v4193_v59, %v1909_v8  ;;  %v3018_v30 = vpop.f32.mrb[50].mxu0  ;;  %v1919_v13 = vpop.f32.mrb[51].mxu1 }
 0x153   :  { %5345 = vst [vmem:[#allocation2_spill] sm:$0xff] %v4629_v22  ;;  %v2192_v17 = vmax.f32 %v1790_v4, 0.0  ;;  %v1050_v41 = vmax.f32 %v748_v23, 0.0  ;;  %v2217_v60 = vmax.f32 %v1915_v26, 0.0  ;;  %v1024_v20 = vmax.f32 %v618_v12, 0.0  ;;  %v752_v42 = vpop.f32.mrb[51].mxu0 }
 0x154   :  { %5346 = vst [vmem:[#allocation3_spill] sm:$0xff] %v4633_v0  ;;  %5347 = vst [vmem:[#allocation32_spill] sm:$0xff] %v4635_v63  ;;  %v2191_v11 = vmax.f32 %v1785_v5, 0.0  ;;  %v1049_v22 = vmax.f32 %v743_v52, 0.0  ;;  %v2216_v39 = vmax.f32 %v1910_v56, 0.0  ;;  %v3021_v33 = vpop.f32.mrb[52].mxu0  ;;  %v4648_v31 = vadd.f32 %v3018_v30, %v4193_v59 }
 0x155   :  { %v4639_v29 = vmax.f32 %v1025_v21, %v1050_v41  ;;  %v4641_v1 = vmax.f32 %v2192_v17, %v2217_v60  ;;  %v3191_v4 = vpop.f32.mrb[52].mxu1  ;;  %v762_v23 = vpop.f32.mrb[53].mxu0  ;;  %v4651_v61 = vadd.f32 %v3188_v14, %v4193_v59  ;;  %v4654_v15 = vadd.f32 %v4193_v59, %v752_v42 }
 0x156   :  { %v4643_v54 = vmax.f32 %v1024_v20, %v1049_v22  ;;  %v4645_v40 = vmax.f32 %v2191_v11, %v2216_v39  ;;  %v1929_v26 = vpop.f32.mrb[53].mxu1  ;;  %v4657_v32 = vadd.f32 %v4193_v59, %v1919_v13  ;;  %v4660_v46 = vadd.f32 %v3021_v33, %v4193_v59 }
 0x157   :  { %5348 = vst [vmem:[#allocation33_spill] sm:$0xff] %v4639_v29  ;;  %5349 = vst [vmem:[#allocation34_spill] sm:$0xff] %v4641_v1  ;;  %v3024_v12 = vpop.f32.mrb[54].mxu0  ;;  %v3194_v5 = vpop.f32.mrb[54].mxu1  ;;  %v4663_v7 = vadd.f32 %v3191_v4, %v4193_v59  ;;  %v4666_v30 = vadd.f32 %v4193_v59, %v762_v23  ;;  %v4669_v14 = vadd.f32 %v4193_v59, %v1929_v26 }
 0x158   :  { %5350 = vst [vmem:[#allocation35_spill] sm:$0xff] %v4643_v54  ;;  %5351 = vst [vmem:[#allocation36_spill] sm:$0xff] %v4645_v40  ;;  %v772_v8 = vpop.f32.mrb[55].mxu0  ;;  %v1939_v52 = vpop.f32.mrb[55].mxu1  ;;  %v4674_v33 = vadd.f32 %v3024_v12, %v4193_v59  ;;  %v4677_v4 = vadd.f32 %v3194_v5, %v4193_v59 }
 0x159   :  { %v4682_v34 = vadd.f32 %v4193_v59, %v772_v8  ;;  %v4685_v26 = vadd.f32 %v4193_v59, %v1939_v52 }
 0x15b   :  { %v3027_v56 = vpop.f32.mrb[56].mxu0  ;;  %v3197_v63 = vpop.f32.mrb[56].mxu1 }
 0x15c   :  { %v782_v21 = vpop.f32.mrb[57].mxu0  ;;  %v1949_v41 = vpop.f32.mrb[57].mxu1  ;;  %v4690_v12 = vadd.f32 %v3027_v56, %v4193_v59  ;;  %v4693_v5 = vadd.f32 %v3197_v63, %v4193_v59 }
 0x15d   :  { %v4698_v16 = vadd.f32 %v4193_v59, %v782_v21  ;;  %v4701_v52 = vadd.f32 %v4193_v59, %v1949_v41 }
 0x15f   :  { %v3030_v17 = vpop.f32.mrb[58].mxu0  ;;  %v3200_v60 = vpop.f32.mrb[58].mxu1 }
 0x160   :  { %v792_v1 = vpop.f32.mrb[59].mxu0  ;;  %v1959_v29 = vpop.f32.mrb[59].mxu1  ;;  %v4706_v63 = vadd.f32 %v3030_v17, %v4193_v59  ;;  %v4709_v55 = vadd.f32 %v3200_v60, %v4193_v59 }
 0x161   :  { %v4714_v23 = vadd.f32 %v4193_v59, %v792_v1  ;;  %v4717_v41 = vadd.f32 %v4193_v59, %v1959_v29 }
 0x162   :  { %5352 = vst [vmem:[#allocation37_spill] sm:$0xff] %v4706_v63  ;;  %5353 = vst [vmem:[#allocation38_spill] sm:$0xff] %v4709_v55 }
 0x163   :  { %v3033_v22 = vpop.f32.mrb[60].mxu0  ;;  %v3203_v20 = vpop.f32.mrb[60].mxu1 }
 0x164   :  { %v802_v11 = vpop.f32.mrb[61].mxu0  ;;  %v1969_v39 = vpop.f32.mrb[61].mxu1  ;;  %v4722_v17 = vadd.f32 %v3033_v22, %v4193_v59  ;;  %v4725_v60 = vadd.f32 %v3203_v20, %v4193_v59 }
 0x165   :  { %v4730_v53 = vadd.f32 %v4193_v59, %v802_v11  ;;  %v4733_v29 = vadd.f32 %v4193_v59, %v1969_v39 }
 0x166   :  { %5354 = vst [vmem:[#allocation39_spill] sm:$0xff] %v4722_v17  ;;  %5355 = vst [vmem:[#allocation40_spill] sm:$0xff] %v4725_v60 }
 0x167   :  { %v3036_v40 = vpop.f32.mrb[62].mxu0  ;;  %v3206_v54 = vpop.f32.mrb[62].mxu1 }
 0x168   :  { %v812_v0 = vpop.f32.mrb[63].mxu0  ;;  %v1979_v35 = vpop.f32.mrb[63].mxu1  ;;  %v4738_v20 = vadd.f32 %v3036_v40, %v4193_v59  ;;  %v4741_v25 = vadd.f32 %v3206_v54, %v4193_v59 }
 0x169   :  { %v4746_v21 = vadd.f32 %v4193_v59, %v812_v0  ;;  %v4749_v39 = vadd.f32 %v4193_v59, %v1979_v35 }
 0x16a   :  { %5356 = vst [vmem:[#allocation41_spill] sm:$0xff] %v4738_v20  ;;  %5357 = vst [vmem:[#allocation42_spill] sm:$0xff] %v4741_v25 }
 0x16b   :  { %v3039_v6 = vpop.f32.mrb[64].mxu0  ;;  %v3209_v58 = vpop.f32.mrb[64].mxu1 }
 0x16c   :  { %v822_v45 = vpop.f32.mrb[65].mxu0  ;;  %v1989_v42 = vpop.f32.mrb[65].mxu1  ;;  %v4754_v40 = vadd.f32 %v3039_v6, %v4193_v59  ;;  %v4757_v54 = vadd.f32 %v3209_v58, %v4193_v59 }
 0x16d   :  { %v4762_v63 = vadd.f32 %v4193_v59, %v822_v45  ;;  %v4765_v35 = vadd.f32 %v4193_v59, %v1989_v42 }
 0x16e   :  { %5358 = vst [vmem:[#allocation43_spill] sm:$0xff] %v4754_v40  ;;  %5359 = vst [vmem:[#allocation44_spill] sm:$0xff] %v4757_v54 }
 0x16f   :  { %v3042_v37 = vpop.f32.mrb[66].mxu0  ;;  %v3212_v44 = vpop.f32.mrb[66].mxu1 }
 0x170   :  { %v832_v57 = vpop.f32.mrb[67].mxu0  ;;  %v1999_v13 = vpop.f32.mrb[67].mxu1  ;;  %v4770_v58 = vadd.f32 %v3042_v37, %v4193_v59  ;;  %v4773_v17 = vadd.f32 %v3212_v44, %v4193_v59 }
 0x171   :  { %v4778_v11 = vadd.f32 %v4193_v59, %v832_v57  ;;  %v4781_v42 = vadd.f32 %v4193_v59, %v1999_v13 }
 0x172   :  { %5360 = vst [vmem:[#allocation45_spill] sm:$0xff] %v4770_v58  ;;  %5361 = vst [vmem:[#allocation46_spill] sm:$0xff] %v4773_v17 }
 0x173   :  { %v3045_v36 = vpop.f32.mrb[68].mxu0  ;;  %v3215_v8 = vpop.f32.mrb[68].mxu1  ;;  %5362 = vst [vmem:[#allocation47_spill] sm:$0xff] %v4781_v42 }
 0x174   :  { %v842_v56 = vpop.f32.mrb[69].mxu0  ;;  %v2009_v9 = vpop.f32.mrb[69].mxu1  ;;  %v4786_v37 = vadd.f32 %v3045_v36, %v4193_v59  ;;  %v4789_v44 = vadd.f32 %v3215_v8, %v4193_v59 }
 0x175   :  { %v4794_v20 = vadd.f32 %v4193_v59, %v842_v56  ;;  %v4797_v13 = vadd.f32 %v4193_v59, %v2009_v9  ;;  %v5374_v56 = vmax.f32 %v4657_v32, 0.0 }
 0x176   :  { %5363 = vst [vmem:[#allocation48_spill] sm:$0xff] %v4786_v37  ;;  %5364 = vst [vmem:[#allocation49_spill] sm:$0xff] %v4789_v44 }
 0x177   :  { %v3048_v55 = vpop.f32.mrb[70].mxu0  ;;  %v3218_v1 = vpop.f32.mrb[70].mxu1  ;;  %5365 = vst [vmem:[#allocation50_spill] sm:$0xff] %v4794_v20  ;;  %5366 = vst [vmem:[#allocation51_spill] sm:$0xff] %v4797_v13 }
 0x178   :  { %v852_v22 = vpop.f32.mrb[71].mxu0  ;;  %v2019_v24 = vpop.f32.mrb[71].mxu1  ;;  %v4802_v8 = vadd.f32 %v3048_v55, %v4193_v59  ;;  %v4805_v40 = vadd.f32 %v3218_v1, %v4193_v59 }
 0x179   :  { %v4810_v9 = vadd.f32 %v4193_v59, %v852_v22  ;;  %v4813_v45 = vadd.f32 %v4193_v59, %v2019_v24 }
 0x17a   :  { %5367 = vst [vmem:[#allocation52_spill] sm:$0xff] %v4802_v8  ;;  %5368 = vst [vmem:[#allocation53_spill] sm:$0xff] %v4805_v40 }
 0x17b   :  { %v3051_v25 = vpop.f32.mrb[72].mxu0  ;;  %v3221_v0 = vpop.f32.mrb[72].mxu1  ;;  %5369 = vst [vmem:[#allocation54_spill] sm:$0xff] %v4810_v9  ;;  %5370 = vst [vmem:[#allocation55_spill] sm:$0xff] %v4813_v45  ;;  %v5375_v45 = vld [vmem:[#allocation5_spill] sm:$0xff] }
 0x17c   :  { %v862_v6 = vpop.f32.mrb[73].mxu0  ;;  %v2029_v60 = vpop.f32.mrb[73].mxu1  ;;  %v4818_v55 = vadd.f32 %v3051_v25, %v4193_v59  ;;  %v4821_v1 = vadd.f32 %v3221_v0, %v4193_v59 }
 0x17d   :  { %v4830_v44 = vadd.f32 %v4193_v59, %v862_v6  ;;  %v4833_v0 = vadd.f32 %v4193_v59, %v2029_v60  ;;  %v5373_v60 = vmax.f32 %v4654_v15, 0.0 }
 0x17e   :  { %5371 = vst [vmem:[#allocation56_spill] sm:$0xff] %v4818_v55  ;;  %5372 = vst [vmem:[#allocation57_spill] sm:$0xff] %v4821_v1 }
 0x17f   :  { %v3054_v17 = vpop.f32.mrb[74].mxu0  ;;  %v3224_v57 = vpop.f32.mrb[74].mxu1  ;;  %v2240_v1 = vmax.f32 %v4833_v0, 0.0 }
 0x180   :  { %v878_v58 = vadd.f32 %v3054_v17, %v4193_v59  ;;  %v2045_v24 = vadd.f32 %v3224_v57, %v4193_v59  ;;  %v872_v42 = vpop.f32.mrb[75].mxu0  ;;  %v2039_v36 = vpop.f32.mrb[75].mxu1 }
 0x181   :  { %v4840_v54 = vadd.f32 %v4193_v59, %v872_v42  ;;  %v4843_v25 = vadd.f32 %v4193_v59, %v2039_v36 }
 0x182   :  { %v1076_v37 = vmax.f32 %v878_v58, 0.0  ;;  %v2243_v17 = vmax.f32 %v2045_v24, 0.0 }
 0x183   :  { %v3057_v6 = vpop.f32.mrb[76].mxu0  ;;  %v3227_v40 = vpop.f32.mrb[76].mxu1 }
 0x184   :  { %v1126_v8 = vmax.f32 %v5373_v60, %v1076_v37  ;;  %v2293_v22 = vmax.f32 %v5374_v56, %v2243_v17  ;;  %v888_v58 = vadd.f32 %v3057_v6, %v4193_v59  ;;  %v2055_v24 = vadd.f32 %v3227_v40, %v4193_v59  ;;  %v882_v57 = vpop.f32.mrb[77].mxu0  ;;  %v2049_v13 = vpop.f32.mrb[77].mxu1  ;;  %v5376_v37 = vld [vmem:[#allocation6_spill] sm:$0xff] }
 0x185   :  { %v883_v36 = vadd.f32 %v4193_v59, %v882_v57  ;;  %v2050_v55 = vadd.f32 %v4193_v59, %v2049_v13  ;;  %v1075_v17 = vmax.f32 %v4840_v54, 0.0 }
 0x186   :  { %v1151_v15 = vmax.f32 %v5375_v45, %v1126_v8  ;;  %v2318_v60 = vmax.f32 %v5376_v37, %v2293_v22  ;;  %v1078_v32 = vmax.f32 %v888_v58, 0.0  ;;  %v2245_v56 = vmax.f32 %v2055_v24, 0.0 }
 0x187   :  { %v1077_v6 = vmax.f32 %v883_v36, 0.0  ;;  %v2244_v9 = vmax.f32 %v2050_v55, 0.0  ;;  %v3060_v20 = vpop.f32.mrb[78].mxu0  ;;  %v3230_v42 = vpop.f32.mrb[78].mxu1  ;;  %v5377_v45 = vmax.f32 %v4666_v30, 0.0  ;;  %v5378_v8 = vmax.f32 %v4669_v14, 0.0 }
 0x188   :  { %1177 = vst.msk [vmem:[%s5255_s3] sm:$0xff] %vm1176_vm4, %v1151_v15  ;;  %2676 = vst.msk [vmem:[%s5255_s3 + $0xc8] sm:$0xff] %vm1176_vm4, %v2318_v60  ;;  %v898_v55 = vadd.f32 %v3060_v20, %v4193_v59  ;;  %v2065_v57 = vadd.f32 %v3230_v42, %v4193_v59  ;;  %v892_v58 = vpop.f32.mrb[79].mxu0  ;;  %v2059_v24 = vpop.f32.mrb[79].mxu1  ;;  %v5379_v36 = vmax.f32 %v4648_v31, 0.0  ;;  %v5380_v37 = vmax.f32 %v4651_v61, 0.0 }
 0x189   :  { %v1128_v13 = vmax.f32 %v5377_v45, %v1078_v32  ;;  %v2295_v22 = vmax.f32 %v5378_v8, %v2245_v56  ;;  %v893_v60 = vadd.f32 %v4193_v59, %v892_v58  ;;  %v2060_v30 = vadd.f32 %v4193_v59, %v2059_v24 }
 0x18a   :  { %v1127_v15 = vmax.f32 %v5379_v36, %v1077_v6  ;;  %v2294_v40 = vmax.f32 %v5380_v37, %v2244_v9  ;;  %v1080_v56 = vmax.f32 %v898_v55, 0.0  ;;  %v2247_v20 = vmax.f32 %v2065_v57, 0.0 }
 0x18b   :  { %v1153_v32 = vmax.f32 %v4353_v10, %v1128_v13  ;;  %v2320_v14 = vmax.f32 %v4355_v49, %v2295_v22  ;;  %v1079_v8 = vmax.f32 %v893_v60, 0.0  ;;  %v2246_v31 = vmax.f32 %v2060_v30, 0.0  ;;  %v3063_v6 = vpop.f32.mrb[80].mxu0  ;;  %v3233_v36 = vpop.f32.mrb[80].mxu1 }
 0x18c   :  { %v1152_v42 = vmax.f32 %v4361_v3, %v1127_v15  ;;  %v2319_v45 = vmax.f32 %v4365_v27, %v2294_v40  ;;  %v5381_v59 = vmax.f32 %v4682_v34, 0.0  ;;  %v5382_v49 = vmax.f32 %v4685_v26, 0.0  ;;  %v4898_v27 = vld [vmem:[%s5254_s2] ss:$0 sm:$0xff]  ;;  %v902_v40 = vpop.f32.mrb[81].mxu0  ;;  %v2069_v13 = vpop.f32.mrb[81].mxu1 }
 0x18d   :  { %1179 = vst.msk [vmem:[%s5255_s3 + $0x10] sm:$0xff] %vm1176_vm4, %v1153_v32  ;;  %2678 = vst.msk [vmem:[%s5255_s3 + $0xd8] sm:$0xff] %vm1176_vm4, %v2320_v14  ;;  %v908_v61 = vadd.f32 %v4898_v27, %v3063_v6  ;;  %v2075_v9 = vadd.f32 %v4898_v27, %v3233_v36  ;;  %v5383_v34 = vmax.f32 %v4660_v46, 0.0  ;;  %v5384_v22 = vmax.f32 %v4663_v7, 0.0 }
 0x18e   :  { %v1130_v10 = vmax.f32 %v5381_v59, %v1080_v56  ;;  %v2297_v3 = vmax.f32 %v5382_v49, %v2247_v20  ;;  %1178 = vst.msk [vmem:[%s5255_s3 + $0x8] sm:$0xff] %vm1176_vm4, %v1152_v42  ;;  %2677 = vst.msk [vmem:[%s5255_s3 + $0xd0] sm:$0xff] %vm1176_vm4, %v2319_v45  ;;  %v903_v57 = vadd.f32 %v4898_v27, %v902_v40 }
 0x18f   :  { %v1129_v26 = vmax.f32 %v5383_v34, %v1079_v8  ;;  %v2296_v55 = vmax.f32 %v5384_v22, %v2246_v31  ;;  %v2070_v58 = vadd.f32 %v4898_v27, %v2069_v13  ;;  %v1082_v37 = vmax.f32 %v908_v61, 0.0  ;;  %v3066_v56 = vpop.f32.mrb[82].mxu0  ;;  %v3236_v20 = vpop.f32.mrb[82].mxu1 }
 0x190   :  { %v1155_v24 = vmax.f32 %v4387_v38, %v1130_v10  ;;  %v2322_v15 = vmax.f32 %v4391_v47, %v2297_v3  ;;  %v2249_v60 = vmax.f32 %v2075_v9, 0.0  ;;  %v1081_v14 = vmax.f32 %v903_v57, 0.0  ;;  %v912_v45 = vpop.f32.mrb[83].mxu0  ;;  %v2079_v8 = vpop.f32.mrb[83].mxu1 }
 0x191   :  { %v1154_v30 = vmax.f32 %v4397_v50, %v1129_v26  ;;  %v2321_v32 = vmax.f32 %v4401_v43, %v2296_v55  ;;  %v2248_v46 = vmax.f32 %v2070_v58, 0.0  ;;  %v5385_v38 = vmax.f32 %v4698_v16, 0.0 }
 0x192   :  { %1181 = vst.msk [vmem:[%s5255_s3 + $0x20] sm:$0xff] %vm1176_vm4, %v1155_v24  ;;  %2680 = vst.msk [vmem:[%s5255_s3 + $0xe8] sm:$0xff] %vm1176_vm4, %v2322_v15  ;;  %v5386_v50 = vmax.f32 %v4701_v52, 0.0  ;;  %v918_v7 = vadd.f32 %v4898_v27, %v3066_v56  ;;  %v2085_v42 = vadd.f32 %v4898_v27, %v3236_v20  ;;  %v5387_v16 = vmax.f32 %v4674_v33, 0.0  ;;  %v5393_v56 = vld [vmem:[#allocation7_spill] sm:$0xff] }
 0x193   :  { %v1132_v47 = vmax.f32 %v5385_v38, %v1082_v37  ;;  %1180 = vst.msk [vmem:[%s5255_s3 + $0x18] sm:$0xff] %vm1176_vm4, %v1154_v30  ;;  %2679 = vst.msk [vmem:[%s5255_s3 + $0xe0] sm:$0xff] %vm1176_vm4, %v2321_v32  ;;  %v5388_v31 = vmax.f32 %v4677_v4, 0.0  ;;  %v913_v36 = vadd.f32 %v4898_v27, %v912_v45  ;;  %v2080_v59 = vadd.f32 %v4898_v27, %v2079_v8  ;;  %v3069_v34 = vpop.f32.mrb[84].mxu0  ;;  %v3239_v26 = vpop.f32.mrb[84].mxu1 }
 0x194   :  { %v2299_v43 = vmax.f32 %v5386_v50, %v2249_v60  ;;  %v1131_v52 = vmax.f32 %v5387_v16, %v1081_v14  ;;  %v1084_v3 = vmax.f32 %v918_v7, 0.0  ;;  %v2251_v61 = vmax.f32 %v2085_v42, 0.0  ;;  %v922_v55 = vpop.f32.mrb[85].mxu0  ;;  %v2089_v57 = vpop.f32.mrb[85].mxu1  ;;  %v5398_v16 = vld [vmem:[#allocation38_spill] sm:$0xff] }
 0x195   :  { %v2298_v6 = vmax.f32 %v5388_v31, %v2248_v46  ;;  %v1157_v10 = vmax.f32 %v4411_v28, %v1132_v47  ;;  %v1083_v13 = vmax.f32 %v913_v36, 0.0  ;;  %v2250_v33 = vmax.f32 %v2080_v59, 0.0  ;;  %v5400_v59 = vld [vmem:[#allocation8_spill] sm:$0xff] }
 0x196   :  { %v2324_v49 = vmax.f32 %v4415_v2, %v2299_v43  ;;  %v1156_v9 = vmax.f32 %v4421_v18, %v1131_v52  ;;  %v5389_v28 = vmax.f32 %v4714_v23, 0.0  ;;  %v5390_v18 = vmax.f32 %v4717_v41, 0.0 }
 0x197   :  { %v2323_v40 = vmax.f32 %v4425_v51, %v2298_v6  ;;  %1183 = vst.msk [vmem:[%s5255_s3 + $0x30] sm:$0xff] %vm1176_vm4, %v1157_v10  ;;  %v928_v4 = vadd.f32 %v4898_v27, %v3069_v34  ;;  %v2095_v22 = vadd.f32 %v4898_v27, %v3239_v26  ;;  %v5391_v23 = vmax.f32 %v4690_v12, 0.0  ;;  %v3072_v47 = vpop.f32.mrb[86].mxu0  ;;  %v3242_v50 = vpop.f32.mrb[86].mxu1 }
 0x198   :  { %2682 = vst.msk [vmem:[%s5255_s3 + $0xf8] sm:$0xff] %vm1176_vm4, %v2324_v49  ;;  %v1134_v2 = vmax.f32 %v5389_v28, %v1084_v3  ;;  %v2301_v51 = vmax.f32 %v5390_v18, %v2251_v61  ;;  %1182 = vst.msk [vmem:[%s5255_s3 + $0x28] sm:$0xff] %vm1176_vm4, %v1156_v9  ;;  %v5392_v58 = vmax.f32 %v4693_v5, 0.0  ;;  %v923_v15 = vadd.f32 %v4898_v27, %v922_v55  ;;  %v932_v42 = vpop.f32.mrb[87].mxu0  ;;  %v2099_v45 = vpop.f32.mrb[87].mxu1  ;;  %v5401_v49 = vld [vmem:[#allocation9_spill] sm:$0xff] }
 0x199   :  { %2681 = vst.msk [vmem:[%s5255_s3 + $0xf0] sm:$0xff] %vm1176_vm4, %v2323_v40  ;;  %v1133_v41 = vmax.f32 %v5391_v23, %v1083_v13  ;;  %v2090_v37 = vadd.f32 %v4898_v27, %v2089_v57  ;;  %v1086_v32 = vmax.f32 %v928_v4, 0.0  ;;  %v2253_v14 = vmax.f32 %v2095_v22, 0.0  ;;  %v5402_v40 = vld [vmem:[#allocation10_spill] sm:$0xff] }
 0x19a   :  { %v2300_v24 = vmax.f32 %v5392_v58, %v2250_v33  ;;  %v1159_v60 = vmax.f32 %v4447_v48, %v1134_v2  ;;  %v2326_v30 = vmax.f32 %v4451_v62, %v2301_v51  ;;  %v1085_v38 = vmax.f32 %v923_v15, 0.0  ;;  %v5403_v33 = vld [vmem:[#allocation11_spill] sm:$0xff]  ;;  %v5408_v15 = vld [vmem:[#allocation40_spill] sm:$0xff] }
 0x19b   :  { %v1158_v46 = vmax.f32 %v4457_v19, %v1133_v41  ;;  %v2252_v12 = vmax.f32 %v2090_v37, 0.0  ;;  %v5394_v48 = vmax.f32 %v4730_v53, 0.0  ;;  %v5395_v19 = vmax.f32 %v4733_v29, 0.0  ;;  %v5396_v53 = vld [vmem:[#allocation37_spill] sm:$0xff]  ;;  %v3075_v2 = vpop.f32.mrb[88].mxu0  ;;  %v3245_v18 = vpop.f32.mrb[88].mxu1 }
 0x19c   :  { %v2325_v20 = vmax.f32 %v5393_v56, %v2300_v24  ;;  %1185 = vst.msk [vmem:[%s5255_s3 + $0x40] sm:$0xff] %vm1176_vm4, %v1159_v60  ;;  %2684 = vst.msk [vmem:[%s5255_s3 + $0x108] sm:$0xff] %vm1176_vm4, %v2326_v30  ;;  %v938_v43 = vadd.f32 %v4898_v27, %v3072_v47  ;;  %v2105_v7 = vadd.f32 %v4898_v27, %v3242_v50  ;;  %v5397_v8 = vmax.f32 %v5396_v53, 0.0  ;;  %v942_v41 = vpop.f32.mrb[89].mxu0  ;;  %v2109_v58 = vpop.f32.mrb[89].mxu1  ;;  %v5411_v56 = vld [vmem:[#allocation13_spill] sm:$0xff] }
 0x19d   :  { %v1136_v62 = vmax.f32 %v5394_v48, %v1086_v32  ;;  %v2303_v5 = vmax.f32 %v5395_v19, %v2253_v14  ;;  %1184 = vst.msk [vmem:[%s5255_s3 + $0x38] sm:$0xff] %vm1176_vm4, %v1158_v46  ;;  %v5399_v52 = vmax.f32 %v5398_v16, 0.0  ;;  %v933_v6 = vadd.f32 %v4898_v27, %v932_v42  ;;  %v5410_v14 = vld [vmem:[#allocation12_spill] sm:$0xff]  ;;  %v5412_v47 = vld [vmem:[#allocation14_spill] sm:$0xff]  ;;  %v5413_v48 = vld [vmem:[#allocation15_spill] sm:$0xff] }
 0x19e   :  { %2683 = vst.msk [vmem:[%s5255_s3 + $0x100] sm:$0xff] %vm1176_vm4, %v2325_v20  ;;  %v1135_v29 = vmax.f32 %v5397_v8, %v1085_v38  ;;  %v2100_v36 = vadd.f32 %v4898_v27, %v2099_v45  ;;  %v1088_v61 = vmax.f32 %v938_v43, 0.0  ;;  %v2255_v9 = vmax.f32 %v2105_v7, 0.0 }
 0x19f   :  { %v2302_v31 = vmax.f32 %v5399_v52, %v2252_v12  ;;  %v1161_v10 = vmax.f32 %v5400_v59, %v1136_v62  ;;  %v2328_v3 = vmax.f32 %v5401_v49, %v2303_v5  ;;  %v1087_v26 = vmax.f32 %v933_v6, 0.0  ;;  %v3078_v43 = vpop.f32.mrb[90].mxu0  ;;  %v3248_v7 = vpop.f32.mrb[90].mxu1 }
 0x1a0   :  { %v1160_v13 = vmax.f32 %v5402_v40, %v1135_v29  ;;  %v2254_v28 = vmax.f32 %v2100_v36, 0.0  ;;  %v5404_v51 = vmax.f32 %v4746_v21, 0.0  ;;  %v5405_v22 = vmax.f32 %v4749_v39, 0.0  ;;  %v5406_v21 = vld [vmem:[#allocation39_spill] sm:$0xff]  ;;  %v952_v52 = vpop.f32.mrb[91].mxu0  ;;  %v5418_v36 = vld [vmem:[#allocation42_spill] sm:$0xff] }
 0x1a1   :  { %v2327_v34 = vmax.f32 %v5403_v33, %v2302_v31  ;;  %1187 = vst.msk [vmem:[%s5255_s3 + $0x50] sm:$0xff] %vm1176_vm4, %v1161_v10  ;;  %2686 = vst.msk [vmem:[%s5255_s3 + $0x118] sm:$0xff] %vm1176_vm4, %v2328_v3  ;;  %v948_v57 = vadd.f32 %v4898_v27, %v3075_v2  ;;  %v2115_v23 = vadd.f32 %v4898_v27, %v3245_v18  ;;  %v5407_v24 = vmax.f32 %v5406_v21, 0.0  ;;  %v2119_v31 = vpop.f32.mrb[91].mxu1  ;;  %v5421_v40 = vld [vmem:[#allocation17_spill] sm:$0xff]  ;;  %v5423_v2 = vld [vmem:[#allocation19_spill] sm:$0xff] }
 0x1a2   :  { %v1138_v4 = vmax.f32 %v5404_v51, %v1088_v61  ;;  %v2305_v55 = vmax.f32 %v5405_v22, %v2255_v9  ;;  %1186 = vst.msk [vmem:[%s5255_s3 + $0x48] sm:$0xff] %vm1176_vm4, %v1160_v13  ;;  %v5409_v37 = vmax.f32 %v5408_v15, 0.0  ;;  %v943_v30 = vadd.f32 %v4898_v27, %v942_v41  ;;  %v5420_v61 = vld [vmem:[#allocation16_spill] sm:$0xff]  ;;  %v5425_v41 = vld [vmem:[#allocation47_spill] sm:$0xff] }
 0x1a3   :  { %2685 = vst.msk [vmem:[%s5255_s3 + $0x110] sm:$0xff] %vm1176_vm4, %v2327_v34  ;;  %v1137_v39 = vmax.f32 %v5407_v24, %v1087_v26  ;;  %v2110_v32 = vadd.f32 %v4898_v27, %v2109_v58  ;;  %v1090_v38 = vmax.f32 %v948_v57, 0.0  ;;  %v2257_v12 = vmax.f32 %v2115_v23, 0.0  ;;  %v5422_v26 = vld [vmem:[#allocation18_spill] sm:$0xff]  ;;  %v3081_v22 = vpop.f32.mrb[92].mxu0 }
 0x1a4   :  { %v2304_v60 = vmax.f32 %v5409_v37, %v2254_v28  ;;  %v1163_v46 = vmax.f32 %v5410_v14, %v1138_v4  ;;  %v2330_v20 = vmax.f32 %v5411_v56, %v2305_v55  ;;  %v1089_v19 = vmax.f32 %v943_v30, 0.0  ;;  %v3251_v55 = vpop.f32.mrb[92].mxu1  ;;  %v962_v15 = vpop.f32.mrb[93].mxu0 }
 0x1a5   :  { %v1162_v50 = vmax.f32 %v5412_v47, %v1137_v39  ;;  %v2256_v5 = vmax.f32 %v2110_v32, 0.0  ;;  %v5414_v42 = vmax.f32 %v4762_v63, 0.0  ;;  %v5415_v53 = vmax.f32 %v4765_v35, 0.0  ;;  %v5416_v63 = vld [vmem:[#allocation41_spill] sm:$0xff]  ;;  %v2129_v37 = vpop.f32.mrb[93].mxu1  ;;  %v5429_v32 = vld [vmem:[#allocation44_spill] sm:$0xff] }
 0x1a6   :  { %v2329_v62 = vmax.f32 %v5413_v48, %v2304_v60  ;;  %1189 = vst.msk [vmem:[%s5255_s3 + $0x60] sm:$0xff] %vm1176_vm4, %v1163_v46  ;;  %2688 = vst.msk [vmem:[%s5255_s3 + $0x128] sm:$0xff] %vm1176_vm4, %v2330_v20  ;;  %v958_v29 = vadd.f32 %v4898_v27, %v3078_v43  ;;  %v2125_v16 = vadd.f32 %v4898_v27, %v3248_v7  ;;  %v5417_v6 = vmax.f32 %v5416_v63, 0.0  ;;  %v5432_v47 = vld [vmem:[#allocation21_spill] sm:$0xff]  ;;  %v5434_v43 = vld [vmem:[#allocation23_spill] sm:$0xff] }
 0x1a7   :  { %v1140_v45 = vmax.f32 %v5414_v42, %v1090_v38  ;;  %v2307_v8 = vmax.f32 %v5415_v53, %v2257_v12  ;;  %1188 = vst.msk [vmem:[%s5255_s3 + $0x58] sm:$0xff] %vm1176_vm4, %v1162_v50  ;;  %v5419_v59 = vmax.f32 %v5418_v36, 0.0  ;;  %v953_v49 = vadd.f32 %v4898_v27, %v952_v52  ;;  %v5431_v38 = vld [vmem:[#allocation20_spill] sm:$0xff]  ;;  %v3084_v53 = vpop.f32.mrb[94].mxu0 }
 0x1a8   :  { %2687 = vst.msk [vmem:[%s5255_s3 + $0x120] sm:$0xff] %vm1176_vm4, %v2329_v62  ;;  %v1139_v35 = vmax.f32 %v5417_v6, %v1089_v19  ;;  %v2120_v3 = vadd.f32 %v4898_v27, %v2119_v31  ;;  %v1092_v33 = vmax.f32 %v958_v29, 0.0  ;;  %v2259_v34 = vmax.f32 %v2125_v16, 0.0  ;;  %v5433_v19 = vld [vmem:[#allocation22_spill] sm:$0xff]  ;;  %v5437_v31 = vld [vmem:[#allocation51_spill] sm:$0xff] }
 0x1a9   :  { %v2306_v10 = vmax.f32 %v5419_v59, %v2256_v5  ;;  %v1165_v9 = vmax.f32 %v5420_v61, %v1140_v45  ;;  %v2332_v13 = vmax.f32 %v5421_v40, %v2307_v8  ;;  %v1091_v51 = vmax.f32 %v953_v49, 0.0  ;;  %v3254_v8 = vpop.f32.mrb[94].mxu1  ;;  %v5435_v29 = vld [vmem:[#allocation50_spill] sm:$0xff]  ;;  %v972_v59 = vpop.f32.mrb[95].mxu0  ;;  %v5439_v49 = vld [vmem:[#allocation45_spill] sm:$0xff] }
 0x1aa   :  { %v1164_v28 = vmax.f32 %v5422_v26, %v1139_v35  ;;  %v2258_v4 = vmax.f32 %v2120_v3, 0.0  ;;  %v5424_v57 = vmax.f32 %v4778_v11, 0.0  ;;  %v5426_v58 = vmax.f32 %v5425_v41, 0.0  ;;  %v5427_v11 = vld [vmem:[#allocation43_spill] sm:$0xff]  ;;  %v5443_v26 = vld [vmem:[#allocation24_spill] sm:$0xff] }
 0x1ab   :  { %v2331_v18 = vmax.f32 %v5423_v2, %v2306_v10  ;;  %1191 = vst.msk [vmem:[%s5255_s3 + $0x70] sm:$0xff] %vm1176_vm4, %v1165_v9  ;;  %2690 = vst.msk [vmem:[%s5255_s3 + $0x138] sm:$0xff] %vm1176_vm4, %v2332_v13  ;;  %v968_v24 = vadd.f32 %v4898_v27, %v3081_v22  ;;  %v2135_v39 = vadd.f32 %v4898_v27, %v3251_v55  ;;  %v5428_v60 = vmax.f32 %v5427_v11, 0.0  ;;  %v2139_v10 = vpop.f32.mrb[95].mxu1  ;;  %v5441_v9 = vld [vmem:[#allocation46_spill] sm:$0xff]  ;;  %v5444_v2 = vld [vmem:[#allocation25_spill] sm:$0xff] }
 0x1ac   :  { %v1142_v23 = vmax.f32 %v5424_v57, %v1092_v33  ;;  %v2309_v21 = vmax.f32 %v5426_v58, %v2259_v34  ;;  %1190 = vst.msk [vmem:[%s5255_s3 + $0x68] sm:$0xff] %vm1176_vm4, %v1164_v28  ;;  %v5430_v14 = vmax.f32 %v5429_v32, 0.0  ;;  %v963_v56 = vadd.f32 %v4898_v27, %v962_v15  ;;  %v5445_v22 = vld [vmem:[#allocation26_spill] sm:$0xff]  ;;  %v5446_v57 = vld [vmem:[#allocation27_spill] sm:$0xff] }
 0x1ad   :  { %2689 = vst.msk [vmem:[%s5255_s3 + $0x130] sm:$0xff] %vm1176_vm4, %v2331_v18  ;;  %v1141_v30 = vmax.f32 %v5428_v60, %v1091_v51  ;;  %v2130_v20 = vadd.f32 %v4898_v27, %v2129_v37  ;;  %v1094_v48 = vmax.f32 %v968_v24, 0.0  ;;  %v2261_v62 = vmax.f32 %v2135_v39, 0.0  ;;  %v3257_v24 = vpop.f32.mrb[96].mxu1  ;;  %v5447_v39 = vld [vmem:[#allocation54_spill] sm:$0xff]  ;;  %v5449_v11 = vld [vmem:[#allocation55_spill] sm:$0xff] }
 0x1ae   :  { %v2308_v46 = vmax.f32 %v5430_v14, %v2258_v4  ;;  %v1167_v12 = vmax.f32 %v5431_v38, %v1142_v23  ;;  %v2334_v50 = vmax.f32 %v5432_v47, %v2309_v21  ;;  %v1093_v42 = vmax.f32 %v963_v56, 0.0  ;;  %v3087_v21 = vpop.f32.mrb[96].mxu0  ;;  %v2149_v56 = vpop.f32.mrb[97].mxu1  ;;  %v5453_v47 = vld [vmem:[#allocation49_spill] sm:$0xff] }
 0x1af   :  { %v1166_v5 = vmax.f32 %v5433_v19, %v1141_v30  ;;  %v2260_v45 = vmax.f32 %v2130_v20, 0.0  ;;  %v5436_v16 = vmax.f32 %v5435_v29, 0.0  ;;  %v5438_v63 = vmax.f32 %v5437_v31, 0.0  ;;  %v5451_v20 = vld [vmem:[#allocation48_spill] sm:$0xff] }
 0x1b0   :  { %v2333_v7 = vmax.f32 %v5434_v43, %v2308_v46  ;;  %1193 = vst.msk [vmem:[%s5255_s3 + $0x80] sm:$0xff] %vm1176_vm4, %v1167_v12  ;;  %2692 = vst.msk [vmem:[%s5255_s3 + $0x148] sm:$0xff] %vm1176_vm4, %v2334_v50  ;;  %v978_v35 = vadd.f32 %v4898_v27, %v3084_v53  ;;  %v2145_v36 = vadd.f32 %v4898_v27, %v3254_v8  ;;  %v5440_v3 = vmax.f32 %v5439_v49, 0.0  ;;  %v982_v46 = vpop.f32.mrb[97].mxu0  ;;  %v5457_v8 = vld [vmem:[#allocation30_spill] sm:$0xff] }
 0x1b1   :  { %v1144_v52 = vmax.f32 %v5436_v16, %v1094_v48  ;;  %v2311_v6 = vmax.f32 %v5438_v63, %v2261_v62  ;;  %1192 = vst.msk [vmem:[%s5255_s3 + $0x78] sm:$0xff] %vm1176_vm4, %v1166_v5  ;;  %v5442_v40 = vmax.f32 %v5441_v9, 0.0  ;;  %v973_v33 = vadd.f32 %v4898_v27, %v972_v59  ;;  %v5455_v5 = vld [vmem:[#allocation28_spill] sm:$0xff]  ;;  %v5458_v16 = vld [vmem:[#allocation31_spill] sm:$0xff] }
 0x1b2   :  { %2691 = vst.msk [vmem:[%s5255_s3 + $0x140] sm:$0xff] %vm1176_vm4, %v2333_v7  ;;  %v1143_v61 = vmax.f32 %v5440_v3, %v1093_v42  ;;  %v2140_v34 = vadd.f32 %v4898_v27, %v2139_v10  ;;  %v1096_v51 = vmax.f32 %v978_v35, 0.0  ;;  %v2263_v4 = vmax.f32 %v2145_v36, 0.0  ;;  %v5456_v7 = vld [vmem:[#allocation29_spill] sm:$0xff]  ;;  %v3260_v35 = vpop.f32.mrb[98].mxu1 }
 0x1b3   :  { %v2310_v13 = vmax.f32 %v5442_v40, %v2260_v45  ;;  %v1169_v28 = vmax.f32 %v5443_v26, %v1144_v52  ;;  %v2336_v18 = vmax.f32 %v5444_v2, %v2311_v6  ;;  %v1095_v41 = vmax.f32 %v973_v33, 0.0  ;;  %v3090_v6 = vpop.f32.mrb[98].mxu0  ;;  %v2159_v9 = vpop.f32.mrb[99].mxu1 }
 0x1b4   :  { %v1168_v55 = vmax.f32 %v5445_v22, %v1143_v61  ;;  %v2262_v58 = vmax.f32 %v2140_v34, 0.0  ;;  %v5448_v15 = vmax.f32 %v5447_v39, 0.0  ;;  %v5450_v60 = vmax.f32 %v5449_v11, 0.0  ;;  %v992_v61 = vpop.f32.mrb[99].mxu0 }
 0x1b5   :  { %v2335_v23 = vmax.f32 %v5446_v57, %v2310_v13  ;;  %1195 = vst.msk [vmem:[%s5255_s3 + $0x90] sm:$0xff] %vm1176_vm4, %v1169_v28  ;;  %2694 = vst.msk [vmem:[%s5255_s3 + $0x158] sm:$0xff] %vm1176_vm4, %v2336_v18  ;;  %v988_v32 = vadd.f32 %v4898_v27, %v3087_v21  ;;  %v2155_v14 = vadd.f32 %v4898_v27, %v3257_v24  ;;  %v5452_v38 = vmax.f32 %v5451_v20, 0.0  ;;  %v5464_v28 = vld [vmem:[#allocation4_spill] sm:$0xff]  ;;  %v5465_v18 = vld [vmem:[#allocation2_spill] sm:$0xff] }
 0x1b6   :  { %v1146_v37 = vmax.f32 %v5448_v15, %v1096_v51  ;;  %v2313_v30 = vmax.f32 %v5450_v60, %v2263_v4  ;;  %1194 = vst.msk [vmem:[%s5255_s3 + $0x88] sm:$0xff] %vm1176_vm4, %v1168_v55  ;;  %v5454_v50 = vmax.f32 %v5453_v47, 0.0  ;;  %v983_v62 = vadd.f32 %v4898_v27, %v982_v46  ;;  %v5466_v55 = vld [vmem:[#allocation3_spill] sm:$0xff]  ;;  %v5469_v15 = vld [vmem:[#allocation56_spill] sm:$0xff]  ;;  %v5471_v60 = vld [vmem:[#allocation57_spill] sm:$0xff] }
 0x1b7   :  { %2693 = vst.msk [vmem:[%s5255_s3 + $0x150] sm:$0xff] %vm1176_vm4, %v2335_v23  ;;  %v1145_v12 = vmax.f32 %v5452_v38, %v1095_v41  ;;  %v2150_v19 = vadd.f32 %v4898_v27, %v2149_v56  ;;  %v1098_v45 = vmax.f32 %v988_v32, 0.0  ;;  %v2265_v53 = vmax.f32 %v2155_v14, 0.0  ;;  %v5467_v23 = vld [vmem:[#allocation32_spill] sm:$0xff]  ;;  %v5475_v46 = vld [vmem:[#allocation35_spill] sm:$0xff] }
 0x1b8   :  { %v2312_v48 = vmax.f32 %v5454_v50, %v2262_v58  ;;  %v1171_v43 = vmax.f32 %v5455_v5, %v1146_v37  ;;  %v2338_v42 = vmax.f32 %v5456_v7, %v2313_v30  ;;  %v1097_v31 = vmax.f32 %v983_v62, 0.0  ;;  %v5476_v20 = vld [vmem:[#allocation36_spill] sm:$0xff] }
 0x1b9   :  { %v1170_v29 = vmax.f32 %v5457_v8, %v1145_v12  ;;  %v2264_v63 = vmax.f32 %v2150_v19, 0.0  ;;  %v5459_v36 = vmax.f32 %v4830_v44, 0.0  ;;  %v2315_v10 = vmax.f32 %v2240_v1, %v2265_v53  ;;  %v5460_v44 = vld [vmem:[#allocation52_spill] sm:$0xff]  ;;  %v5462_v1 = vld [vmem:[#allocation53_spill] sm:$0xff] }
 0x1ba   :  { %v2337_v52 = vmax.f32 %v5458_v16, %v2312_v48  ;;  %1197 = vst.msk [vmem:[%s5255_s3 + $0xa0] sm:$0xff] %vm1176_vm4, %v1171_v43  ;;  %2696 = vst.msk [vmem:[%s5255_s3 + $0x168] sm:$0xff] %vm1176_vm4, %v2338_v42  ;;  %v998_v49 = vadd.f32 %v4898_v27, %v3090_v6  ;;  %v2165_v3 = vadd.f32 %v4898_v27, %v3260_v35  ;;  %v5461_v40 = vmax.f32 %v5460_v44, 0.0 }
 0x1bb   :  { %v1148_v59 = vmax.f32 %v5459_v36, %v1098_v45  ;;  %1196 = vst.msk [vmem:[%s5255_s3 + $0x98] sm:$0xff] %vm1176_vm4, %v1170_v29  ;;  %v5463_v13 = vmax.f32 %v5462_v1, 0.0  ;;  %v993_v34 = vadd.f32 %v4898_v27, %v992_v61  ;;  %v2160_v26 = vadd.f32 %v4898_v27, %v2159_v9 }
 0x1bc   :  { %2695 = vst.msk [vmem:[%s5255_s3 + $0x160] sm:$0xff] %vm1176_vm4, %v2337_v52  ;;  %v1147_v0 = vmax.f32 %v5461_v40, %v1097_v31  ;;  %v2340_v51 = vmax.f32 %v5465_v18, %v2315_v10  ;;  %v1100_v4 = vmax.f32 %v998_v49, 0.0  ;;  %v2267_v22 = vmax.f32 %v2165_v3, 0.0 }
 0x1bd   :  { %v2314_v33 = vmax.f32 %v5463_v13, %v2264_v63  ;;  %v1173_v2 = vmax.f32 %v5464_v28, %v1148_v59  ;;  %v1099_v58 = vmax.f32 %v993_v34, 0.0  ;;  %v2266_v21 = vmax.f32 %v2160_v26, 0.0 }
 0x1be   :  { %v1172_v57 = vmax.f32 %v5466_v55, %v1147_v0  ;;  %2698 = vst.msk [vmem:[%s5255_s3 + $0x178] sm:$0xff] %vm1176_vm4, %v2340_v51  ;;  %v1150_v27 = vmax.f32 %v1075_v17, %v1100_v4  ;;  %v5468_v24 = vmax.f32 %v4843_v25, 0.0  ;;  %v5470_v37 = vmax.f32 %v5469_v15, 0.0  ;;  %v5473_v17 = vld [vmem:[#allocation33_spill] sm:$0xff]  ;;  %v5474_v25 = vld [vmem:[#allocation34_spill] sm:$0xff] }
 0x1bf   :  { %v2339_v41 = vmax.f32 %v5467_v23, %v2314_v33  ;;  %1199 = vst.msk [vmem:[%s5255_s3 + $0xb0] sm:$0xff] %vm1176_vm4, %v1173_v2  ;;  %v5472_v30 = vmax.f32 %v5471_v60, 0.0 }
 0x1c0   :  { %v2317_v39 = vmax.f32 %v5468_v24, %v2267_v22  ;;  %1198 = vst.msk [vmem:[%s5255_s3 + $0xa8] sm:$0xff] %vm1176_vm4, %v1172_v57  ;;  %v1149_v11 = vmax.f32 %v5470_v37, %v1099_v58  ;;  %v1175_v32 = vmax.f32 %v5473_v17, %v1150_v27 }
 0x1c1   :  { %2697 = vst.msk [vmem:[%s5255_s3 + $0x170] sm:$0xff] %vm1176_vm4, %v2339_v41  ;;  %v2316_v54 = vmax.f32 %v5472_v30, %v2266_v21 }
 0x1c2   :  { %v2342_v14 = vmax.f32 %v5474_v25, %v2317_v39  ;;  %v1174_v56 = vmax.f32 %v5475_v46, %v1149_v11  ;;  %1201 = vst.msk [vmem:[%s5255_s3 + $0xc0] sm:$0xff] %vm1176_vm4, %v1175_v32 }
 0x1c3   :  { %v2341_v38 = vmax.f32 %v5476_v20, %v2316_v54 }
 0x1c4   :  { %2700 = vst.msk [vmem:[%s5255_s3 + $0x188] sm:$0xff] %vm1176_vm4, %v2342_v14  ;;  %1200 = vst.msk [vmem:[%s5255_s3 + $0xb8] sm:$0xff] %vm1176_vm4, %v1174_v56 }
 0x1c5   :  { %2699 = vst.msk [vmem:[%s5255_s3 + $0x180] sm:$0xff] %vm1176_vm4, %v2341_v38 }

// kernel: simplenet_forward.4
= control target key start
LH: loop header
LB: loop body
LE: loop exit
PB: predicated region body
PF: predicated region fallthrough
CT: control target
= control target key end

     0   :  { %v693_v0 = vmov 0.0|0.0   ;;  %vm72_vm0 = vcmask 179200   ;;  %v694_v30 = vmov 0.0   ;;  %vm121_vm1 = vcmask 1045504   ;;  %s1107_s1 = inlined_call_operand.vmem [shape: f32[150,16], index: 1, kind: input, shape index: {}]   ;;  %s1108_s0 = inlined_call_operand.vmem [shape: f32[2,128,150], index: 0, kind: input, shape index: {}]   ;;  %s1109_s2 = inlined_call_operand.vmem [shape: f32[1,16], index: 2, kind: input, shape index: {}]   ;;  %s1110_s3 = inlined_call_operand.vmem [shape: f32[2,32,16], index: 3, kind: output, shape index: {}]  }
   0x1   :  { %637 = vmatprep.subr.bf16.mxu0 %v693_v0  ;;  %664 = vmatprep.subr.bf16.mxu1 %v693_v0  ;;  %v14_v1 = vld [vmem:[%s1107_s1] sm:$0xff]  ;;  %v15_v2 = vld [vmem:[%s1107_s1 + $0x8] sm:$0xff]  ;;  %v16_v3 = vld [vmem:[%s1107_s1 + $0x10] sm:$0xff]  ;;  %vm298_vm2 = vcmask 130048  }
   0x2   :  { %v638_v4 = vpack.c.bf16 %v15_v2, %v14_v1  ;;  %v17_v5 = vld [vmem:[%s1107_s1 + $0x18] sm:$0xff]  ;;  %v18_v7 = vld [vmem:[%s1107_s1 + $0x20] sm:$0xff]  ;;  %v19_v8 = vld [vmem:[%s1107_s1 + $0x28] sm:$0xff] }
   0x3   :  { %v641_v6 = vpack.c.bf16 %v17_v5, %v16_v3  ;;  %v35_v9 = vld [vmem:[%s1108_s0 + $0x8] sm:$0xff]  ;;  %v644_v11 = vpack.c.bf16 %v19_v8, %v18_v7  ;;  %v20_v12 = vld [vmem:[%s1107_s1 + $0x30] sm:$0xff]  ;;  %v21_v13 = vld [vmem:[%s1107_s1 + $0x38] sm:$0xff] }
   0x4   :  { %639 = vmatpush1.bf16.msra.mxu0 %v638_v4  ;;  %666 = vmatpush1.bf16.msra.mxu1 %v638_v4  ;;  %v585_v10 = vld [vmem:[%s1108_s0 + $0x108] sm:$0xff]  ;;  %v647_v14 = vpack.c.bf16 %v21_v13, %v20_v12  ;;  %v22_v15 = vld [vmem:[%s1107_s1 + $0x40] sm:$0xff]  ;;  %v24_v18 = vld [vmem:[%s1107_s1 + $0x50] sm:$0xff] }
   0x5   :  { %640 = vmatprep.subr.bf16.mxu0 %v693_v0  ;;  %667 = vmatprep.subr.bf16.mxu1 %v693_v0  ;;  %v23_v16 = vld [vmem:[%s1107_s1 + $0x48] sm:$0xff]  ;;  %v25_v19 = vld [vmem:[%s1107_s1 + $0x58] sm:$0xff]  ;;  %v26_v21 = vld [vmem:[%s1107_s1 + $0x60] sm:$0xff] }
   0x6   :  { %568 = vmatprep.mubr.msk.f32.mxu0 %vm72_vm0, %v35_v9  ;;  %617 = vmatprep.mubr.msk.f32.mxu1 %vm72_vm0, %v585_v10  ;;  %v650_v17 = vpack.c.bf16 %v23_v16, %v22_v15  ;;  %v653_v20 = vpack.c.bf16 %v25_v19, %v24_v18  ;;  %v27_v22 = vld [vmem:[%s1107_s1 + $0x68] sm:$0xff]  ;;  %v28_v24 = vld [vmem:[%s1107_s1 + $0x70] sm:$0xff]  ;;  %v29_v25 = vld [vmem:[%s1107_s1 + $0x78] sm:$0xff] }
   0x7   :  { %v656_v23 = vpack.c.bf16 %v27_v22, %v26_v21  ;;  %v659_v26 = vpack.c.bf16 %v29_v25, %v28_v24  ;;  %v30_v27 = vld [vmem:[%s1107_s1 + $0x80] sm:$0xff]  ;;  %v31_v28 = vld [vmem:[%s1107_s1 + $0x88] sm:$0xff]  ;;  %v32_v31 = vld [vmem:[%s1107_s1 + $0x90] sm:$0x3f] }
   0x8   :  { %642 = vmatpush1.bf16.msra.mxu0 %v641_v6  ;;  %669 = vmatpush1.bf16.msra.mxu1 %v641_v6  ;;  %v662_v29 = vpack.c.bf16 %v31_v28, %v30_v27  ;;  %v34_v32 = vld [vmem:[%s1108_s0] sm:$0xff]  ;;  %v37_v34 = vld [vmem:[%s1108_s0 + $0x18] sm:$0xff]  ;;  %v36_v36 = vld [vmem:[%s1108_s0 + $0x10] sm:$0xff] }
   0x9   :  { %643 = vmatprep.subr.bf16.mxu0 %v693_v0  ;;  %670 = vmatprep.subr.bf16.mxu1 %v693_v0  ;;  %v584_v33 = vld [vmem:[%s1108_s0 + $0x100] sm:$0xff]  ;;  %v587_v35 = vld [vmem:[%s1108_s0 + $0x118] sm:$0xff]  ;;  %v586_v37 = vld [vmem:[%s1108_s0 + $0x110] sm:$0xff] }
   0xa   :  { %v39_v38 = vld [vmem:[%s1108_s0 + $0x28] sm:$0xff]  ;;  %v38_v40 = vld [vmem:[%s1108_s0 + $0x20] sm:$0xff]  ;;  %v41_v42 = vld [vmem:[%s1108_s0 + $0x38] sm:$0xff] }
   0xb   :  { %v589_v39 = vld [vmem:[%s1108_s0 + $0x128] sm:$0xff]  ;;  %v588_v41 = vld [vmem:[%s1108_s0 + $0x120] sm:$0xff]  ;;  %v591_v43 = vld [vmem:[%s1108_s0 + $0x138] sm:$0xff] }
   0xc   :  { %645 = vmatpush1.bf16.msra.mxu0 %v644_v11  ;;  %672 = vmatpush1.bf16.msra.mxu1 %v644_v11  ;;  %v40_v44 = vld [vmem:[%s1108_s0 + $0x30] sm:$0xff]  ;;  %v43_v46 = vld [vmem:[%s1108_s0 + $0x48] sm:$0xff]  ;;  %v42_v48 = vld [vmem:[%s1108_s0 + $0x40] sm:$0xff] }
   0xd   :  { %646 = vmatprep.subr.bf16.mxu0 %v693_v0  ;;  %673 = vmatprep.subr.bf16.mxu1 %v693_v0  ;;  %v590_v45 = vld [vmem:[%s1108_s0 + $0x130] sm:$0xff]  ;;  %v593_v47 = vld [vmem:[%s1108_s0 + $0x148] sm:$0xff]  ;;  %v592_v49 = vld [vmem:[%s1108_s0 + $0x140] sm:$0xff] }
   0xe   :  { %v45_v50 = vld [vmem:[%s1108_s0 + $0x58] sm:$0xff]  ;;  %v44_v52 = vld [vmem:[%s1108_s0 + $0x50] sm:$0xff]  ;;  %v47_v54 = vld [vmem:[%s1108_s0 + $0x68] sm:$0xff] }
   0xf   :  { %v595_v51 = vld [vmem:[%s1108_s0 + $0x158] sm:$0xff]  ;;  %v594_v53 = vld [vmem:[%s1108_s0 + $0x150] sm:$0xff]  ;;  %v597_v55 = vld [vmem:[%s1108_s0 + $0x168] sm:$0xff] }
  0x10   :  { %648 = vmatpush1.bf16.msra.mxu0 %v647_v14  ;;  %675 = vmatpush1.bf16.msra.mxu1 %v647_v14  ;;  %v46_v56 = vld [vmem:[%s1108_s0 + $0x60] sm:$0xff]  ;;  %v49_v58 = vld [vmem:[%s1108_s0 + $0x78] sm:$0xff]  ;;  %v48_v60 = vld [vmem:[%s1108_s0 + $0x70] sm:$0xff] }
  0x11   :  { %649 = vmatprep.subr.bf16.mxu0 %v693_v0  ;;  %676 = vmatprep.subr.bf16.mxu1 %v693_v0  ;;  %v596_v57 = vld [vmem:[%s1108_s0 + $0x160] sm:$0xff]  ;;  %v599_v59 = vld [vmem:[%s1108_s0 + $0x178] sm:$0xff]  ;;  %v598_v61 = vld [vmem:[%s1108_s0 + $0x170] sm:$0xff] }
  0x12   :  { %v51_v62 = vld [vmem:[%s1108_s0 + $0x88] sm:$0xff]  ;;  %v600_v1 = vld [vmem:[%s1108_s0 + $0x180] sm:$0xff]  ;;  %v53_v2 = vld [vmem:[%s1108_s0 + $0x98] sm:$0xff] }
  0x13   :  { %v601_v63 = vld [vmem:[%s1108_s0 + $0x188] sm:$0xff]  ;;  %v603_v3 = vld [vmem:[%s1108_s0 + $0x198] sm:$0xff]  ;;  %v52_v4 = vld [vmem:[%s1108_s0 + $0x90] sm:$0xff] }
  0x14   :  { %651 = vmatpush1.bf16.msra.mxu0 %v650_v17  ;;  %678 = vmatpush1.bf16.msra.mxu1 %v650_v17  ;;  %v602_v5 = vld [vmem:[%s1108_s0 + $0x190] sm:$0xff]  ;;  %v55_v6 = vld [vmem:[%s1108_s0 + $0xa8] sm:$0xff]  ;;  %v54_v8 = vld [vmem:[%s1108_s0 + $0xa0] sm:$0xff] }
  0x15   :  { %652 = vmatprep.subr.bf16.mxu0 %v693_v0  ;;  %679 = vmatprep.subr.bf16.mxu1 %v693_v0  ;;  %v605_v7 = vld [vmem:[%s1108_s0 + $0x1a8] sm:$0xff]  ;;  %v604_v9 = vld [vmem:[%s1108_s0 + $0x1a0] sm:$0xff]  ;;  %v57_v10 = vld [vmem:[%s1108_s0 + $0xb8] sm:$0xff] }
  0x16   :  { %v607_v11 = vld [vmem:[%s1108_s0 + $0x1b8] sm:$0xff]  ;;  %v56_v12 = vld [vmem:[%s1108_s0 + $0xb0] sm:$0xff]  ;;  %v59_v14 = vld [vmem:[%s1108_s0 + $0xc8] sm:$0xff] }
  0x17   :  { %v606_v13 = vld [vmem:[%s1108_s0 + $0x1b0] sm:$0xff]  ;;  %v609_v15 = vld [vmem:[%s1108_s0 + $0x1c8] sm:$0xff]  ;;  %v58_v16 = vld [vmem:[%s1108_s0 + $0xc0] sm:$0xff] }
  0x18   :  { %654 = vmatpush1.bf16.msra.mxu0 %v653_v20  ;;  %681 = vmatpush1.bf16.msra.mxu1 %v653_v20  ;;  %v608_v17 = vld [vmem:[%s1108_s0 + $0x1c0] sm:$0xff]  ;;  %v61_v18 = vld [vmem:[%s1108_s0 + $0xd8] sm:$0xff]  ;;  %v60_v20 = vld [vmem:[%s1108_s0 + $0xd0] sm:$0xff] }
  0x19   :  { %655 = vmatprep.subr.bf16.mxu0 %v693_v0  ;;  %682 = vmatprep.subr.bf16.mxu1 %v693_v0  ;;  %v611_v19 = vld [vmem:[%s1108_s0 + $0x1d8] sm:$0xff]  ;;  %v610_v21 = vld [vmem:[%s1108_s0 + $0x1d0] sm:$0xff]  ;;  %v63_v22 = vld [vmem:[%s1108_s0 + $0xe8] sm:$0xff] }
  0x1a   :  { %v62_v24 = vld [vmem:[%s1108_s0 + $0xe0] sm:$0xff]  ;;  %v615_v27 = vld [vmem:[%s1108_s0 + $0x1f8] sm:$0xff]  ;;  %v64_v28 = vld [vmem:[%s1108_s0 + $0xf0] sm:$0xff] }
  0x1b   :  { %v612_v25 = vld [vmem:[%s1108_s0 + $0x1e0] sm:$0xff] }
  0x1c   :  { %657 = vmatpush1.bf16.msra.mxu0 %v656_v23  ;;  %684 = vmatpush1.bf16.msra.mxu1 %v656_v23  ;;  %v613_v23 = vld [vmem:[%s1108_s0 + $0x1e8] sm:$0xff] }
  0x1d   :  { %658 = vmatprep.subr.bf16.mxu0 %v693_v0  ;;  %685 = vmatprep.subr.bf16.mxu1 %v693_v0 }
  0x20   :  { %660 = vmatpush1.bf16.msra.mxu0 %v659_v26  ;;  %687 = vmatpush1.bf16.msra.mxu1 %v659_v26  ;;  %v65_v26 = vld [vmem:[%s1108_s0 + $0xf8] sm:$0xff] }
  0x21   :  { %661 = vmatprep.subr.bf16.mxu0 %v693_v0  ;;  %688 = vmatprep.subr.bf16.mxu1 %v693_v0  ;;  %v50_v0 = vld [vmem:[%s1108_s0 + $0x80] sm:$0xff] }
  0x24   :  { %663 = vmatpush1.bf16.msra.mxu0 %v662_v29  ;;  %690 = vmatpush1.bf16.msra.mxu1 %v662_v29  ;;  %v614_v29 = vld [vmem:[%s1108_s0 + $0x1f0] sm:$0xff] }
  0x25   :  { %161 = vmatprep.subr.mxu0 %v694_v30  ;;  %420 = vmatprep.subr.mxu1 %v694_v30 }
  0x28   :  { %567 = vmatpush1.msk.msra.mxu0 %vm121_vm1, %v32_v31  ;;  %616 = vmatpush1.msk.msra.mxu1 %vm121_vm1, %v32_v31 }
  0x29   :  { %190 = vmatmul.mubr.f32.vlgmr.msra.gmra.mrb[0].mxu0 %v34_v32  ;;  %449 = vmatmul.mubr.f32.vlgmr.msra.gmra.mrb[0].mxu1 %v584_v33 }
  0x2a   :  { %569 = vmatprep.mubr.msk.f32.mxu0 %vm72_vm0, %v37_v34  ;;  %618 = vmatprep.mubr.msk.f32.mxu1 %vm72_vm0, %v587_v35 }
  0x2d   :  { %195 = vmatmul.mubr.f32.gmra.mrb[2].mxu0 %v36_v36  ;;  %454 = vmatmul.mubr.f32.gmra.mrb[2].mxu1 %v586_v37 }
  0x2e   :  { %570 = vmatprep.mubr.msk.f32.mxu0 %vm72_vm0, %v39_v38  ;;  %619 = vmatprep.mubr.msk.f32.mxu1 %vm72_vm0, %v589_v39 }
  0x31   :  { %200 = vmatmul.mubr.f32.gmra.mrb[4].mxu0 %v38_v40  ;;  %459 = vmatmul.mubr.f32.gmra.mrb[4].mxu1 %v588_v41 }
  0x32   :  { %571 = vmatprep.mubr.msk.f32.mxu0 %vm72_vm0, %v41_v42  ;;  %620 = vmatprep.mubr.msk.f32.mxu1 %vm72_vm0, %v591_v43  ;;  %v1017_v42 = vld [vmem:[%s1109_s2] ss:$0 sm:$0xff] }
  0x35   :  { %205 = vmatmul.mubr.f32.gmra.mrb[6].mxu0 %v40_v44  ;;  %464 = vmatmul.mubr.f32.gmra.mrb[6].mxu1 %v590_v45 }
  0x36   :  { %572 = vmatprep.mubr.msk.f32.mxu0 %vm72_vm0, %v43_v46  ;;  %621 = vmatprep.mubr.msk.f32.mxu1 %vm72_vm0, %v593_v47 }
  0x39   :  { %210 = vmatmul.mubr.f32.gmra.mrb[8].mxu0 %v42_v48  ;;  %469 = vmatmul.mubr.f32.gmra.mrb[8].mxu1 %v592_v49 }
  0x3a   :  { %573 = vmatprep.mubr.msk.f32.mxu0 %vm72_vm0, %v45_v50  ;;  %622 = vmatprep.mubr.msk.f32.mxu1 %vm72_vm0, %v595_v51 }
  0x3d   :  { %215 = vmatmul.mubr.f32.gmra.mrb[10].mxu0 %v44_v52  ;;  %474 = vmatmul.mubr.f32.gmra.mrb[10].mxu1 %v594_v53 }
  0x3e   :  { %574 = vmatprep.mubr.msk.f32.mxu0 %vm72_vm0, %v47_v54  ;;  %623 = vmatprep.mubr.msk.f32.mxu1 %vm72_vm0, %v597_v55 }
  0x41   :  { %220 = vmatmul.mubr.f32.gmra.mrb[12].mxu0 %v46_v56  ;;  %479 = vmatmul.mubr.f32.gmra.mrb[12].mxu1 %v596_v57 }
  0x42   :  { %575 = vmatprep.mubr.msk.f32.mxu0 %vm72_vm0, %v49_v58  ;;  %624 = vmatprep.mubr.msk.f32.mxu1 %vm72_vm0, %v599_v59 }
  0x45   :  { %225 = vmatmul.mubr.f32.gmra.mrb[14].mxu0 %v48_v60  ;;  %484 = vmatmul.mubr.f32.gmra.mrb[14].mxu1 %v598_v61 }
  0x46   :  { %576 = vmatprep.mubr.msk.f32.mxu0 %vm72_vm0, %v51_v62  ;;  %625 = vmatprep.mubr.msk.f32.mxu1 %vm72_vm0, %v601_v63 }
  0x49   :  { %230 = vmatmul.mubr.f32.gmra.mrb[16].mxu0 %v50_v0  ;;  %489 = vmatmul.mubr.f32.gmra.mrb[16].mxu1 %v600_v1 }
  0x4a   :  { %577 = vmatprep.mubr.msk.f32.mxu0 %vm72_vm0, %v53_v2  ;;  %626 = vmatprep.mubr.msk.f32.mxu1 %vm72_vm0, %v603_v3 }
  0x4d   :  { %235 = vmatmul.mubr.f32.gmra.mrb[18].mxu0 %v52_v4  ;;  %494 = vmatmul.mubr.f32.gmra.mrb[18].mxu1 %v602_v5 }
  0x4e   :  { %578 = vmatprep.mubr.msk.f32.mxu0 %vm72_vm0, %v55_v6  ;;  %627 = vmatprep.mubr.msk.f32.mxu1 %vm72_vm0, %v605_v7 }
  0x51   :  { %240 = vmatmul.mubr.f32.gmra.mrb[20].mxu0 %v54_v8  ;;  %499 = vmatmul.mubr.f32.gmra.mrb[20].mxu1 %v604_v9 }
  0x52   :  { %579 = vmatprep.mubr.msk.f32.mxu0 %vm72_vm0, %v57_v10  ;;  %628 = vmatprep.mubr.msk.f32.mxu1 %vm72_vm0, %v607_v11 }
  0x55   :  { %245 = vmatmul.mubr.f32.gmra.mrb[22].mxu0 %v56_v12  ;;  %504 = vmatmul.mubr.f32.gmra.mrb[22].mxu1 %v606_v13 }
  0x56   :  { %580 = vmatprep.mubr.msk.f32.mxu0 %vm72_vm0, %v59_v14  ;;  %629 = vmatprep.mubr.msk.f32.mxu1 %vm72_vm0, %v609_v15 }
  0x59   :  { %250 = vmatmul.mubr.f32.gmra.mrb[24].mxu0 %v58_v16  ;;  %509 = vmatmul.mubr.f32.gmra.mrb[24].mxu1 %v608_v17 }
  0x5a   :  { %581 = vmatprep.mubr.msk.f32.mxu0 %vm72_vm0, %v61_v18  ;;  %630 = vmatprep.mubr.msk.f32.mxu1 %vm72_vm0, %v611_v19 }
  0x5d   :  { %255 = vmatmul.mubr.f32.gmra.mrb[26].mxu0 %v60_v20  ;;  %514 = vmatmul.mubr.f32.gmra.mrb[26].mxu1 %v610_v21 }
  0x5e   :  { %582 = vmatprep.mubr.msk.f32.mxu0 %vm72_vm0, %v63_v22  ;;  %631 = vmatprep.mubr.msk.f32.mxu1 %vm72_vm0, %v613_v23 }
  0x61   :  { %260 = vmatmul.mubr.f32.gmra.mrb[28].mxu0 %v62_v24  ;;  %519 = vmatmul.mubr.f32.gmra.mrb[28].mxu1 %v612_v25 }
  0x62   :  { %583 = vmatprep.mubr.msk.f32.mxu0 %vm72_vm0, %v65_v26  ;;  %632 = vmatprep.mubr.msk.f32.mxu1 %vm72_vm0, %v615_v27 }
  0x65   :  { %265 = vmatmul.mubr.f32.gmra.mrb[30].mxu0 %v64_v28  ;;  %524 = vmatmul.mubr.f32.gmra.mrb[30].mxu1 %v614_v29 }
  0xfc   :  { %v191_v30 = vpop.f32.mrb[0].mxu0  ;;  %v450_v31 = vpop.f32.mrb[0].mxu1 }
  0xfd   :  { %v193_v32 = vpop.f32.mrb[1].mxu0  ;;  %v452_v33 = vpop.f32.mrb[1].mxu1  ;;  %v192_v47 = vadd.f32 %v1017_v42, %v191_v30  ;;  %v451_v48 = vadd.f32 %v1017_v42, %v450_v31 }
  0xff   :  { %v270_v55 = vmax.f32 %v192_v47, 0.0  ;;  %v529_v56 = vmax.f32 %v451_v48, 0.0 }
 0x100   :  { %v196_v34 = vpop.f32.mrb[2].mxu0  ;;  %v455_v35 = vpop.f32.mrb[2].mxu1 }
 0x101   :  { %v198_v36 = vpop.f32.mrb[3].mxu0  ;;  %v457_v37 = vpop.f32.mrb[3].mxu1  ;;  %v197_v57 = vadd.f32 %v1017_v42, %v196_v34  ;;  %v456_v58 = vadd.f32 %v1017_v42, %v455_v35 }
 0x103   :  { %v271_v7 = vmax.f32 %v197_v57, 0.0  ;;  %v530_v8 = vmax.f32 %v456_v58, 0.0 }
 0x104   :  { %v201_v38 = vpop.f32.mrb[4].mxu0  ;;  %v460_v39 = vpop.f32.mrb[4].mxu1 }
 0x105   :  { %v203_v40 = vpop.f32.mrb[5].mxu0  ;;  %v462_v41 = vpop.f32.mrb[5].mxu1  ;;  %v202_v5 = vadd.f32 %v1017_v42, %v201_v38  ;;  %v461_v6 = vadd.f32 %v1017_v42, %v460_v39 }
 0x107   :  { %v272_v19 = vmax.f32 %v202_v5, 0.0  ;;  %v531_v20 = vmax.f32 %v461_v6, 0.0 }
 0x108   :  { %v206_v43 = vpop.f32.mrb[6].mxu0  ;;  %v465_v44 = vpop.f32.mrb[6].mxu1 }
 0x109   :  { %v208_v45 = vpop.f32.mrb[7].mxu0  ;;  %v467_v46 = vpop.f32.mrb[7].mxu1  ;;  %v207_v21 = vadd.f32 %v1017_v42, %v206_v43  ;;  %v466_v22 = vadd.f32 %v1017_v42, %v465_v44 }
 0x10b   :  { %v273_v33 = vmax.f32 %v207_v21, 0.0  ;;  %v532_v34 = vmax.f32 %v466_v22, 0.0 }
 0x10c   :  { %v211_v49 = vpop.f32.mrb[8].mxu0  ;;  %v470_v50 = vpop.f32.mrb[8].mxu1 }
 0x10d   :  { %v212_v51 = vadd.f32 %v1017_v42, %v211_v49  ;;  %v471_v52 = vadd.f32 %v1017_v42, %v470_v50  ;;  %v213_v53 = vpop.f32.mrb[9].mxu0  ;;  %v472_v54 = vpop.f32.mrb[9].mxu1 }
 0x10f   :  { %v274_v59 = vmax.f32 %v212_v51, 0.0  ;;  %v533_v60 = vmax.f32 %v471_v52, 0.0 }
 0x110   :  { %v216_v61 = vpop.f32.mrb[10].mxu0  ;;  %v475_v62 = vpop.f32.mrb[10].mxu1 }
 0x111   :  { %v1025_v63 = vmax.f32 %v270_v55, %v274_v59  ;;  %v1027_v0 = vmax.f32 %v529_v56, %v533_v60  ;;  %v217_v1 = vadd.f32 %v1017_v42, %v216_v61  ;;  %v476_v2 = vadd.f32 %v1017_v42, %v475_v62  ;;  %v218_v3 = vpop.f32.mrb[11].mxu0  ;;  %v477_v4 = vpop.f32.mrb[11].mxu1 }
 0x113   :  { %v275_v9 = vmax.f32 %v217_v1, 0.0  ;;  %v534_v10 = vmax.f32 %v476_v2, 0.0 }
 0x114   :  { %v221_v11 = vpop.f32.mrb[12].mxu0  ;;  %v480_v12 = vpop.f32.mrb[12].mxu1 }
 0x115   :  { %v1033_v13 = vmax.f32 %v271_v7, %v275_v9  ;;  %v1035_v14 = vmax.f32 %v530_v8, %v534_v10  ;;  %v222_v15 = vadd.f32 %v1017_v42, %v221_v11  ;;  %v481_v16 = vadd.f32 %v1017_v42, %v480_v12  ;;  %v223_v17 = vpop.f32.mrb[13].mxu0  ;;  %v482_v18 = vpop.f32.mrb[13].mxu1 }
 0x117   :  { %v276_v23 = vmax.f32 %v222_v15, 0.0  ;;  %v535_v24 = vmax.f32 %v481_v16, 0.0 }
 0x118   :  { %v226_v25 = vpop.f32.mrb[14].mxu0  ;;  %v485_v26 = vpop.f32.mrb[14].mxu1 }
 0x119   :  { %v1041_v27 = vmax.f32 %v272_v19, %v276_v23  ;;  %v1043_v28 = vmax.f32 %v531_v20, %v535_v24  ;;  %v227_v29 = vadd.f32 %v1017_v42, %v226_v25  ;;  %v486_v30 = vadd.f32 %v1017_v42, %v485_v26  ;;  %v228_v31 = vpop.f32.mrb[15].mxu0  ;;  %v487_v32 = vpop.f32.mrb[15].mxu1 }
 0x11b   :  { %v277_v35 = vmax.f32 %v227_v29, 0.0  ;;  %v536_v36 = vmax.f32 %v486_v30, 0.0 }
 0x11c   :  { %v231_v37 = vpop.f32.mrb[16].mxu0  ;;  %v490_v38 = vpop.f32.mrb[16].mxu1 }
 0x11d   :  { %v1047_v39 = vmax.f32 %v273_v33, %v277_v35  ;;  %v1049_v40 = vmax.f32 %v532_v34, %v536_v36  ;;  %v233_v41 = vpop.f32.mrb[17].mxu0  ;;  %v492_v43 = vpop.f32.mrb[17].mxu1  ;;  %v232_v56 = vadd.f32 %v1017_v42, %v231_v37  ;;  %v491_v57 = vadd.f32 %v1017_v42, %v490_v38 }
 0x11f   :  { %v278_v4 = vmax.f32 %v232_v56, 0.0  ;;  %v537_v5 = vmax.f32 %v491_v57, 0.0 }
 0x120   :  { %v236_v44 = vpop.f32.mrb[18].mxu0  ;;  %v495_v45 = vpop.f32.mrb[18].mxu1 }
 0x121   :  { %v238_v46 = vpop.f32.mrb[19].mxu0  ;;  %v497_v47 = vpop.f32.mrb[19].mxu1  ;;  %v237_v2 = vadd.f32 %v1017_v42, %v236_v44  ;;  %v496_v3 = vadd.f32 %v1017_v42, %v495_v45 }
 0x123   :  { %v279_v18 = vmax.f32 %v237_v2, 0.0  ;;  %v538_v19 = vmax.f32 %v496_v3, 0.0 }
 0x124   :  { %v241_v48 = vpop.f32.mrb[20].mxu0  ;;  %v500_v49 = vpop.f32.mrb[20].mxu1 }
 0x125   :  { %v243_v50 = vpop.f32.mrb[21].mxu0  ;;  %v502_v51 = vpop.f32.mrb[21].mxu1  ;;  %v242_v20 = vadd.f32 %v1017_v42, %v241_v48  ;;  %v501_v21 = vadd.f32 %v1017_v42, %v500_v49 }
 0x127   :  { %v280_v34 = vmax.f32 %v242_v20, 0.0  ;;  %v539_v35 = vmax.f32 %v501_v21, 0.0 }
 0x128   :  { %v246_v52 = vpop.f32.mrb[22].mxu0  ;;  %v505_v53 = vpop.f32.mrb[22].mxu1 }
 0x129   :  { %v248_v54 = vpop.f32.mrb[23].mxu0  ;;  %v507_v55 = vpop.f32.mrb[23].mxu1  ;;  %v247_v36 = vadd.f32 %v1017_v42, %v246_v52  ;;  %v506_v37 = vadd.f32 %v1017_v42, %v505_v53 }
 0x12b   :  { %v281_v51 = vmax.f32 %v247_v36, 0.0  ;;  %v540_v52 = vmax.f32 %v506_v37, 0.0 }
 0x12c   :  { %v251_v58 = vpop.f32.mrb[24].mxu0  ;;  %v510_v59 = vpop.f32.mrb[24].mxu1 }
 0x12d   :  { %v252_v60 = vadd.f32 %v1017_v42, %v251_v58  ;;  %v511_v61 = vadd.f32 %v1017_v42, %v510_v59  ;;  %v253_v62 = vpop.f32.mrb[25].mxu0  ;;  %v512_v1 = vpop.f32.mrb[25].mxu1 }
 0x12f   :  { %v282_v6 = vmax.f32 %v252_v60, 0.0  ;;  %v541_v7 = vmax.f32 %v511_v61, 0.0 }
 0x130   :  { %v256_v8 = vpop.f32.mrb[26].mxu0  ;;  %v515_v9 = vpop.f32.mrb[26].mxu1 }
 0x131   :  { %v290_v10 = vmax.f32 %v278_v4, %v282_v6  ;;  %v549_v11 = vmax.f32 %v537_v5, %v541_v7  ;;  %v257_v12 = vadd.f32 %v1017_v42, %v256_v8  ;;  %v516_v15 = vadd.f32 %v1017_v42, %v515_v9  ;;  %v258_v16 = vpop.f32.mrb[27].mxu0  ;;  %v517_v17 = vpop.f32.mrb[27].mxu1 }
 0x133   :  { %v294_v22 = vmax.f32 %v1025_v63, %v290_v10  ;;  %v553_v23 = vmax.f32 %v1027_v0, %v549_v11  ;;  %v283_v24 = vmax.f32 %v257_v12, 0.0  ;;  %v542_v25 = vmax.f32 %v516_v15, 0.0 }
 0x134   :  { %v261_v26 = vpop.f32.mrb[28].mxu0  ;;  %v520_v29 = vpop.f32.mrb[28].mxu1 }
 0x135   :  { %299 = vst.msk [vmem:[%s1110_s3] sm:$0xff] %vm298_vm2, %v294_v22  ;;  %633 = vst.msk [vmem:[%s1110_s3 + $0x20] sm:$0xff] %vm298_vm2, %v553_v23  ;;  %v291_v30 = vmax.f32 %v279_v18, %v283_v24  ;;  %v550_v31 = vmax.f32 %v538_v19, %v542_v25  ;;  %v262_v63 = vadd.f32 %v1017_v42, %v261_v26  ;;  %v263_v32 = vpop.f32.mrb[29].mxu0  ;;  %v522_v33 = vpop.f32.mrb[29].mxu1 }
 0x136   :  { %v521_v0 = vadd.f32 %v1017_v42, %v520_v29 }
 0x137   :  { %v295_v38 = vmax.f32 %v1033_v13, %v291_v30  ;;  %v554_v41 = vmax.f32 %v1035_v14, %v550_v31  ;;  %v284_v43 = vmax.f32 %v262_v63, 0.0 }
 0x138   :  { %v543_v44 = vmax.f32 %v521_v0, 0.0  ;;  %v266_v45 = vpop.f32.mrb[30].mxu0  ;;  %v525_v46 = vpop.f32.mrb[30].mxu1 }
 0x139   :  { %300 = vst.msk [vmem:[%s1110_s3 + $0x8] sm:$0xff] %vm298_vm2, %v295_v38  ;;  %634 = vst.msk [vmem:[%s1110_s3 + $0x28] sm:$0xff] %vm298_vm2, %v554_v41  ;;  %v292_v47 = vmax.f32 %v280_v34, %v284_v43  ;;  %v267_v13 = vadd.f32 %v1017_v42, %v266_v45  ;;  %v526_v14 = vadd.f32 %v1017_v42, %v525_v46  ;;  %v268_v49 = vpop.f32.mrb[31].mxu0  ;;  %v527_v50 = vpop.f32.mrb[31].mxu1 }
 0x13a   :  { %v551_v48 = vmax.f32 %v539_v35, %v543_v44 }
 0x13b   :  { %v296_v53 = vmax.f32 %v1041_v27, %v292_v47  ;;  %v285_v55 = vmax.f32 %v267_v13, 0.0  ;;  %v544_v56 = vmax.f32 %v526_v14, 0.0 }
 0x13c   :  { %v555_v54 = vmax.f32 %v1043_v28, %v551_v48 }
 0x13d   :  { %301 = vst.msk [vmem:[%s1110_s3 + $0x10] sm:$0xff] %vm298_vm2, %v296_v53  ;;  %v293_v42 = vmax.f32 %v281_v51, %v285_v55  ;;  %v552_v57 = vmax.f32 %v540_v52, %v544_v56 }
 0x13e   :  { %635 = vst.msk [vmem:[%s1110_s3 + $0x30] sm:$0xff] %vm298_vm2, %v555_v54 }
 0x13f   :  { %v297_v58 = vmax.f32 %v1047_v39, %v293_v42  ;;  %v556_v27 = vmax.f32 %v1049_v40, %v552_v57 }
 0x141   :  { %302 = vst.msk [vmem:[%s1110_s3 + $0x18] sm:$0xff] %vm298_vm2, %v297_v58  ;;  %636 = vst.msk [vmem:[%s1110_s3 + $0x38] sm:$0xff] %vm298_vm2, %v556_v27 }

// kernel: simplenet_forward.5
= control target key start
LH: loop header
LB: loop body
LE: loop exit
PB: predicated region body
PF: predicated region fallthrough
CT: control target
= control target key end

     0   :  { %v784_v47 = vmov 1983009808   ;;  %v104_v49 = vlaneseq  ;;  %s1157_s0 = inlined_call_operand.vmem [shape: f32[2,512], index: 0, kind: input, shape index: {}]   ;;  %s1158_s1 = inlined_call_operand.vmem [shape: f32[512,128], index: 1, kind: input, shape index: {}]   ;;  %s1159_s2 = inlined_call_operand.vmem [shape: f32[1,128], index: 2, kind: input, shape index: {}]   ;;  %s1160_s3 = inlined_call_operand.vmem [shape: f32[128,128], index: 3, kind: input, shape index: {}]   ;;  %s1161_s4 = inlined_call_operand.vmem [shape: f32[1,128], index: 4, kind: input, shape index: {}]   ;;  %s1162_s5 = inlined_call_operand.vmem [shape: f32[128,16], index: 5, kind: input, shape index: {}]   ;;  %s1163_s6 = inlined_call_operand.vmem [shape: f32[1,16], index: 6, kind: input, shape index: {}]   ;;  %s1164_s7 = inlined_call_operand.hbm [shape: f32[2,16], index: 7, kind: output, shape index: {}]  }
   0x1   :  { %v44_v0 = vld [vmem:[%s1158_s1 + $0x80] sm:$0xff]  ;;  %v45_v1 = vld [vmem:[%s1158_s1 + $0x88] sm:$0xff]  ;;  %v46_v11 = vld [vmem:[%s1158_s1 + $0x90] sm:$0xff]  ;;  %v102_v48 = vunpack.c.l.s4 %v784_v47 }
   0x2   :  { %v28_v2 = vld [vmem:[%s1158_s1] sm:$0xff]  ;;  %v642_v3 = vpack.c.bf16 %v45_v1, %v44_v0  ;;  %v29_v4 = vld [vmem:[%s1158_s1 + $0x8] sm:$0xff]  ;;  %v47_v13 = vld [vmem:[%s1158_s1 + $0x98] sm:$0xff]  ;;  %v105_v0 = vshrl.u32 %v104_v49, 7 }
   0x3   :  { %v76_v5 = vld [vmem:[%s1158_s1 + $0x180] sm:$0xff]  ;;  %v77_v6 = vld [vmem:[%s1158_s1 + $0x188] sm:$0xff]  ;;  %v644_v7 = vpack.c.bf16 %v29_v4, %v28_v2  ;;  %v30_v14 = vld [vmem:[%s1158_s1 + $0x10] sm:$0xff]  ;;  %v646_v16 = vpack.c.bf16 %v47_v13, %v46_v11  ;;  %v103_v63 = vunpack.c.0.s8 %v102_v48 }
   0x4   :  { %v674_v8 = vpack.c.bf16 %v77_v6, %v76_v5  ;;  %v60_v9 = vld [vmem:[%s1158_s1 + $0x100] sm:$0xff]  ;;  %v61_v10 = vld [vmem:[%s1158_s1 + $0x108] sm:$0xff]  ;;  %643 = vmatprep.subr.bf16.mxu0 %v642_v3  ;;  %v31_v15 = vld [vmem:[%s1158_s1 + $0x18] sm:$0xff] }
   0x5   :  { %v676_v12 = vpack.c.bf16 %v61_v10, %v60_v9  ;;  %645 = vmatpush3.bf16.msra.mxu0 %v644_v7  ;;  %v648_v17 = vpack.c.bf16 %v31_v15, %v30_v14  ;;  %v78_v18 = vld [vmem:[%s1158_s1 + $0x190] sm:$0xff]  ;;  %v79_v19 = vld [vmem:[%s1158_s1 + $0x198] sm:$0xff]  ;;  %v48_v23 = vld [vmem:[%s1158_s1 + $0xa0] sm:$0xff]  ;;  %v106_v13 = vsub.s32 %v103_v63, %v105_v0 }
   0x6   :  { %675 = vmatprep.subr.bf16.mxu1 %v674_v8  ;;  %v62_v20 = vld [vmem:[%s1158_s1 + $0x110] sm:$0xff]  ;;  %v678_v21 = vpack.c.bf16 %v79_v19, %v78_v18  ;;  %v63_v22 = vld [vmem:[%s1158_s1 + $0x118] sm:$0xff]  ;;  %v49_v24 = vld [vmem:[%s1158_s1 + $0xa8] sm:$0xff]  ;;  %647 = vmatprep.subr.bf16.mxu0 %v646_v16 }
   0x7   :  { %677 = vmatpush3.bf16.msra.mxu1 %v676_v12  ;;  %v680_v25 = vpack.c.bf16 %v63_v22, %v62_v20  ;;  %v650_v26 = vpack.c.bf16 %v49_v24, %v48_v23  ;;  %v32_v27 = vld [vmem:[%s1158_s1 + $0x20] sm:$0xff]  ;;  %v33_v28 = vld [vmem:[%s1158_s1 + $0x28] sm:$0xff]  ;;  %v50_v35 = vld [vmem:[%s1158_s1 + $0xb0] sm:$0xff] }
   0x8   :  { %v80_v29 = vld [vmem:[%s1158_s1 + $0x1a0] sm:$0xff]  ;;  %679 = vmatprep.subr.bf16.mxu1 %v678_v21  ;;  %v81_v30 = vld [vmem:[%s1158_s1 + $0x1a8] sm:$0xff]  ;;  %v652_v33 = vpack.c.bf16 %v33_v28, %v32_v27  ;;  %v51_v36 = vld [vmem:[%s1158_s1 + $0xb8] sm:$0xff] }
   0x9   :  { %v64_v31 = vld [vmem:[%s1158_s1 + $0x120] sm:$0xff]  ;;  %v65_v32 = vld [vmem:[%s1158_s1 + $0x128] sm:$0xff]  ;;  %649 = vmatpush3.bf16.msra.mxu0 %v648_v17  ;;  %v682_v34 = vpack.c.bf16 %v81_v30, %v80_v29  ;;  %v34_v37 = vld [vmem:[%s1158_s1 + $0x30] sm:$0xff]  ;;  %v654_v39 = vpack.c.bf16 %v51_v36, %v50_v35 }
   0xa   :  { %651 = vmatprep.subr.bf16.mxu0 %v650_v26  ;;  %v684_v38 = vpack.c.bf16 %v65_v32, %v64_v31  ;;  %v35_v40 = vld [vmem:[%s1158_s1 + $0x38] sm:$0xff]  ;;  %v82_v41 = vld [vmem:[%s1158_s1 + $0x1b0] sm:$0xff]  ;;  %v52_v46 = vld [vmem:[%s1158_s1 + $0xc0] sm:$0xff] }
   0xb   :  { %681 = vmatpush3.bf16.msra.mxu1 %v680_v25  ;;  %v83_v42 = vld [vmem:[%s1158_s1 + $0x1b8] sm:$0xff]  ;;  %v66_v44 = vld [vmem:[%s1158_s1 + $0x130] sm:$0xff]  ;;  %v53_v50 = vld [vmem:[%s1158_s1 + $0xc8] sm:$0xff]  ;;  %v656_v51 = vpack.c.bf16 %v35_v40, %v34_v37 }
   0xc   :  { %683 = vmatprep.subr.bf16.mxu1 %v682_v34  ;;  %v686_v43 = vpack.c.bf16 %v83_v42, %v82_v41  ;;  %v67_v45 = vld [vmem:[%s1158_s1 + $0x138] sm:$0xff]  ;;  %v84_v52 = vld [vmem:[%s1158_s1 + $0x1c0] sm:$0xff]  ;;  %v85_v53 = vld [vmem:[%s1158_s1 + $0x1c8] sm:$0xff]  ;;  %v658_v55 = vpack.c.bf16 %v53_v50, %v52_v46 }
   0xd   :  { %653 = vmatpush3.bf16.msra.mxu0 %v652_v33  ;;  %v688_v54 = vpack.c.bf16 %v67_v45, %v66_v44  ;;  %v36_v56 = vld [vmem:[%s1158_s1 + $0x40] sm:$0xff]  ;;  %v37_v57 = vld [vmem:[%s1158_s1 + $0x48] sm:$0xff]  ;;  %v690_v59 = vpack.c.bf16 %v85_v53, %v84_v52  ;;  %v54_v61 = vld [vmem:[%s1158_s1 + $0xd0] sm:$0xff] }
   0xe   :  { %655 = vmatprep.subr.bf16.mxu0 %v654_v39  ;;  %v68_v58 = vld [vmem:[%s1158_s1 + $0x140] sm:$0xff]  ;;  %v69_v60 = vld [vmem:[%s1158_s1 + $0x148] sm:$0xff]  ;;  %v55_v62 = vld [vmem:[%s1158_s1 + $0xd8] sm:$0xff]  ;;  %v660_v3 = vpack.c.bf16 %v37_v57, %v36_v56 }
   0xf   :  { %685 = vmatpush3.bf16.msra.mxu1 %v684_v38  ;;  %v86_v1 = vld [vmem:[%s1158_s1 + $0x1d0] sm:$0xff]  ;;  %v87_v2 = vld [vmem:[%s1158_s1 + $0x1d8] sm:$0xff]  ;;  %v692_v4 = vpack.c.bf16 %v69_v60, %v68_v58  ;;  %v662_v5 = vpack.c.bf16 %v55_v62, %v54_v61  ;;  %v56_v11 = vld [vmem:[%s1158_s1 + $0xe0] sm:$0xff] }
  0x10   :  { %687 = vmatprep.subr.bf16.mxu1 %v686_v43  ;;  %v38_v6 = vld [vmem:[%s1158_s1 + $0x50] sm:$0xff]  ;;  %v39_v7 = vld [vmem:[%s1158_s1 + $0x58] sm:$0xff]  ;;  %v694_v9 = vpack.c.bf16 %v87_v2, %v86_v1  ;;  %v57_v12 = vld [vmem:[%s1158_s1 + $0xe8] sm:$0xff] }
  0x11   :  { %657 = vmatpush3.bf16.msra.mxu0 %v656_v51  ;;  %v70_v8 = vld [vmem:[%s1158_s1 + $0x150] sm:$0xff]  ;;  %v71_v10 = vld [vmem:[%s1158_s1 + $0x158] sm:$0xff]  ;;  %v88_v14 = vld [vmem:[%s1158_s1 + $0x1e0] sm:$0xff]  ;;  %v664_v16 = vpack.c.bf16 %v39_v7, %v38_v6  ;;  %v666_v19 = vpack.c.bf16 %v57_v12, %v56_v11 }
  0x12   :  { %659 = vmatprep.subr.bf16.mxu0 %v658_v55  ;;  %v89_v15 = vld [vmem:[%s1158_s1 + $0x1e8] sm:$0xff]  ;;  %v40_v17 = vld [vmem:[%s1158_s1 + $0x60] sm:$0xff]  ;;  %v696_v18 = vpack.c.bf16 %v71_v10, %v70_v8  ;;  %v58_v25 = vld [vmem:[%s1158_s1 + $0xf0] sm:$0xff] }
  0x13   :  { %689 = vmatpush3.bf16.msra.mxu1 %v688_v54  ;;  %v41_v20 = vld [vmem:[%s1158_s1 + $0x68] sm:$0xff]  ;;  %v72_v21 = vld [vmem:[%s1158_s1 + $0x160] sm:$0xff]  ;;  %v698_v23 = vpack.c.bf16 %v89_v15, %v88_v14  ;;  %v59_v26 = vld [vmem:[%s1158_s1 + $0xf8] sm:$0xff] }
  0x14   :  { %691 = vmatprep.subr.bf16.mxu1 %v690_v59  ;;  %v27_v22 = vld [vmem:[%s1157_s0] sm:$0xff]  ;;  %v73_v24 = vld [vmem:[%s1158_s1 + $0x168] sm:$0xff]  ;;  %v90_v29 = vld [vmem:[%s1158_s1 + $0x1f0] sm:$0xff]  ;;  %v668_v31 = vpack.c.bf16 %v41_v20, %v40_v17  ;;  %v670_v35 = vpack.c.bf16 %v59_v26, %v58_v25 }
  0x15   :  { %661 = vmatpush3.bf16.msra.mxu0 %v660_v3  ;;  %v107_v27 = vrot.slane %v27_v22, %v106_v13  ;;  %v100_v28 = vcombine.high %v27_v22, %v27_v22  ;;  %v91_v30 = vld [vmem:[%s1158_s1 + $0x1f8] sm:$0xff]  ;;  %v700_v34 = vpack.c.bf16 %v73_v24, %v72_v21  ;;  %v42_v36 = vld [vmem:[%s1158_s1 + $0x70] sm:$0xff] }
  0x16   :  { %663 = vmatprep.subr.bf16.mxu0 %v662_v5  ;;  %v43_v37 = vld [vmem:[%s1158_s1 + $0x78] sm:$0xff] }
  0x17   :  { %693 = vmatpush3.bf16.msra.mxu1 %v692_v4  ;;  %v115_v32 = vcombine.high %v107_v27, %v107_v27  ;;  %v114_v33 = vrot.slane %v100_v28, %v106_v13 }
  0x18   :  { %695 = vmatprep.subr.bf16.mxu1 %v694_v9 }
  0x19   :  { %665 = vmatpush3.bf16.msra.mxu0 %v664_v16 }
  0x1a   :  { %667 = vmatprep.subr.bf16.mxu0 %v666_v19 }
  0x1b   :  { %697 = vmatpush3.bf16.msra.mxu1 %v696_v18 }
  0x1c   :  { %12 = vsyncpa [#allocation3], 0  ;;  %699 = vmatprep.subr.bf16.mxu1 %v698_v23  ;;  %v702_v38 = vpack.c.bf16 %v91_v30, %v90_v29  ;;  %v74_v39 = vld [vmem:[%s1158_s1 + $0x170] sm:$0xff]  ;;  %v75_v40 = vld [vmem:[%s1158_s1 + $0x178] sm:$0xff]  ;;  %185 = vmatprep.mubr.f32.mxu0 %v115_v32  ;;  %v116_v41 = vcombine.high %v114_v33, %v114_v33  ;;  %v672_v42 = vpack.c.bf16 %v43_v37, %v42_v36  ;;  %v785_v47 = vmov 0.0|0.0   ;;  %s788_s30 = smov [#allocation2]  }
  0x1d   :  { %669 = vmatpush3.bf16.msra.mxu0 %v668_v31  ;;  %v704_v43 = vpack.c.bf16 %v75_v40, %v74_v39  ;;  %v262_v44 = vld [vmem:[%s1160_s3] sm:$0xff]  ;;  %v263_v45 = vld [vmem:[%s1160_s3 + $0x8] sm:$0xff]  ;;  %v264_v48 = vld [vmem:[%s1160_s3 + $0x10] sm:$0xff]  ;;  %vm786_vm0 = vmmov 0   ;;  %v787_v5 = vmov 0.0   ;;  %s457_s8 = sshll.u32 %s788_s30, 4  ;;  %s458_s8 = int_to_ptr.vmem [resolvable:$true] %s457_s8 }
  0x1e   :  { %255 = vmatprep.mubr.f32.mxu1 %v116_v41  ;;  %671 = vmatprep.subr.bf16.mxu0 %v670_v35  ;;  %v707_v46 = vpack.c.bf16 %v263_v45, %v262_v44  ;;  %v265_v49 = vld [vmem:[%s1160_s3 + $0x18] sm:$0xff]  ;;  %v266_v51 = vld [vmem:[%s1160_s3 + $0x20] sm:$0xff]  ;;  %v267_v52 = vld [vmem:[%s1160_s3 + $0x28] sm:$0xff]  ;;  %vm449_vm1 = vcmask 123904   ;;  %p765_p1 = scmp.lt.s32.totalorder %s458_s8, %s458_s8 }
  0x1f   :  { %701 = vmatpush3.bf16.msra.mxu1 %v700_v34  ;;  %v710_v50 = vpack.c.bf16 %v265_v49, %v264_v48  ;;  %v713_v53 = vpack.c.bf16 %v267_v52, %v266_v51  ;;  %v268_v54 = vld [vmem:[%s1160_s3 + $0x30] sm:$0xff]  ;;  %v269_v55 = vld [vmem:[%s1160_s3 + $0x38] sm:$0xff]  ;;  %v270_v57 = vld [vmem:[%s1160_s3 + $0x40] sm:$0xff] }
  0x20   :  { %703 = vmatprep.subr.bf16.mxu1 %v702_v38  ;;  %v716_v56 = vpack.c.bf16 %v269_v55, %v268_v54  ;;  %v271_v58 = vld [vmem:[%s1160_s3 + $0x48] sm:$0xff]  ;;  %v272_v60 = vld [vmem:[%s1160_s3 + $0x50] sm:$0xff]  ;;  %v273_v61 = vld [vmem:[%s1160_s3 + $0x58] sm:$0xff] }
  0x21   :  { %673 = vmatpush3.bf16.msra.mxu0 %v672_v42  ;;  %v719_v59 = vpack.c.bf16 %v271_v58, %v270_v57  ;;  %v722_v62 = vpack.c.bf16 %v273_v61, %v272_v60  ;;  %v274_v63 = vld [vmem:[%s1160_s3 + $0x60] sm:$0xff]  ;;  %v275_v0 = vld [vmem:[%s1160_s3 + $0x68] sm:$0xff]  ;;  %v276_v2 = vld [vmem:[%s1160_s3 + $0x70] sm:$0xff] }
  0x22   :  { %706 = vmatprep.subr.bf16.mxu0 %v785_v47  ;;  %v725_v1 = vpack.c.bf16 %v275_v0, %v274_v63  ;;  %v277_v3 = vld [vmem:[%s1160_s3 + $0x78] sm:$0xff]  ;;  %v356_v6 = vld [vmem:[%s1162_s5] sm:$0xff]  ;;  %v357_v7 = vld [vmem:[%s1162_s5 + $0x8] sm:$0xff] }
  0x23   :  { %705 = vmatpush3.bf16.msra.mxu1 %v704_v43  ;;  %v728_v4 = vpack.c.bf16 %v277_v3, %v276_v2  ;;  %v358_v8 = vld [vmem:[%s1162_s5 + $0x10] sm:$0xff]  ;;  %v731_v9 = vpack.c.bf16 %v357_v7, %v356_v6  ;;  %v359_v10 = vld [vmem:[%s1162_s5 + $0x18] sm:$0xff]  ;;  %v360_v12 = vld [vmem:[%s1162_s5 + $0x20] sm:$0xff] }
  0x24   :  { %730 = vmatprep.subr.bf16.mxu1 %v785_v47  ;;  %186 = vmatmul.mubr.f32.vlgmr.msra.gmra.mrb[0].mxu0 %v107_v27  ;;  %v734_v11 = vpack.c.bf16 %v359_v10, %v358_v8  ;;  %v361_v13 = vld [vmem:[%s1162_s5 + $0x28] sm:$0xff]  ;;  %v362_v15 = vld [vmem:[%s1162_s5 + $0x30] sm:$0xff]  ;;  %v363_v16 = vld [vmem:[%s1162_s5 + $0x38] sm:$0xff] }
  0x25   :  { %708 = vmatpush3.bf16.msra.mxu0 %v707_v46  ;;  %604 = vmatprep.mubr.msk.f32.mxu0 %vm786_vm0, %v787_v5  ;;  %v737_v14 = vpack.c.bf16 %v361_v13, %v360_v12  ;;  %v740_v17 = vpack.c.bf16 %v363_v16, %v362_v15  ;;  %v364_v18 = vld [vmem:[%s1162_s5 + $0x40] sm:$0xff]  ;;  %v365_v19 = vld [vmem:[%s1162_s5 + $0x48] sm:$0xff]  ;;  %v366_v21 = vld [vmem:[%s1162_s5 + $0x50] sm:$0xff] }
  0x26   :  { %256 = vmatmul.mubr.f32.vlgmr.msra.gmra.mrb[0].mxu1 %v114_v33  ;;  %709 = vmatprep.subr.bf16.mxu0 %v785_v47  ;;  %v743_v20 = vpack.c.bf16 %v365_v19, %v364_v18  ;;  %v367_v22 = vld [vmem:[%s1162_s5 + $0x58] sm:$0xff]  ;;  %v368_v24 = vld [vmem:[%s1162_s5 + $0x60] sm:$0xff]  ;;  %v369_v25 = vld [vmem:[%s1162_s5 + $0x68] sm:$0xff] }
  0x27   :  { %639 = vmatprep.mubr.msk.f32.mxu1 %vm786_vm0, %v787_v5  ;;  %732 = vmatpush3.bf16.msra.mxu1 %v731_v9  ;;  %v746_v23 = vpack.c.bf16 %v367_v22, %v366_v21  ;;  %v749_v26 = vpack.c.bf16 %v369_v25, %v368_v24  ;;  %v465_v28 = vld [vmem:[%s1159_s2] ss:$0 sm:$0xff]  ;;  %v370_v37 = vld [vmem:[%s1162_s5 + $0x70] sm:$0xff]  ;;  %v371_v38 = vld [vmem:[%s1162_s5 + $0x78] sm:$0xff]  ;;  %s760_s5 = scalar_lea.vmem %s458_s8, 32 }
  0x28   :  { %733 = vmatprep.subr.bf16.mxu1 %v785_v47  ;;  %v752_v39 = vpack.c.bf16 %v371_v38, %v370_v37  ;;  %v466_v40 = vld [vmem:[%s1161_s4] ss:$0 sm:$0xff]  ;;  %p761_p0 = scmp.ne.s32.totalorder %s458_s8, %s760_s5  ;;  %p766_p2 = scmp.lt.s32.totalorder %s760_s5, %s760_s5 }
  0x29   :  { %711 = vmatpush3.bf16.msra.mxu0 %v710_v50  ;;  %v467_v45 = vld [vmem:[%s1163_s6] ss:$0 sm:$0xff] }
  0x2a   :  { %712 = vmatprep.subr.bf16.mxu0 %v785_v47  ;;  %p767_p3 = por %p766_p2, %p765_p1 }
  0x2b   :  { %735 = vmatpush3.bf16.msra.mxu1 %v734_v11 }
  0x2c   :  { %736 = vmatprep.subr.bf16.mxu1 %v785_v47  ;;  %p768_p4 = pnand %p767_p3, %p761_p0 }
  0x2d   :  { %714 = vmatpush3.bf16.msra.mxu0 %v713_v53 }
  0x2e   :  { %715 = vmatprep.subr.bf16.mxu0 %v785_v47 }
  0x2f   :  { %738 = vmatpush3.bf16.msra.mxu1 %v737_v14 }
  0x30   :  { %739 = vmatprep.subr.bf16.mxu1 %v785_v47 }
  0x31   :  { %717 = vmatpush3.bf16.msra.mxu0 %v716_v56 }
  0x32   :  { %718 = vmatprep.subr.bf16.mxu0 %v785_v47 }
  0x33   :  { %741 = vmatpush3.bf16.msra.mxu1 %v740_v17 }
  0x34   :  { %742 = vmatprep.subr.bf16.mxu1 %v785_v47 }
  0x35   :  { %720 = vmatpush3.bf16.msra.mxu0 %v719_v59 }
  0x36   :  { %721 = vmatprep.subr.bf16.mxu0 %v785_v47 }
  0x37   :  { %744 = vmatpush3.bf16.msra.mxu1 %v743_v20 }
  0x38   :  { %745 = vmatprep.subr.bf16.mxu1 %v785_v47 }
  0x39   :  { %723 = vmatpush3.bf16.msra.mxu0 %v722_v62 }
  0x3a   :  { %724 = vmatprep.subr.bf16.mxu0 %v785_v47 }
  0x3b   :  { %747 = vmatpush3.bf16.msra.mxu1 %v746_v23 }
  0x3c   :  { %748 = vmatprep.subr.bf16.mxu1 %v785_v47 }
  0x3d   :  { %726 = vmatpush3.bf16.msra.mxu0 %v725_v1 }
  0x3e   :  { %727 = vmatprep.subr.bf16.mxu0 %v785_v47 }
  0x3f   :  { %750 = vmatpush3.bf16.msra.mxu1 %v749_v26 }
  0x40   :  { %751 = vmatprep.subr.bf16.mxu1 %v785_v47 }
  0x41   :  { %729 = vmatpush3.bf16.msra.mxu0 %v728_v4 }
  0x43   :  { %753 = vmatpush3.bf16.msra.mxu1 %v752_v39 }
  0xf7   :  { %v500_v27 = vpop.f32.mrb[0].mxu0 }
  0xf8   :  { %v501_v29 = vpop.f32.mrb[1].mxu0 }
  0xf9   :  { %v535_v30 = vpop.f32.mrb[0].mxu1  ;;  %v502_v31 = vadd.f32 %v501_v29, %v500_v27 }
  0xfa   :  { %v536_v32 = vpop.f32.mrb[1].mxu1 }
  0xfb   :  { %v537_v33 = vadd.f32 %v536_v32, %v535_v30  ;;  %v188_v34 = vadd.f32 %v502_v31, %v465_v28 }
  0xfd   :  { %v258_v35 = vadd.f32 %v537_v33, %v188_v34 }
  0xff   :  { %v261_v36 = vmax.f32 %v258_v35, 0.0 }
 0x101   :  { %605 = vmatmul.mubr.f32.vlgmr.msra.gmra.mrb[2].mxu0 %v261_v36 }
 0x1d4   :  { %v351_v41 = vpop.f32.mrb[2].mxu0 }
 0x1d5   :  { %v352_v42 = vadd.f32 %v466_v40, %v351_v41  ;;  %v606_v43 = vpop.f32.mrb[3].mxu0 }
 0x1d7   :  { %v355_v44 = vmax.f32 %v352_v42, 0.0 }
 0x1d9   :  { %640 = vmatmul.mubr.f32.vlgmr.msra.gmra.mrb[2].mxu1 %v355_v44 }
 0x2ac   :  { %v445_v46 = vpop.f32.mrb[2].mxu1 }
 0x2ad   :  { %v446_v47 = vadd.f32 %v467_v45, %v445_v46  ;;  %v641_v48 = vpop.f32.mrb[3].mxu1 }
 0x2af   :  { %450 = vst.msk [vmem:[#allocation2] sm:$0x3] %vm449_vm1, %v446_v47 }
 0x2b0   :  { %771 = shalt.err (!%p768_p4)
}
 0x2b1   :  { %s772_s10 = scalar_lea.hbm %s1164_s7, 32 }
 0x2b2   :  { %p773_p5 = scmp.ne.s32.totalorder %s1164_s7, %s772_s10  ;;  %p776_p6 = scmp.lt.u32.totalorder %s772_s10, %s1164_s7 }
 0x2b4   :  { %p778_p7 = pnand %p776_p6, %p773_p5 }
 0x2b6   :  { %781 = shalt.err (!%p778_p7)
}
 0x2b7   :  { %460 = dma.vmem_to_hbm [thread:$0]  %s458_s8, 32, %s1164_s7, [#allocation3]  }
 0x2b8   :  { %782 = dma.done.wait [#allocation3], 32  }
 0x2b9   :  { %783 = vsyncadd [#allocation3], 4294967264 }
 0x2ba   :  { %464 = vsyncpa [#allocation3], 1 }

</bundles_post_ra>
